<compile_context>
chip_gen: v6e
topology: v6e:2x2x1
jax: 0.10.0
libtpu: 0.0.40
codegen_flags: <defaults>
</compile_context>

<pallas_src>
import functools

import jax
import jax.numpy as jnp
from jax.experimental import pallas as pl
from jax.experimental.pallas import tpu as pltpu


def _round_up(n, m):
    return (n + m - 1) // m * m


def _batch_tiling(B, max_tile=512):
    """Pick (tile_b, padded_B).

    - tiles are multiples of 16 rows (bf16 sublane packing)
    - padded batches <= 256 rows run as one tile (they are weight-DMA bound;
      splitting only adds per-step overhead)
    - larger batches split into >=2 tiles of <= max_tile rows (v7x megacore
      sharding) sized to minimize pad waste.
    """
    bp16 = _round_up(max(B, 1), 16)
    if bp16 <= 256:
        return bp16, bp16
    n_tiles = max(2, pl.cdiv(bp16, max_tile))
    tb = _round_up(pl.cdiv(bp16, n_tiles), 16)
    return tb, n_tiles * tb


# ---------------------------------------------------------------------------
# Kernel: full 6-layer MLP on one [tile_b, Hp] batch tile
# ---------------------------------------------------------------------------
def mlp_kernel(
    x_ref,        # [tb, Hp]           input tile (f32 or bf16)
    wcat_ref,     # [Hp+1024+128, 1024] bf16: w1 ; w2 ; w6 (row-concat)
    w3_ref,       # [1024, 512] bf16
    w4_ref,       # [512, 256]  bf16
    w5_ref,       # [256, 128]  bf16
    bcat_ref,     # [1, sum(out_dims)] f32: b1..b6 (lane-concat, 128-aligned)
    out_ref,      # [tb, OUTp] bf16
    *,
    wcat_offs,    # static row offsets (0, Hp, Hp+1024, Hp+1024+128)
    out_dims,     # static padded out dims (1024, 1024, 512, 256, 128, OUTp)
    compute_dtype,
):
    # Static slices of the concatenated resident params (all offsets are
    # multiples of 128, so loads stay tile-aligned and lane-dense).
    w1 = wcat_ref[wcat_offs[0]:wcat_offs[1], :]
    w2 = wcat_ref[wcat_offs[1]:wcat_offs[2], :]
    w6 = wcat_ref[wcat_offs[2]:wcat_offs[3], :]

    boffs = [0]
    for d in out_dims:
        boffs.append(boffs[-1] + d)
    biases = [bcat_ref[:, boffs[i]:boffs[i + 1]] for i in range(6)]

    def layer(h, w, bias, out_dtype):
        # bf16 x bf16 -> f32 MXU accumulation; bias-add / ReLU in f32;
        # single fused cast to the carry dtype.
        y = jnp.dot(h, w, preferred_element_type=jnp.float32)
        return jnp.maximum(y + bias, 0.0).astype(out_dtype)

    h = x_ref[...].astype(compute_dtype)
    h = layer(h, w1, biases[0], compute_dtype)
    h = layer(h, w2, biases[1], compute_dtype)
    h = layer(h, w3_ref[...], biases[2], compute_dtype)
    h = layer(h, w4_ref[...], biases[3], compute_dtype)
    h = layer(h, w5_ref[...], biases[4], compute_dtype)
    out_ref[...] = layer(h, w6, biases[5], out_ref.dtype)


# ---------------------------------------------------------------------------
# Wrapper
# ---------------------------------------------------------------------------
def mlps_for_reprogram(x, params, *, max_tile_b=512,
                       compute_dtype=jnp.bfloat16,
                       out_dtype=jnp.bfloat16,
                       slice_output=True):
    """x: [B, H] float32.  params: 6 x (W [in,out] f32, b [1,out] f32)."""
    assert len(params) == 6, "expected 6 Linear layers"
    B, H = x.shape
    out_dim = params[-1][0].shape[1]

    Hp = _round_up(H, 128)                 # lane-dense K for layer 1
    OUTp = _round_up(out_dim, 128)         # lane-dense final store (1000->1024)
    tb, Bp = _batch_tiling(B, max_tile_b)

    # Pad (and fuse the bf16 cast into the pad) only when needed; otherwise
    # feed f32 x straight in — the kernel casts on load, avoiding a separate
    # HBM convert pass.
    if (Bp, Hp) != (B, H):
        xp = jnp.pad(x, ((0, Bp - B), (0, Hp - H))).astype(compute_dtype)
    else:
        xp = x

    # Pad / cast per-layer params.
    ws, bs, dims_p = [], [], []
    for li, (w, b) in enumerate(params):
        dout = w.shape[1]
        if li == 0 and Hp != H:
            w = jnp.pad(w, ((0, Hp - H), (0, 0)))
        if li == 5 and OUTp != dout:
            w = jnp.pad(w, ((0, 0), (0, OUTp - dout)))
            b = jnp.pad(b, ((0, 0), (0, OUTp - dout)))
            dout = OUTp
        ws.append(w.astype(compute_dtype))          # bf16 weights
        bs.append(b.reshape(1, -1).astype(jnp.float32))  # f32 biases
        dims_p.append(dout)
    assert dims_p == [1024, 1024, 512, 256, 128, OUTp], dims_p

    # Collapse the 12 resident transfers to 5: row-concat the three
    # 1024-lane weights (layers 1, 2, 6) and lane-concat all six biases.
    wcat = jnp.concatenate([ws[0], ws[1], ws[5]], axis=0)   # (Hp+1024+128, 1024)
    bcat = jnp.concatenate(bs, axis=1)                      # (1, 3968) f32
    wcat_offs = (0, Hp, Hp + 1024, Hp + 1024 + 128)

    resident = pl.BlockSpec(memory_space=pltpu.MemorySpace.VMEM)
    in_specs = [pl.BlockSpec((tb, Hp), lambda i: (i, 0)),
                resident,          # wcat
                resident,          # w3
                resident,          # w4
                resident,          # w5
                resident]          # bcat
    out_spec = pl.BlockSpec((tb, OUTp), lambda i: (i, 0))

    layer_shapes = [(Hp, 1024), (1024, 1024), (1024, 512),
                    (512, 256), (256, 128), (128, OUTp)]
    flops = 2 * Bp * sum(din * dout for din, dout in layer_shapes)
    param_bytes = (wcat.nbytes + ws[2].nbytes + ws[3].nbytes + ws[4].nbytes
                   + bcat.nbytes)
    bytes_accessed = (param_bytes
                      + Bp * Hp * xp.dtype.itemsize
                      + Bp * OUTp * jnp.dtype(out_dtype).itemsize)

    fn = pl.pallas_call(
        functools.partial(mlp_kernel,
                          wcat_offs=wcat_offs,
                          out_dims=tuple(dims_p),
                          compute_dtype=compute_dtype),
        out_shape=jax.ShapeDtypeStruct((Bp, OUTp), out_dtype),
        grid_spec=pltpu.PrefetchScalarGridSpec(
            num_scalar_prefetch=0,
            grid=(Bp // tb,),
            in_specs=in_specs,
            out_specs=out_spec,
        ),
        compiler_params=pltpu.CompilerParams(
            dimension_semantics=("parallel",),
            # Actual footprint is ~4 MiB weights + a few MiB of activation
            # tiles even at tb=512; 48 MiB keeps generous headroom and stays
            # under v7x's 64 MiB physical VMEM (per-core duplication is fine).
            vmem_limit_bytes=48 * 1024 * 1024,
        ),
        cost_estimate=pl.CostEstimate(
            flops=int(flops),
            transcendentals=0,
            bytes_accessed=int(bytes_accessed),
        ),
    )
    out = fn(xp, wcat, ws[2], ws[3], ws[4], bcat)

    if not slice_output:
        return out                     # padded [Bp, OUTp] buffer
    if Bp != B or OUTp != out_dim:
        out = out[:B, :out_dim]
    return out


# ---------------------------------------------------------------------------
# Deterministic parameter init (mimics torch.nn.Linear default U(-k, k),
# k = 1/sqrt(fan_in)); weights stored transposed as [in, out], f32 masters.
# ---------------------------------------------------------------------------
def init_params(key, H):
    dims = [H, 1024, 1024, 512, 256, 128, 1000]
    params = []
    for i in range(len(dims) - 1):
        fan_in, fan_out = dims[i], dims[i + 1]
        key, kw, kb = jax.random.split(key, 3)
        bound = 1.0 / (fan_in ** 0.5)
        w = jax.random.uniform(kw, (fan_in, fan_out), jnp.float32, -bound, bound)
        b = jax.random.uniform(kb, (1, fan_out), jnp.float32, -bound, bound)
        params.append((w, b))
    return params


def reference_forward(x, params, compute_dtype=jnp.bfloat16):
    """Plain-JAX reference emulating the kernel's bf16/f32 numerics."""
    h = x.astype(compute_dtype)
    y = None
    for (w, b) in params:
        y = jnp.dot(h, w.astype(compute_dtype),
                    preferred_element_type=jnp.float32)
        y = jnp.maximum(y + b.astype(jnp.float32), 0.0)
        h = y.astype(compute_dtype)
    return y


# ---------------------------------------------------------------------------
if __name__ == "__main__":
    H = 32
    B = 8

    key = jax.random.PRNGKey(0)
    key, kx = jax.random.split(key)
    x = jax.random.normal(kx, (B, H), jnp.float32)

    params = init_params(key, H)

    out = mlps_for_reprogram(x, params)          # single 16-row tile here
    out = jax.block_until_ready(out)

    ref = reference_forward(x, params)
    assert out.shape == (B, 1000), out.shape
    assert jnp.allclose(out.astype(jnp.float32), ref, atol=2e-2, rtol=2e-2), \
        float(jnp.max(jnp.abs(out.astype(jnp.float32) - ref)))

    print("KERNEL_OK")
</pallas_src>

<mosaic_0001>
module attributes {stable_mosaic.version = 11 : i64} {
  func.func @mlp_kernel(%arg0: i32, %arg1: memref<16x128xbf16, #tpu.memory_space<vmem>>, %arg2: memref<1280x1024xbf16, #tpu.memory_space<vmem>>, %arg3: memref<1024x512xbf16, #tpu.memory_space<vmem>>, %arg4: memref<512x256xbf16, #tpu.memory_space<vmem>>, %arg5: memref<256x128xbf16, #tpu.memory_space<vmem>>, %arg6: memref<1x3968xf32, #tpu.memory_space<vmem>>, %arg7: memref<16x1024xbf16, #tpu.memory_space<vmem>>) attributes {dimension_semantics = [#tpu.dimension_semantics<parallel>], iteration_bounds = array<i64: 1>, scalar_prefetch = 0 : i64, scratch_operands = 0 : i64, tpu.core_type = #tpu.core_type<tc>, window_params = [{transform_indices = @transform_0, window_bounds = array<i64: 16, 128>}, {pipeline_mode = #tpu.pipeline_mode<synchronous>, transform_indices = @transform_1, window_bounds = array<i64: 1280, 1024>}, {pipeline_mode = #tpu.pipeline_mode<synchronous>, transform_indices = @transform_2, window_bounds = array<i64: 1024, 512>}, {pipeline_mode = #tpu.pipeline_mode<synchronous>, transform_indices = @transform_3, window_bounds = array<i64: 512, 256>}, {pipeline_mode = #tpu.pipeline_mode<synchronous>, transform_indices = @transform_4, window_bounds = array<i64: 256, 128>}, {pipeline_mode = #tpu.pipeline_mode<synchronous>, transform_indices = @transform_5, window_bounds = array<i64: 1, 3968>}, {transform_indices = @transform_6, window_bounds = array<i64: 16, 1024>}]} {
    %c0 = arith.constant 0 : index
    %c0_0 = arith.constant 0 : index
    %0 = vector.load %arg2[%c0, %c0_0] : memref<1280x1024xbf16, #tpu.memory_space<vmem>>, vector<128x1024xbf16>
    %c128 = arith.constant 128 : index
    %c0_1 = arith.constant 0 : index
    %1 = vector.load %arg2[%c128, %c0_1] : memref<1280x1024xbf16, #tpu.memory_space<vmem>>, vector<1024x1024xbf16>
    %c1152 = arith.constant 1152 : index
    %c0_2 = arith.constant 0 : index
    %2 = vector.load %arg2[%c1152, %c0_2] : memref<1280x1024xbf16, #tpu.memory_space<vmem>>, vector<128x1024xbf16>
    %c0_3 = arith.constant 0 : index
    %c0_4 = arith.constant 0 : index
    %3 = vector.load %arg6[%c0_3, %c0_4] : memref<1x3968xf32, #tpu.memory_space<vmem>>, vector<1x1024xf32>
    %c0_5 = arith.constant 0 : index
    %c1024 = arith.constant 1024 : index
    %4 = vector.load %arg6[%c0_5, %c1024] : memref<1x3968xf32, #tpu.memory_space<vmem>>, vector<1x1024xf32>
    %c0_6 = arith.constant 0 : index
    %c2048 = arith.constant 2048 : index
    %5 = vector.load %arg6[%c0_6, %c2048] : memref<1x3968xf32, #tpu.memory_space<vmem>>, vector<1x512xf32>
    %c0_7 = arith.constant 0 : index
    %c2560 = arith.constant 2560 : index
    %6 = vector.load %arg6[%c0_7, %c2560] : memref<1x3968xf32, #tpu.memory_space<vmem>>, vector<1x256xf32>
    %c0_8 = arith.constant 0 : index
    %c2816 = arith.constant 2816 : index
    %7 = vector.load %arg6[%c0_8, %c2816] : memref<1x3968xf32, #tpu.memory_space<vmem>>, vector<1x128xf32>
    %c0_9 = arith.constant 0 : index
    %c2944 = arith.constant 2944 : index
    %8 = vector.load %arg6[%c0_9, %c2944] : memref<1x3968xf32, #tpu.memory_space<vmem>>, vector<1x1024xf32>
    %c0_10 = arith.constant 0 : index
    %c0_11 = arith.constant 0 : index
    %9 = vector.load %arg1[%c0_10, %c0_11] : memref<16x128xbf16, #tpu.memory_space<vmem>>, vector<16x128xbf16>
    %cst = arith.constant dense<0.000000e+00> : vector<16x1024xf32>
    %10 = tpu.matmul %9, %0, %cst {dimension_numbers = #tpu.dot_dimension_numbers<[1], [0], [0], [1], [0, 0, 1, 1], [], []>} : vector<16x128xbf16>, vector<128x1024xbf16>, vector<16x1024xf32> -> vector<16x1024xf32>
    %11 = vector.broadcast %3 : vector<1x1024xf32> to vector<16x1024xf32>
    %12 = arith.addf %10, %11 : vector<16x1024xf32>
    %cst_12 = arith.constant 0.000000e+00 : f32
    %13 = vector.broadcast %cst_12 : f32 to vector<16x1024xf32>
    %14 = arith.maximumf %12, %13 : vector<16x1024xf32>
    %15 = arith.truncf %14 : vector<16x1024xf32> to vector<16x1024xbf16>
    %cst_13 = arith.constant dense<0.000000e+00> : vector<16x1024xf32>
    %16 = tpu.matmul %15, %1, %cst_13 {dimension_numbers = #tpu.dot_dimension_numbers<[1], [0], [0], [1], [0, 0, 1, 1], [], []>} : vector<16x1024xbf16>, vector<1024x1024xbf16>, vector<16x1024xf32> -> vector<16x1024xf32>
    %17 = vector.broadcast %4 : vector<1x1024xf32> to vector<16x1024xf32>
    %18 = arith.addf %16, %17 : vector<16x1024xf32>
    %cst_14 = arith.constant 0.000000e+00 : f32
    %19 = vector.broadcast %cst_14 : f32 to vector<16x1024xf32>
    %20 = arith.maximumf %18, %19 : vector<16x1024xf32>
    %21 = arith.truncf %20 : vector<16x1024xf32> to vector<16x1024xbf16>
    %c0_15 = arith.constant 0 : index
    %c0_16 = arith.constant 0 : index
    %22 = vector.load %arg3[%c0_15, %c0_16] : memref<1024x512xbf16, #tpu.memory_space<vmem>>, vector<1024x512xbf16>
    %cst_17 = arith.constant dense<0.000000e+00> : vector<16x512xf32>
    %23 = tpu.matmul %21, %22, %cst_17 {dimension_numbers = #tpu.dot_dimension_numbers<[1], [0], [0], [1], [0, 0, 1, 1], [], []>} : vector<16x1024xbf16>, vector<1024x512xbf16>, vector<16x512xf32> -> vector<16x512xf32>
    %24 = vector.broadcast %5 : vector<1x512xf32> to vector<16x512xf32>
    %25 = arith.addf %23, %24 : vector<16x512xf32>
    %cst_18 = arith.constant 0.000000e+00 : f32
    %26 = vector.broadcast %cst_18 : f32 to vector<16x512xf32>
    %27 = arith.maximumf %25, %26 : vector<16x512xf32>
    %28 = arith.truncf %27 : vector<16x512xf32> to vector<16x512xbf16>
    %c0_19 = arith.constant 0 : index
    %c0_20 = arith.constant 0 : index
    %29 = vector.load %arg4[%c0_19, %c0_20] : memref<512x256xbf16, #tpu.memory_space<vmem>>, vector<512x256xbf16>
    %cst_21 = arith.constant dense<0.000000e+00> : vector<16x256xf32>
    %30 = tpu.matmul %28, %29, %cst_21 {dimension_numbers = #tpu.dot_dimension_numbers<[1], [0], [0], [1], [0, 0, 1, 1], [], []>} : vector<16x512xbf16>, vector<512x256xbf16>, vector<16x256xf32> -> vector<16x256xf32>
    %31 = vector.broadcast %6 : vector<1x256xf32> to vector<16x256xf32>
    %32 = arith.addf %30, %31 : vector<16x256xf32>
    %cst_22 = arith.constant 0.000000e+00 : f32
    %33 = vector.broadcast %cst_22 : f32 to vector<16x256xf32>
    %34 = arith.maximumf %32, %33 : vector<16x256xf32>
    %35 = arith.truncf %34 : vector<16x256xf32> to vector<16x256xbf16>
    %c0_23 = arith.constant 0 : index
    %c0_24 = arith.constant 0 : index
    %36 = vector.load %arg5[%c0_23, %c0_24] : memref<256x128xbf16, #tpu.memory_space<vmem>>, vector<256x128xbf16>
    %cst_25 = arith.constant dense<0.000000e+00> : vector<16x128xf32>
    %37 = tpu.matmul %35, %36, %cst_25 {dimension_numbers = #tpu.dot_dimension_numbers<[1], [0], [0], [1], [0, 0, 1, 1], [], []>} : vector<16x256xbf16>, vector<256x128xbf16>, vector<16x128xf32> -> vector<16x128xf32>
    %38 = vector.broadcast %7 : vector<1x128xf32> to vector<16x128xf32>
    %39 = arith.addf %37, %38 : vector<16x128xf32>
    %cst_26 = arith.constant 0.000000e+00 : f32
    %40 = vector.broadcast %cst_26 : f32 to vector<16x128xf32>
    %41 = arith.maximumf %39, %40 : vector<16x128xf32>
    %42 = arith.truncf %41 : vector<16x128xf32> to vector<16x128xbf16>
    %cst_27 = arith.constant dense<0.000000e+00> : vector<16x1024xf32>
    %43 = tpu.matmul %42, %2, %cst_27 {dimension_numbers = #tpu.dot_dimension_numbers<[1], [0], [0], [1], [0, 0, 1, 1], [], []>} : vector<16x128xbf16>, vector<128x1024xbf16>, vector<16x1024xf32> -> vector<16x1024xf32>
    %44 = vector.broadcast %8 : vector<1x1024xf32> to vector<16x1024xf32>
    %45 = arith.addf %43, %44 : vector<16x1024xf32>
    %cst_28 = arith.constant 0.000000e+00 : f32
    %46 = vector.broadcast %cst_28 : f32 to vector<16x1024xf32>
    %47 = arith.maximumf %45, %46 : vector<16x1024xf32>
    %48 = arith.truncf %47 : vector<16x1024xf32> to vector<16x1024xbf16>
    %c0_29 = arith.constant 0 : index
    %c0_30 = arith.constant 0 : index
    %49 = vector.load %arg7[%c0_29, %c0_30] : memref<16x1024xbf16, #tpu.memory_space<vmem>>, vector<16x1024xbf16>
    tpu.vector_store %arg7[%c0_29, %c0_30], %48 {strides = array<i32>} : memref<16x1024xbf16, #tpu.memory_space<vmem>>, vector<16x1024xbf16>,
    return
  }
  func.func @transform_0(%arg0: i32) -> (i32, i32) {
    %c0_i32 = arith.constant 0 : i32
    %c0_i32_0 = arith.constant 0 : i32
    return %arg0, %c0_i32 : i32, i32
  }
  func.func @transform_1(%arg0: i32) -> (i32, i32) {
    %c0_i32 = arith.constant 0 : i32
    %c0_i32_0 = arith.constant 0 : i32
    %c0_i32_1 = arith.constant 0 : i32
    return %c0_i32, %c0_i32_0 : i32, i32
  }
  func.func @transform_2(%arg0: i32) -> (i32, i32) {
    %c0_i32 = arith.constant 0 : i32
    %c0_i32_0 = arith.constant 0 : i32
    %c0_i32_1 = arith.constant 0 : i32
    return %c0_i32, %c0_i32_0 : i32, i32
  }
  func.func @transform_3(%arg0: i32) -> (i32, i32) {
    %c0_i32 = arith.constant 0 : i32
    %c0_i32_0 = arith.constant 0 : i32
    %c0_i32_1 = arith.constant 0 : i32
    return %c0_i32, %c0_i32_0 : i32, i32
  }
  func.func @transform_4(%arg0: i32) -> (i32, i32) {
    %c0_i32 = arith.constant 0 : i32
    %c0_i32_0 = arith.constant 0 : i32
    %c0_i32_1 = arith.constant 0 : i32
    return %c0_i32, %c0_i32_0 : i32, i32
  }
  func.func @transform_5(%arg0: i32) -> (i32, i32) {
    %c0_i32 = arith.constant 0 : i32
    %c0_i32_0 = arith.constant 0 : i32
    %c0_i32_1 = arith.constant 0 : i32
    return %c0_i32, %c0_i32_0 : i32, i32
  }
  func.func @transform_6(%arg0: i32) -> (i32, i32) {
    %c0_i32 = arith.constant 0 : i32
    %c0_i32_0 = arith.constant 0 : i32
    return %arg0, %c0_i32 : i32, i32
  }
}

</mosaic_0001>

<bundles_post_ra>
// kernel: tpu_custom_call.1
= control target key start
LH: loop header
LB: loop body
LE: loop exit
PB: predicated region body
PF: predicated region fallthrough
CT: control target
= control target key end

     0   :  { %11 = vsyncpa [#allocation3], 0  ;;  %s9896_s0 = inlined_call_operand.hbm [shape: bf16[16,128], index: 0, kind: input, shape index: {}]   ;;  %s9897_s1 = inlined_call_operand.hbm [shape: bf16[1280,1024], index: 1, kind: input, shape index: {}]   ;;  %s9898_s2 = inlined_call_operand.hbm [shape: bf16[1024,512], index: 2, kind: input, shape index: {}]   ;;  %s9899_s3 = inlined_call_operand.hbm [shape: bf16[512,256], index: 3, kind: input, shape index: {}]   ;;  %s9900_s4 = inlined_call_operand.hbm [shape: bf16[256,128], index: 4, kind: input, shape index: {}]   ;;  %s9901_s5 = inlined_call_operand.hbm [shape: f32[1,3968], index: 5, kind: input, shape index: {}]   ;;  %s9902_s6 = inlined_call_operand.hbm [shape: bf16[16,1024], index: 6, kind: output, shape index: {}]  }
   0x1   :  { %12 = vsyncpa [#allocation6], 0 }
   0x2   :  { %13 = vsyncpa [#allocation9], 0 }
   0x3   :  { %14 = vsyncpa [#allocation12], 0 }
   0x4   :  { %15 = vsyncpa [#allocation4], 0  ;;  %s9512_s21 = smov [#allocation5]  }
   0x5   :  { %s33_s22 = sshll.u32 %s9512_s21, 4  ;;  %s34_s22 = int_to_ptr.vmem [resolvable:$true] %s33_s22 }
   0x6   :  { %s9370_s23 = scalar_lea.vmem %s34_s22, 81920  ;;  %p9375_p1 = scmp.lt.s32.totalorder %s34_s22, %s34_s22 }
   0x7   :  { %p9371_p0 = scmp.ne.s32.totalorder %s34_s22, %s9370_s23  ;;  %p9376_p2 = scmp.lt.s32.totalorder %s9370_s23, %s9370_s23 }
   0x9   :  { %p9377_p3 = por %p9376_p2, %p9375_p1 }
   0xb   :  { %p9378_p4 = pnand %p9377_p3, %p9371_p0 }
   0xd   :  { %9381 = shalt.err (!%p9378_p4)
}
   0xe   :  { %s9513_s24 = smov 512   ;;  %s9514_s25 = smov 32  }
   0xf   :  { %39 = dma.hbm_to_vmem [thread:$0]  %s9897_s1, 81920, %s34_s22, [#allocation6], %s9513_s24, %s9513_s24, %s9514_s25  }
  0x10   :  { %s9515_s28 = smov [#allocation8]  }
  0x11   :  { %s57_s29 = sshll.u32 %s9515_s28, 4  ;;  %s58_s29 = int_to_ptr.vmem [resolvable:$true] %s57_s29 }
  0x12   :  { %s9390_s30 = scalar_lea.vmem %s58_s29, 8192  ;;  %p9395_p6 = scmp.lt.s32.totalorder %s58_s29, %s58_s29 }
  0x13   :  { %p9391_p5 = scmp.ne.s32.totalorder %s58_s29, %s9390_s30  ;;  %p9396_p7 = scmp.lt.s32.totalorder %s9390_s30, %s9390_s30 }
  0x15   :  { %p9397_p8 = por %p9396_p7, %p9395_p6 }
  0x17   :  { %p9398_p9 = pnand %p9397_p8, %p9391_p5 }
  0x19   :  { %9401 = shalt.err (!%p9398_p9)
}
  0x1a   :  { %s9516_s7 = smov 128   ;;  %s9517_s8 = smov 8  }
  0x1b   :  { %63 = dma.hbm_to_vmem [thread:$0]  %s9899_s3, 8192, %s58_s29, [#allocation9], %s9516_s7, %s9516_s7, %s9517_s8  }
  0x1c   :  { %s9518_s11 = smov [#allocation2]  }
  0x1d   :  { %s21_s12 = sshll.u32 %s9518_s11, 4  ;;  %s22_s12 = int_to_ptr.vmem [resolvable:$true] %s21_s12 }
  0x1e   :  { %s9410_s1 = scalar_lea.vmem %s22_s12, 128  ;;  %p9415_p11 = scmp.lt.s32.totalorder %s22_s12, %s22_s12 }
  0x1f   :  { %p9411_p10 = scmp.ne.s32.totalorder %s22_s12, %s9410_s1  ;;  %p9416_p12 = scmp.lt.s32.totalorder %s9410_s1, %s9410_s1 }
  0x21   :  { %p9417_p13 = por %p9416_p12, %p9415_p11 }
  0x23   :  { %p9418_p0 = pnand %p9417_p13, %p9411_p10 }
  0x25   :  { %9421 = shalt.err (!%p9418_p0)
}
  0x26   :  { %s9519_s13 = smov 64   ;;  %s9520_s14 = smov 4  }
  0x27   :  { %27 = dma.hbm_to_vmem [thread:$0]  %s9896_s0, 128, %s22_s12, [#allocation3], %s9519_s13, %s9519_s13, %s9520_s14  }
  0x28   :  { %s9521_s3 = smov [#allocation7]  }
  0x29   :  { %s45_s17 = sshll.u32 %s9521_s3, 4  ;;  %s46_s17 = int_to_ptr.vmem [resolvable:$true] %s45_s17 }
  0x2a   :  { %s9430_s18 = scalar_lea.vmem %s46_s17, 32768  ;;  %p9435_p2 = scmp.lt.s32.totalorder %s46_s17, %s46_s17 }
  0x2b   :  { %p9431_p1 = scmp.ne.s32.totalorder %s46_s17, %s9430_s18  ;;  %p9436_p3 = scmp.lt.s32.totalorder %s9430_s18, %s9430_s18 }
  0x2d   :  { %p9437_p4 = por %p9436_p3, %p9435_p2 }
  0x2f   :  { %p9438_p5 = pnand %p9437_p4, %p9431_p1 }
  0x31   :  { %9441 = shalt.err (!%p9438_p5)
}
  0x32   :  { %s9522_s19 = smov 256   ;;  %s9523_s20 = smov 16  }
  0x33   :  { %51 = dma.hbm_to_vmem [thread:$0]  %s9898_s2, 32768, %s46_s17, [#allocation6], %s9522_s19, %s9522_s19, %s9523_s20  }
  0x34   :  { %s9524_s23 = smov [#allocation10]   ;;  %s9525_s27 = smov [#allocation11]  }
  0x35   :  { %s69_s26 = sshll.u32 %s9524_s23, 4  ;;  %s82_s0 = sshll.u32 %s9525_s27, 4  ;;  %s70_s26 = int_to_ptr.vmem [resolvable:$true] %s69_s26  ;;  %s83_s0 = int_to_ptr.vmem [resolvable:$true] %s82_s0 }
  0x36   :  { %s9450_s28 = scalar_lea.vmem %s70_s26, 2048  ;;  %p9455_p7 = scmp.lt.s32.totalorder %s70_s26, %s70_s26 }
  0x37   :  { %p9451_p6 = scmp.ne.s32.totalorder %s70_s26, %s9450_s28  ;;  %p9456_p8 = scmp.lt.s32.totalorder %s9450_s28, %s9450_s28 }
  0x39   :  { %p9457_p9 = por %p9456_p8, %p9455_p7 }
  0x3b   :  { %p9458_p10 = pnand %p9457_p9, %p9451_p6 }
  0x3d   :  { %9461 = shalt.err (!%p9458_p10)
}
  0x3e   :  { %75 = dma.hbm_to_vmem [thread:$0]  %s9900_s4, 2048, %s70_s26, [#allocation9], %s9519_s13, %s9519_s13, %s9520_s14  }
  0x3f   :  { %s9470_s2 = scalar_lea.vmem %s83_s0, 496  ;;  %s9474_s7 = scalar_lea.vmem %s83_s0, 512 }
  0x40   :  { %p9471_p11 = scmp.ne.s32.totalorder %s83_s0, %s9470_s2  ;;  %p9475_p12 = scmp.lt.s32.totalorder %s83_s0, %s83_s0 }
  0x41   :  { %p9476_p13 = scmp.lt.s32.totalorder %s9474_s7, %s9470_s2 }
  0x43   :  { %p9477_p0 = por %p9476_p13, %p9475_p12 }
  0x45   :  { %p9478_p1 = pnand %p9477_p0, %p9471_p11 }
  0x47   :  { %9481 = shalt.err (!%p9478_p1)
}
  0x48   :  { %85 = dma.hbm_to_vmem [thread:$0]  %s9901_s5, 496, %s83_s0, [#allocation12]  }
  0x49   :  { %9502 = dma.done.wait [#allocation3], 128  }
  0x4a   :  { %9503 = vsyncadd [#allocation3], 4294967168 }
  0x4b   :  { %9504 = dma.done.wait [#allocation6], 114688  }
  0x4c   :  { %9505 = vsyncadd [#allocation6], 4294852608 }
  0x4d   :  { %9506 = dma.done.wait [#allocation9], 10240  }
  0x4e   :  { %9507 = vsyncadd [#allocation9], 4294957056 }
  0x4f   :  { %9508 = dma.done.wait [#allocation12], 496  }
  0x50   :  { %9509 = vsyncadd [#allocation12], 4294966800  ;;  %v9526_v0 = vmov 0   ;;  %v161_v1 = vld [vmem:[#allocation5 + $0x1c0] sm:$0xff]  ;;  %v162_v3 = vld [vmem:[#allocation5 + $0x1c8] sm:$0xff]  ;;  %s9527_s4 = smov [#allocation13]  }
  0x51   :  { %1152 = vmatprep.mubr.bf16.mxu0 %v9526_v0  ;;  %1195 = vmatprep.mubr.bf16.mxu1 %v9526_v0  ;;  %v165_v2 = vld [vmem:[#allocation5 + $0x1e0] sm:$0xff]  ;;  %v166_v5 = vld [vmem:[#allocation5 + $0x1e8] sm:$0xff]  ;;  %v163_v63 = vld [vmem:[#allocation5 + $0x1d0] sm:$0xff]  ;;  %s7817_s5 = sshll.u32 %s9527_s4, 4  ;;  %s7818_s5 = int_to_ptr.vmem [resolvable:$true] %s7817_s5 }
  0x52   :  { %v7890_v4 = vcombine.high %v161_v1, %v165_v2  ;;  %v7889_v6 = vcombine.low %v161_v1, %v165_v2  ;;  %v153_v7 = vld [vmem:[#allocation5 + $0x180] sm:$0xff]  ;;  %v7892_v9 = vcombine.high %v162_v3, %v166_v5  ;;  %v7891_v10 = vcombine.low %v162_v3, %v166_v5  ;;  %v154_v12 = vld [vmem:[#allocation5 + $0x188] sm:$0xff]  ;;  %v167_v1 = vld [vmem:[#allocation5 + $0x1f0] sm:$0xff]  ;;  %s9482_s10 = scalar_lea.vmem %s7818_s5, 1024  ;;  %p9487_p3 = scmp.lt.s32.totalorder %s7818_s5, %s7818_s5 }
  0x53   :  { %v157_v8 = vld [vmem:[#allocation5 + $0x1a0] sm:$0xff]  ;;  %v158_v13 = vld [vmem:[#allocation5 + $0x1a8] sm:$0xff]  ;;  %v164_v2 = vld [vmem:[#allocation5 + $0x1d8] sm:$0xff]  ;;  %p9483_p2 = scmp.ne.s32.totalorder %s7818_s5, %s9482_s10  ;;  %p9488_p4 = scmp.lt.s32.totalorder %s9482_s10, %s9482_s10 }
  0x54   :  { %v7882_v11 = vcombine.high %v153_v7, %v157_v8  ;;  %v145_v14 = vld [vmem:[#allocation5 + $0x140] sm:$0xff]  ;;  %1120 = vmatprep.subr.bf16.mxu0 %v7890_v4  ;;  %v7884_v15 = vcombine.high %v154_v12, %v158_v13  ;;  %v146_v17 = vld [vmem:[#allocation5 + $0x148] sm:$0xff]  ;;  %1163 = vmatprep.subr.bf16.mxu1 %v7892_v9  ;;  %v7881_v19 = vcombine.low %v153_v7, %v157_v8  ;;  %v168_v3 = vld [vmem:[#allocation5 + $0x1f8] sm:$0xff] }
  0x55   :  { %v149_v16 = vld [vmem:[#allocation5 + $0x160] sm:$0xff]  ;;  %v150_v18 = vld [vmem:[#allocation5 + $0x168] sm:$0xff]  ;;  %1121 = vmatpush1.bf16.msra.mxu0 %v7889_v6  ;;  %1164 = vmatpush1.bf16.msra.mxu1 %v7891_v10  ;;  %v7883_v20 = vcombine.low %v154_v12, %v158_v13  ;;  %v7894_v6 = vcombine.high %v163_v63, %v167_v1  ;;  %v7896_v7 = vcombine.high %v164_v2, %v168_v3  ;;  %v155_v8 = vld [vmem:[#allocation5 + $0x190] sm:$0xff]  ;;  %p9489_p5 = por %p9488_p4, %p9487_p3 }
  0x56   :  { %1122 = vmatprep.subr.bf16.mxu0 %v7882_v11  ;;  %v7874_v21 = vcombine.high %v145_v14, %v149_v16  ;;  %1165 = vmatprep.subr.bf16.mxu1 %v7884_v15  ;;  %v7876_v22 = vcombine.high %v146_v17, %v150_v18  ;;  %v137_v23 = vld [vmem:[#allocation5 + $0x100] sm:$0xff]  ;;  %v138_v25 = vld [vmem:[#allocation5 + $0x108] sm:$0xff]  ;;  %v7873_v27 = vcombine.low %v145_v14, %v149_v16  ;;  %v159_v9 = vld [vmem:[#allocation5 + $0x1b0] sm:$0xff] }
  0x57   :  { %v141_v24 = vld [vmem:[#allocation5 + $0x120] sm:$0xff]  ;;  %v142_v26 = vld [vmem:[#allocation5 + $0x128] sm:$0xff]  ;;  %v7875_v28 = vcombine.low %v146_v17, %v150_v18  ;;  %v9592_v10 = vld [vmem:[#allocation2] sm:$0xff]   ;;  %v7893_v13 = vcombine.low %v163_v63, %v167_v1  ;;  %v7895_v14 = vcombine.low %v164_v2, %v168_v3  ;;  %v7886_v15 = vcombine.high %v155_v8, %v159_v9  ;;  %p9490_p6 = pnand %p9489_p5, %p9483_p2 }
  0x58   :  { %v7866_v29 = vcombine.high %v137_v23, %v141_v24  ;;  %v7868_v30 = vcombine.high %v138_v25, %v142_v26  ;;  %v129_v31 = vld [vmem:[#allocation5 + $0xc0] sm:$0xff]  ;;  %v130_v33 = vld [vmem:[#allocation5 + $0xc8] sm:$0xff]  ;;  %v7865_v35 = vcombine.low %v137_v23, %v141_v24  ;;  %v7867_v36 = vcombine.low %v138_v25, %v142_v26  ;;  %v156_v11 = vld [vmem:[#allocation5 + $0x198] sm:$0xff] }
  0x59   :  { %1123 = vmatpush1.bf16.msra.mxu0 %v7881_v19  ;;  %1166 = vmatpush1.bf16.msra.mxu1 %v7883_v20  ;;  %v133_v32 = vld [vmem:[#allocation5 + $0xe0] sm:$0xff]  ;;  %v134_v34 = vld [vmem:[#allocation5 + $0xe8] sm:$0xff]  ;;  %v160_v12 = vld [vmem:[#allocation5 + $0x1b8] sm:$0xff] }
  0x5a   :  { %1124 = vmatprep.subr.bf16.mxu0 %v7874_v21  ;;  %1167 = vmatprep.subr.bf16.mxu1 %v7876_v22  ;;  %v7858_v37 = vcombine.high %v129_v31, %v133_v32  ;;  %v7860_v38 = vcombine.high %v130_v33, %v134_v34  ;;  %v121_v39 = vld [vmem:[#allocation5 + $0x80] sm:$0xff]  ;;  %v122_v41 = vld [vmem:[#allocation5 + $0x88] sm:$0xff]  ;;  %v7857_v43 = vcombine.low %v129_v31, %v133_v32  ;;  %v147_v17 = vld [vmem:[#allocation5 + $0x150] sm:$0xff] }
  0x5b   :  { %v125_v40 = vld [vmem:[#allocation5 + $0xa0] sm:$0xff]  ;;  %v126_v42 = vld [vmem:[#allocation5 + $0xa8] sm:$0xff]  ;;  %v7859_v44 = vcombine.low %v130_v33, %v134_v34  ;;  %v7888_v16 = vcombine.high %v156_v11, %v160_v12  ;;  %v151_v18 = vld [vmem:[#allocation5 + $0x170] sm:$0xff]  ;;  %v7885_v21 = vcombine.low %v155_v8, %v159_v9  ;;  %v7887_v22 = vcombine.low %v156_v11, %v160_v12 }
  0x5c   :  { %v7850_v45 = vcombine.high %v121_v39, %v125_v40  ;;  %v7852_v46 = vcombine.high %v122_v41, %v126_v42  ;;  %v113_v47 = vld [vmem:[#allocation5 + $0x40] sm:$0xff]  ;;  %v114_v49 = vld [vmem:[#allocation5 + $0x48] sm:$0xff]  ;;  %v7849_v51 = vcombine.low %v121_v39, %v125_v40  ;;  %v7851_v52 = vcombine.low %v122_v41, %v126_v42  ;;  %v148_v19 = vld [vmem:[#allocation5 + $0x158] sm:$0xff] }
  0x5d   :  { %1125 = vmatpush1.bf16.msra.mxu0 %v7873_v27  ;;  %1168 = vmatpush1.bf16.msra.mxu1 %v7875_v28  ;;  %v117_v48 = vld [vmem:[#allocation5 + $0x60] sm:$0xff]  ;;  %v118_v50 = vld [vmem:[#allocation5 + $0x68] sm:$0xff]  ;;  %v152_v20 = vld [vmem:[#allocation5 + $0x178] sm:$0xff]  ;;  %v7878_v23 = vcombine.high %v147_v17, %v151_v18 }
  0x5e   :  { %1126 = vmatprep.subr.bf16.mxu0 %v7866_v29  ;;  %1169 = vmatprep.subr.bf16.mxu1 %v7868_v30  ;;  %v7842_v53 = vcombine.high %v113_v47, %v117_v48  ;;  %v7844_v54 = vcombine.high %v114_v49, %v118_v50  ;;  %v105_v55 = vld [vmem:[#allocation5] sm:$0xff]  ;;  %v106_v57 = vld [vmem:[#allocation5 + $0x8] sm:$0xff]  ;;  %v7841_v59 = vcombine.low %v113_v47, %v117_v48  ;;  %v139_v25 = vld [vmem:[#allocation5 + $0x110] sm:$0xff] }
  0x5f   :  { %v109_v56 = vld [vmem:[#allocation5 + $0x20] sm:$0xff]  ;;  %v110_v58 = vld [vmem:[#allocation5 + $0x28] sm:$0xff]  ;;  %v7843_v60 = vcombine.low %v114_v49, %v118_v50  ;;  %v7880_v24 = vcombine.high %v148_v19, %v152_v20  ;;  %v143_v26 = vld [vmem:[#allocation5 + $0x130] sm:$0xff]  ;;  %v7877_v29 = vcombine.low %v147_v17, %v151_v18  ;;  %v7879_v32 = vcombine.low %v148_v19, %v152_v20 }
  0x60   :  { %v7834_v61 = vcombine.high %v105_v55, %v109_v56  ;;  %v7836_v62 = vcombine.high %v106_v57, %v110_v58  ;;  %v7833_v4 = vcombine.low %v105_v55, %v109_v56  ;;  %v7835_v5 = vcombine.low %v106_v57, %v110_v58  ;;  %v140_v27 = vld [vmem:[#allocation5 + $0x118] sm:$0xff]  ;;  %v131_v30 = vld [vmem:[#allocation5 + $0xd0] sm:$0xff]  ;;  %v229_v63 = vld [vmem:[#allocation5 + $0x3e0] sm:$0xff] }
  0x61   :  { %1127 = vmatpush1.bf16.msra.mxu0 %v7865_v35  ;;  %1170 = vmatpush1.bf16.msra.mxu1 %v7867_v36  ;;  %v144_v28 = vld [vmem:[#allocation5 + $0x138] sm:$0xff]  ;;  %v135_v31 = vld [vmem:[#allocation5 + $0xf0] sm:$0xff]  ;;  %v7870_v33 = vcombine.high %v139_v25, %v143_v26  ;;  %v353_v3 = vld [vmem:[#allocation5 + $0x7c0] sm:$0xff] }
  0x62   :  { %1128 = vmatprep.subr.bf16.mxu0 %v7858_v37  ;;  %1171 = vmatprep.subr.bf16.mxu1 %v7860_v38  ;;  %v132_v34 = vld [vmem:[#allocation5 + $0xd8] sm:$0xff]  ;;  %v7872_v36 = vcombine.high %v140_v27, %v144_v28  ;;  %v7869_v37 = vcombine.low %v139_v25, %v143_v26  ;;  %v123_v38 = vld [vmem:[#allocation5 + $0x90] sm:$0xff]  ;;  %v7871_v40 = vcombine.low %v140_v27, %v144_v28  ;;  %v221_v8 = vld [vmem:[#allocation5 + $0x3a0] sm:$0xff] }
  0x63   :  { %v136_v35 = vld [vmem:[#allocation5 + $0xf8] sm:$0xff]  ;;  %v127_v39 = vld [vmem:[#allocation5 + $0xb0] sm:$0xff]  ;;  %v7862_v41 = vcombine.high %v131_v30, %v135_v31  ;;  %v345_v12 = vld [vmem:[#allocation5 + $0x780] sm:$0xff] }
  0x64   :  { %v124_v42 = vld [vmem:[#allocation5 + $0x98] sm:$0xff]  ;;  %v119_v47 = vld [vmem:[#allocation5 + $0x70] sm:$0xff]  ;;  %v7863_v48 = vcombine.low %v132_v34, %v136_v35  ;;  %v7854_v49 = vcombine.high %v123_v38, %v127_v39  ;;  %v213_v17 = vld [vmem:[#allocation5 + $0x360] sm:$0xff] }
  0x65   :  { %1129 = vmatpush1.bf16.msra.mxu0 %v7857_v43  ;;  %1172 = vmatpush1.bf16.msra.mxu1 %v7859_v44  ;;  %v128_v43 = vld [vmem:[#allocation5 + $0xb8] sm:$0xff]  ;;  %v7864_v44 = vcombine.high %v132_v34, %v136_v35  ;;  %v111_v55 = vld [vmem:[#allocation5 + $0x30] sm:$0xff]  ;;  %v337_v20 = vld [vmem:[#allocation5 + $0x740] sm:$0xff] }
  0x66   :  { %1130 = vmatprep.subr.bf16.mxu0 %v7850_v45  ;;  %1173 = vmatprep.subr.bf16.mxu1 %v7852_v46  ;;  %v7861_v45 = vcombine.low %v131_v30, %v135_v31  ;;  %v115_v46 = vld [vmem:[#allocation5 + $0x50] sm:$0xff]  ;;  %v116_v50 = vld [vmem:[#allocation5 + $0x58] sm:$0xff]  ;;  %v7855_v56 = vcombine.low %v124_v42, %v128_v43  ;;  %v205_v25 = vld [vmem:[#allocation5 + $0x320] sm:$0xff] }
  0x67   :  { %v7846_v57 = vcombine.high %v115_v46, %v119_v47  ;;  %v108_v58 = vld [vmem:[#allocation5 + $0x18] sm:$0xff]  ;;  %v329_v28 = vld [vmem:[#allocation5 + $0x700] sm:$0xff] }
  0x68   :  { %v321_v35 = vld [vmem:[#allocation5 + $0x6c0] sm:$0xff] }
  0x69   :  { %1131 = vmatpush1.bf16.msra.mxu0 %v7849_v51  ;;  %1174 = vmatpush1.bf16.msra.mxu1 %v7851_v52  ;;  %v120_v51 = vld [vmem:[#allocation5 + $0x78] sm:$0xff]  ;;  %v7856_v52 = vcombine.high %v124_v42, %v128_v43  ;;  %v313_v43 = vld [vmem:[#allocation5 + $0x680] sm:$0xff] }
  0x6a   :  { %1132 = vmatprep.subr.bf16.mxu0 %v7842_v53  ;;  %1175 = vmatprep.subr.bf16.mxu1 %v7844_v54  ;;  %v7853_v53 = vcombine.low %v123_v38, %v127_v39  ;;  %v107_v54 = vld [vmem:[#allocation5 + $0x10] sm:$0xff]  ;;  %v7847_v1 = vcombine.low %v116_v50, %v120_v51  ;;  %v185_v39 = vld [vmem:[#allocation5 + $0x280] sm:$0xff] }
  0x6b   :  { %v7838_v2 = vcombine.high %v107_v54, %v111_v55 }
  0x6d   :  { %1133 = vmatpush1.bf16.msra.mxu0 %v7841_v59  ;;  %1176 = vmatpush1.bf16.msra.mxu1 %v7843_v60  ;;  %v112_v59 = vld [vmem:[#allocation5 + $0x38] sm:$0xff]  ;;  %v7848_v60 = vcombine.high %v116_v50, %v120_v51  ;;  %v305_v51 = vld [vmem:[#allocation5 + $0x640] sm:$0xff] }
  0x6e   :  { %1134 = vmatprep.subr.bf16.mxu0 %v7834_v61  ;;  %1177 = vmatprep.subr.bf16.mxu1 %v7836_v62  ;;  %v7845_v61 = vcombine.low %v115_v46, %v119_v47  ;;  %v225_v62 = vld [vmem:[#allocation5 + $0x3c0] sm:$0xff]  ;;  %v7839_v9 = vcombine.low %v108_v58, %v112_v59 }
  0x6f   :  { %v7954_v11 = vcombine.high %v225_v62, %v229_v63  ;;  %v177_v47 = vld [vmem:[#allocation5 + $0x240] sm:$0xff] }
  0x71   :  { %1135 = vmatpush1.bf16.msra.mxu0 %v7833_v4  ;;  %1178 = vmatpush1.bf16.msra.mxu1 %v7835_v5  ;;  %v357_v4 = vld [vmem:[#allocation5 + $0x7e0] sm:$0xff]  ;;  %v7840_v5 = vcombine.high %v108_v58, %v112_v59 }
  0x72   :  { %1206 = vmatprep.subr.bf16.mxu0 %v7894_v6  ;;  %1249 = vmatprep.subr.bf16.mxu1 %v7896_v7  ;;  %v7837_v6 = vcombine.low %v107_v54, %v111_v55  ;;  %v217_v7 = vld [vmem:[#allocation5 + $0x380] sm:$0xff]  ;;  %v8081_v18 = vcombine.low %v353_v3, %v357_v4 }
  0x73   :  { %v7946_v19 = vcombine.high %v217_v7, %v221_v8  ;;  %v169_v55 = vld [vmem:[#allocation5 + $0x200] sm:$0xff] }
  0x74   :  { %1153 = vmatmul.mubr.bf16.vlgmr.msra.gmra.mxu0 %v9592_v10  ;;  %1196 = vmatmul.mubr.bf16.vlgmr.msra.gmra.mxu1 %v9592_v10  ;;  %v297_v59 = vld [vmem:[#allocation5 + $0x600] sm:$0xff] }
  0x75   :  { %1207 = vmatpush1.bf16.msra.mxu0 %v7893_v13  ;;  %1250 = vmatpush1.bf16.msra.mxu1 %v7895_v14  ;;  %v349_v13 = vld [vmem:[#allocation5 + $0x7a0] sm:$0xff]  ;;  %v8082_v14 = vcombine.high %v353_v3, %v357_v4 }
  0x76   :  { %1208 = vmatprep.subr.bf16.mxu0 %v7886_v15  ;;  %1251 = vmatprep.subr.bf16.mxu1 %v7888_v16  ;;  %v7953_v15 = vcombine.low %v225_v62, %v229_v63  ;;  %v209_v16 = vld [vmem:[#allocation5 + $0x340] sm:$0xff]  ;;  %v8073_v26 = vcombine.low %v345_v12, %v349_v13 }
  0x77   :  { %1238 = vmatprep.mubr.bf16.mxu0 %v9526_v0  ;;  %1281 = vmatprep.mubr.bf16.mxu1 %v9526_v0  ;;  %v7938_v27 = vcombine.high %v209_v16, %v213_v17  ;;  %v7937_v31 = vcombine.low %v209_v16, %v213_v17  ;;  %v289_v63 = vld [vmem:[#allocation5 + $0x5c0] sm:$0xff] }
  0x78   :  { %v417_v4 = vld [vmem:[#allocation5 + $0x9c0] sm:$0xff] }
  0x79   :  { %1209 = vmatpush1.bf16.msra.mxu0 %v7885_v21  ;;  %1252 = vmatpush1.bf16.msra.mxu1 %v7887_v22  ;;  %v341_v21 = vld [vmem:[#allocation5 + $0x760] sm:$0xff]  ;;  %v8074_v22 = vcombine.high %v345_v12, %v349_v13 }
  0x7a   :  { %1210 = vmatprep.subr.bf16.mxu0 %v7878_v23  ;;  %1253 = vmatprep.subr.bf16.mxu1 %v7880_v24  ;;  %v7945_v23 = vcombine.low %v217_v7, %v221_v8  ;;  %v201_v24 = vld [vmem:[#allocation5 + $0x300] sm:$0xff]  ;;  %v8066_v30 = vcombine.high %v337_v20, %v341_v21  ;;  %v8065_v34 = vcombine.low %v337_v20, %v341_v21 }
  0x7b   :  { %v7929_v38 = vcombine.low %v201_v24, %v205_v25  ;;  %v281_v8 = vld [vmem:[#allocation5 + $0x580] sm:$0xff] }
  0x7c   :  { %v409_v13 = vld [vmem:[#allocation5 + $0x980] sm:$0xff] }
  0x7d   :  { %1211 = vmatpush1.bf16.msra.mxu0 %v7877_v29  ;;  %1254 = vmatpush1.bf16.msra.mxu1 %v7879_v32  ;;  %v333_v29 = vld [vmem:[#allocation5 + $0x720] sm:$0xff] }
  0x7e   :  { %1212 = vmatprep.subr.bf16.mxu0 %v7870_v33  ;;  %1255 = vmatprep.subr.bf16.mxu1 %v7872_v36  ;;  %v193_v32 = vld [vmem:[#allocation5 + $0x2c0] sm:$0xff] }
  0x7f   :  { %v197_v33 = vld [vmem:[#allocation5 + $0x2e0] sm:$0xff] }
  0x80   :  { %v325_v36 = vld [vmem:[#allocation5 + $0x6e0] sm:$0xff]  ;;  %v7922_v42 = vcombine.high %v193_v32, %v197_v33  ;;  %v7921_v46 = vcombine.low %v193_v32, %v197_v33 }
  0x81   :  { %1213 = vmatpush1.bf16.msra.mxu0 %v7869_v37  ;;  %1256 = vmatpush1.bf16.msra.mxu1 %v7871_v40  ;;  %v8058_v37 = vcombine.high %v329_v28, %v333_v29  ;;  %v189_v40 = vld [vmem:[#allocation5 + $0x2a0] sm:$0xff] }
  0x82   :  { %1214 = vmatprep.subr.bf16.mxu0 %v7862_v41  ;;  %1257 = vmatprep.subr.bf16.mxu1 %v7864_v44  ;;  %v8057_v41 = vcombine.low %v329_v28, %v333_v29  ;;  %v317_v44 = vld [vmem:[#allocation5 + $0x6a0] sm:$0xff]  ;;  %v7914_v50 = vcombine.high %v185_v39, %v189_v40  ;;  %v7913_v54 = vcombine.low %v185_v39, %v189_v40 }
  0x83   :  { %v273_v20 = vld [vmem:[#allocation5 + $0x540] sm:$0xff] }
  0x84   :  { %v277_v21 = vld [vmem:[#allocation5 + $0x560] sm:$0xff] }
  0x85   :  { %1215 = vmatpush1.bf16.msra.mxu0 %v7861_v45  ;;  %1258 = vmatpush1.bf16.msra.mxu1 %v7863_v48  ;;  %v8050_v45 = vcombine.high %v321_v35, %v325_v36  ;;  %v181_v48 = vld [vmem:[#allocation5 + $0x260] sm:$0xff]  ;;  %v8001_v32 = vcombine.low %v273_v20, %v277_v21 }
  0x86   :  { %1216 = vmatprep.subr.bf16.mxu0 %v7854_v49  ;;  %1259 = vmatprep.subr.bf16.mxu1 %v7856_v52  ;;  %v8049_v49 = vcombine.low %v321_v35, %v325_v36  ;;  %v309_v52 = vld [vmem:[#allocation5 + $0x660] sm:$0xff]  ;;  %v7906_v58 = vcombine.high %v177_v47, %v181_v48  ;;  %v7905_v62 = vcombine.low %v177_v47, %v181_v48 }
  0x87   :  { %v265_v28 = vld [vmem:[#allocation5 + $0x500] sm:$0xff] }
  0x88   :  { %v269_v29 = vld [vmem:[#allocation5 + $0x520] sm:$0xff] }
  0x89   :  { %1217 = vmatpush1.bf16.msra.mxu0 %v7853_v53  ;;  %1260 = vmatpush1.bf16.msra.mxu1 %v7855_v56  ;;  %v8042_v53 = vcombine.high %v313_v43, %v317_v44  ;;  %v173_v56 = vld [vmem:[#allocation5 + $0x220] sm:$0xff]  ;;  %v7993_v39 = vcombine.low %v265_v28, %v269_v29 }
  0x8a   :  { %1218 = vmatprep.subr.bf16.mxu0 %v7846_v57  ;;  %1261 = vmatprep.subr.bf16.mxu1 %v7848_v60  ;;  %v8041_v57 = vcombine.low %v313_v43, %v317_v44  ;;  %v301_v60 = vld [vmem:[#allocation5 + $0x620] sm:$0xff]  ;;  %v7898_v3 = vcombine.high %v169_v55, %v173_v56  ;;  %v7897_v7 = vcombine.low %v169_v55, %v173_v56 }
  0x8b   :  { %v257_v35 = vld [vmem:[#allocation5 + $0x4c0] sm:$0xff] }
  0x8c   :  { %v261_v36 = vld [vmem:[#allocation5 + $0x4e0] sm:$0xff] }
  0x8d   :  { %1219 = vmatpush1.bf16.msra.mxu0 %v7845_v61  ;;  %1262 = vmatpush1.bf16.msra.mxu1 %v7847_v1  ;;  %v8034_v61 = vcombine.high %v305_v51, %v309_v52  ;;  %v293_v1 = vld [vmem:[#allocation5 + $0x5e0] sm:$0xff]  ;;  %v7986_v43 = vcombine.high %v257_v35, %v261_v36 }
  0x8e   :  { %1220 = vmatprep.subr.bf16.mxu0 %v7838_v2  ;;  %1263 = vmatprep.subr.bf16.mxu1 %v7840_v5  ;;  %v8033_v2 = vcombine.low %v305_v51, %v309_v52  ;;  %v421_v5 = vld [vmem:[#allocation5 + $0x9e0] sm:$0xff]  ;;  %v8018_v12 = vcombine.high %v289_v63, %v293_v1  ;;  %v8017_v16 = vcombine.low %v289_v63, %v293_v1 }
  0x8f   :  { %v8145_v17 = vcombine.low %v417_v4, %v421_v5  ;;  %v249_v40 = vld [vmem:[#allocation5 + $0x480] sm:$0xff]  ;;  %v7985_v51 = vcombine.low %v257_v35, %v261_v36 }
  0x90   :  { %v377_v44 = vld [vmem:[#allocation5 + $0x880] sm:$0xff] }
  0x91   :  { %1221 = vmatpush1.bf16.msra.mxu0 %v7837_v6  ;;  %1264 = vmatpush1.bf16.msra.mxu1 %v7839_v9  ;;  %v8026_v6 = vcombine.high %v297_v59, %v301_v60  ;;  %v285_v9 = vld [vmem:[#allocation5 + $0x5a0] sm:$0xff] }
  0x92   :  { %3917 = vmatprep.subr.bf16.mxu0 %v7954_v11  ;;  %3960 = vmatprep.subr.bf16.mxu1 %v8082_v14  ;;  %v8025_v11 = vcombine.low %v297_v59, %v301_v60  ;;  %v413_v14 = vld [vmem:[#allocation5 + $0x9a0] sm:$0xff] }
  0x93   :  { %v9600_v47 = vld [vmem:[#allocation5 + $0xbc0] sm:$0xff] }
  0x94   :  { %1239 = vmatmul.mubr.bf16.vlgmr.msra.gmra.mxu0 %v9592_v10  ;;  %1282 = vmatmul.mubr.bf16.vlgmr.msra.gmra.mxu1 %v9592_v10  ;;  %v7930_v10 = vcombine.high %v201_v24, %v205_v25  ;;  %v8009_v24 = vcombine.low %v281_v8, %v285_v9  ;;  %v8137_v25 = vcombine.low %v409_v13, %v413_v14  ;;  %v9602_v48 = vld [vmem:[#allocation5 + $0xbe0] sm:$0xff] }
  0x95   :  { %3918 = vmatpush1.bf16.msra.mxu0 %v7953_v15  ;;  %3961 = vmatpush1.bf16.msra.mxu1 %v8081_v18  ;;  %v8146_v15 = vcombine.high %v417_v4, %v421_v5  ;;  %v8010_v18 = vcombine.high %v281_v8, %v285_v9  ;;  %v241_v52 = vld [vmem:[#allocation5 + $0x440] sm:$0xff] }
  0x96   :  { %3919 = vmatprep.subr.bf16.mxu0 %v7946_v19  ;;  %3962 = vmatprep.subr.bf16.mxu1 %v8074_v22  ;;  %v8138_v19 = vcombine.high %v409_v13, %v413_v14  ;;  %v401_v22 = vld [vmem:[#allocation5 + $0x940] sm:$0xff]  ;;  %v8210_v13 = vcombine.high %v9600_v47, %v9602_v48 }
  0x97   :  { %v369_v59 = vld [vmem:[#allocation5 + $0x840] sm:$0xff] }
  0x98   :  { %v373_v60 = vld [vmem:[#allocation5 + $0x860] sm:$0xff] }
  0x99   :  { %3920 = vmatpush1.bf16.msra.mxu0 %v7945_v23  ;;  %3963 = vmatpush1.bf16.msra.mxu1 %v8073_v26  ;;  %v405_v23 = vld [vmem:[#allocation5 + $0x960] sm:$0xff]  ;;  %v8002_v26 = vcombine.high %v273_v20, %v277_v21 }
  0x9a   :  { %3921 = vmatprep.subr.bf16.mxu0 %v7938_v27  ;;  %3964 = vmatprep.subr.bf16.mxu1 %v8066_v30  ;;  %v8130_v27 = vcombine.high %v401_v22, %v405_v23  ;;  %v393_v30 = vld [vmem:[#allocation5 + $0x900] sm:$0xff]  ;;  %v8129_v33 = vcombine.low %v401_v22, %v405_v23 }
  0x9b   :  { %v237_v63 = vld [vmem:[#allocation5 + $0x420] sm:$0xff] }
  0x9c   :  { %v361_v4 = vld [vmem:[#allocation5 + $0x800] sm:$0xff] }
  0x9d   :  { %3922 = vmatpush1.bf16.msra.mxu0 %v7937_v31  ;;  %3965 = vmatpush1.bf16.msra.mxu1 %v8065_v34  ;;  %v397_v31 = vld [vmem:[#allocation5 + $0x920] sm:$0xff]  ;;  %v7994_v34 = vcombine.high %v265_v28, %v269_v29 }
  0x9e   :  { %3923 = vmatprep.subr.bf16.mxu0 %v7930_v10  ;;  %3966 = vmatprep.subr.bf16.mxu1 %v8058_v37  ;;  %v8122_v10 = vcombine.high %v393_v30, %v397_v31  ;;  %v385_v37 = vld [vmem:[#allocation5 + $0x8c0] sm:$0xff] }
  0x9f   :  { %v365_v5 = vld [vmem:[#allocation5 + $0x820] sm:$0xff] }
  0xa0   :  { %v8090_v9 = vcombine.high %v361_v4, %v365_v5  ;;  %v9627_v20 = vld [vmem:[#allocation11] sm:$0xff] }
  0xa1   :  { %3924 = vmatpush1.bf16.msra.mxu0 %v7929_v38  ;;  %3967 = vmatpush1.bf16.msra.mxu1 %v8057_v41  ;;  %v389_v38 = vld [vmem:[#allocation5 + $0x8e0] sm:$0xff] }
  0xa2   :  { %3925 = vmatprep.subr.bf16.mxu0 %v7922_v42  ;;  %3968 = vmatprep.subr.bf16.mxu1 %v8050_v45  ;;  %v253_v41 = vld [vmem:[#allocation5 + $0x4a0] sm:$0xff]  ;;  %v8121_v42 = vcombine.low %v393_v30, %v397_v31  ;;  %v8113_v56 = vcombine.low %v385_v37, %v389_v38 }
  0xa3   :  { %v381_v45 = vld [vmem:[#allocation5 + $0x8a0] sm:$0xff] }
  0xa4   :  { %v8105_v1 = vcombine.low %v377_v44, %v381_v45 }
  0xa5   :  { %3926 = vmatpush1.bf16.msra.mxu0 %v7921_v46  ;;  %3969 = vmatpush1.bf16.msra.mxu1 %v8049_v49  ;;  %v8114_v46 = vcombine.high %v385_v37, %v389_v38  ;;  %v9604_v49 = vld [vmem:[#allocation5 + $0xfc0] sm:$0xff] }
  0xa6   :  { %3927 = vmatprep.subr.bf16.mxu0 %v7914_v50  ;;  %3970 = vmatprep.subr.bf16.mxu1 %v8042_v53  ;;  %v9606_v50 = vld [vmem:[#allocation5 + $0xfe0] sm:$0xff] }
  0xa7   :  { %v245_v53 = vld [vmem:[#allocation5 + $0x460] sm:$0xff]  ;;  %v8337_v55 = vcombine.low %v9604_v49, %v9606_v50  ;;  %v8338_v14 = vcombine.high %v9604_v49, %v9606_v50 }
  0xa8   :  { %v453_v49 = vld [vmem:[#allocation5 + $0xae0] sm:$0xff] }
  0xa9   :  { %3928 = vmatpush1.bf16.msra.mxu0 %v7913_v54  ;;  %3971 = vmatpush1.bf16.msra.mxu1 %v8041_v57  ;;  %v8209_v54 = vcombine.low %v9600_v47, %v9602_v48  ;;  %v7978_v57 = vcombine.high %v249_v40, %v253_v41  ;;  %v577_v50 = vld [vmem:[#allocation5 + $0xec0] sm:$0xff] }
  0xaa   :  { %3929 = vmatprep.subr.bf16.mxu0 %v7906_v58  ;;  %3972 = vmatprep.subr.bf16.mxu1 %v8034_v61  ;;  %v8106_v58 = vcombine.high %v377_v44, %v381_v45  ;;  %v7977_v61 = vcombine.low %v249_v40, %v253_v41  ;;  %v473_v45 = vld [vmem:[#allocation5 + $0xb80] sm:$0xff] }
  0xad   :  { %3930 = vmatpush1.bf16.msra.mxu0 %v7905_v62  ;;  %3973 = vmatpush1.bf16.msra.mxu1 %v8033_v2  ;;  %v233_v62 = vld [vmem:[#allocation5 + $0x400] sm:$0xff]  ;;  %v7970_v2 = vcombine.high %v241_v52, %v245_v53 }
  0xae   :  { %3931 = vmatprep.subr.bf16.mxu0 %v7898_v3  ;;  %3974 = vmatprep.subr.bf16.mxu1 %v8026_v6  ;;  %v8098_v3 = vcombine.high %v369_v59, %v373_v60  ;;  %v7969_v6 = vcombine.low %v241_v52, %v245_v53  ;;  %v7962_v8 = vcombine.high %v233_v62, %v237_v63 }
  0xb1   :  { %3932 = vmatpush1.bf16.msra.mxu0 %v7897_v7  ;;  %3975 = vmatpush1.bf16.msra.mxu1 %v8025_v11  ;;  %v8097_v7 = vcombine.low %v369_v59, %v373_v60  ;;  %v7961_v11 = vcombine.low %v233_v62, %v237_v63 }
  0xb2   :  { %3933 = vmatprep.subr.bf16.mxu0 %v8018_v12  ;;  %3976 = vmatprep.subr.bf16.mxu1 %v8146_v15  ;;  %v8089_v12 = vcombine.low %v361_v4, %v365_v5  ;;  %v754_v15 = vlaneseq  ;;  %v593_v4 = vld [vmem:[#allocation5 + $0xf40] sm:$0xff] }
  0xb3   :  { %v597_v5 = vld [vmem:[#allocation5 + $0xf60] sm:$0xff] }
  0xb4   :  { %v8321_v47 = vcombine.low %v593_v4, %v597_v5 }
  0xb5   :  { %3934 = vmatpush2.bf16.msra.mxu0 %v8017_v16  ;;  %3977 = vmatpush2.bf16.msra.mxu1 %v8145_v17  ;;  %v9616_v16 = vshrl.u32 %v754_v15, 7 }
  0xb6   :  { %3935 = vmatprep.subr.bf16.mxu0 %v8010_v18  ;;  %3978 = vmatprep.subr.bf16.mxu1 %v8138_v19 }
  0xb7   :  { %v9619_v17 = vsub.s32 1, %v9616_v16  ;;  %v9622_v18 = vsub.s32 0, %v9616_v16  ;;  %v9625_v19 = vsub.s32 3, %v9616_v16  ;;  %v9630_v21 = vsub.s32 2, %v9616_v16 }
  0xb9   :  { %3936 = vmatpush2.bf16.msra.mxu0 %v8009_v24  ;;  %3979 = vmatpush2.bf16.msra.mxu1 %v8137_v25  ;;  %v761_v24 = vrot.slane %v9627_v20, %v9619_v17  ;;  %v757_v25 = vrot.slane %v9627_v20, %v9622_v18  ;;  %v765_v28 = vrot.slane %v9627_v20, %v9630_v21 }
  0xba   :  { %3937 = vmatprep.subr.bf16.mxu0 %v8002_v26  ;;  %3980 = vmatprep.subr.bf16.mxu1 %v8130_v27  ;;  %v769_v27 = vrot.slane %v9627_v20, %v9625_v19 }
  0xbd   :  { %3938 = vmatpush2.bf16.msra.mxu0 %v8001_v32  ;;  %3981 = vmatpush2.bf16.msra.mxu1 %v8129_v33 }
  0xbe   :  { %3939 = vmatprep.subr.bf16.mxu0 %v7994_v34  ;;  %3982 = vmatprep.subr.bf16.mxu1 %v8122_v10 }
  0xc1   :  { %3940 = vmatpush2.bf16.msra.mxu0 %v7993_v39  ;;  %3983 = vmatpush2.bf16.msra.mxu1 %v8121_v42 }
  0xc2   :  { %3941 = vmatprep.subr.bf16.mxu0 %v7986_v43  ;;  %3984 = vmatprep.subr.bf16.mxu1 %v8114_v46  ;;  %v477_v46 = vld [vmem:[#allocation5 + $0xba0] sm:$0xff] }
  0xc3   :  { %v8202_v62 = vcombine.high %v473_v45, %v477_v46 }
  0xc5   :  { %3942 = vmatpush2.bf16.msra.mxu0 %v7985_v51  ;;  %3985 = vmatpush2.bf16.msra.mxu1 %v8113_v56  ;;  %v601_v56 = vld [vmem:[#allocation5 + $0xf80] sm:$0xff] }
  0xc6   :  { %3943 = vmatprep.subr.bf16.mxu0 %v7978_v57  ;;  %3986 = vmatprep.subr.bf16.mxu1 %v8106_v58  ;;  %v605_v57 = vld [vmem:[#allocation5 + $0xfa0] sm:$0xff] }
  0xc9   :  { %3944 = vmatpush2.bf16.msra.mxu0 %v7977_v61  ;;  %3987 = vmatpush2.bf16.msra.mxu1 %v8105_v1  ;;  %v8330_v1 = vcombine.high %v601_v56, %v605_v57 }
  0xca   :  { %3945 = vmatprep.subr.bf16.mxu0 %v7970_v2  ;;  %3988 = vmatprep.subr.bf16.mxu1 %v8098_v3  ;;  %v465_v2 = vld [vmem:[#allocation5 + $0xb40] sm:$0xff] }
  0xcb   :  { %v469_v3 = vld [vmem:[#allocation5 + $0xb60] sm:$0xff] }
  0xcc   :  { %v8193_v15 = vcombine.low %v465_v2, %v469_v3 }
  0xcd   :  { %3946 = vmatpush2.bf16.msra.mxu0 %v7969_v6  ;;  %3989 = vmatpush2.bf16.msra.mxu1 %v8097_v7  ;;  %v8201_v6 = vcombine.low %v473_v45, %v477_v46  ;;  %v8329_v7 = vcombine.low %v601_v56, %v605_v57  ;;  %v553_v56 = vld [vmem:[#allocation5 + $0xe00] sm:$0xff] }
  0xce   :  { %3947 = vmatprep.subr.bf16.mxu0 %v7962_v8  ;;  %3990 = vmatprep.subr.bf16.mxu1 %v8090_v9  ;;  %v8194_v8 = vcombine.high %v465_v2, %v469_v3  ;;  %v8322_v9 = vcombine.high %v593_v4, %v597_v5  ;;  %v557_v57 = vld [vmem:[#allocation5 + $0xe20] sm:$0xff] }
  0xd1   :  { %3948 = vmatpush2.bf16.msra.mxu0 %v7961_v11  ;;  %3991 = vmatpush2.bf16.msra.mxu1 %v8089_v12  ;;  %v457_v11 = vld [vmem:[#allocation5 + $0xb00] sm:$0xff] }
  0xd2   :  { %4003 = vmatprep.subr.bf16.mxu0 %v8210_v13  ;;  %4046 = vmatprep.subr.bf16.mxu1 %v8338_v14  ;;  %v461_v12 = vld [vmem:[#allocation5 + $0xb20] sm:$0xff] }
  0xd3   :  { %v585_v13 = vld [vmem:[#allocation5 + $0xf00] sm:$0xff]  ;;  %v8186_v48 = vcombine.high %v457_v11, %v461_v12 }
  0xd4   :  { %v589_v14 = vld [vmem:[#allocation5 + $0xf20] sm:$0xff] }
 0x134   :  { %v1154_v22 = vpop.f32.mrf.mxu0  ;;  %v1197_v23 = vpop.f32.mrf.mxu1 }
 0x135   :  { %v1155_v34 = vadd.f32 %v1154_v22, %v757_v25  ;;  %v1198_v37 = vadd.f32 %v1197_v23, %v765_v28  ;;  %v449_v22 = vld [vmem:[#allocation5 + $0xac0] sm:$0xff]  ;;  %v8185_v23 = vcombine.low %v457_v11, %v461_v12 }
 0x136   :  { %v1156_v26 = vpop.f32.mrf.mxu0  ;;  %v1199_v29 = vpop.f32.mrf.mxu1  ;;  %v673_v12 = vld [vmem:[#allocation5 + $0x11c0] sm:$0xff] }
 0x137   :  { %v1157_v31 = vadd.f32 %v1156_v26, %v761_v24  ;;  %v1200_v10 = vadd.f32 %v1199_v29, %v769_v27  ;;  %v1292_v51 = vmax.f32 %v1155_v34, 0.0  ;;  %v1294_v58 = vmax.f32 %v1198_v37, 0.0  ;;  %v569_v29 = vld [vmem:[#allocation5 + $0xe80] sm:$0xff] }
 0x138   :  { %v1158_v30 = vpop.f32.mrf.mxu0  ;;  %v1201_v33 = vpop.f32.mrf.mxu1  ;;  %v437_v37 = vld [vmem:[#allocation5 + $0xa60] sm:$0xff] }
 0x139   :  { %v1159_v32 = vadd.f32 %v1158_v30, %v757_v25  ;;  %v1202_v35 = vadd.f32 %v1201_v33, %v765_v28  ;;  %v1293_v42 = vmax.f32 %v1157_v31, 0.0  ;;  %v1295_v52 = vmax.f32 %v1200_v10, 0.0  ;;  %v445_v28 = vld [vmem:[#allocation5 + $0xaa0] sm:$0xff] }
 0x13a   :  { %v1160_v36 = vpop.f32.mrf.mxu0  ;;  %v1203_v39 = vpop.f32.mrf.mxu1  ;;  %v8178_v25 = vcombine.high %v449_v22, %v453_v49  ;;  %v573_v30 = vld [vmem:[#allocation5 + $0xea0] sm:$0xff]  ;;  %v8177_v31 = vcombine.low %v449_v22, %v453_v49  ;;  %v9662_v10 = vsub.s32 7, %v9616_v16  ;;  %v8281_v22 = vcombine.low %v553_v56, %v557_v57 }
 0x13b   :  { %v1161_v38 = vadd.f32 %v1160_v36, %v761_v24  ;;  %v1300_v40 = vmax.f32 %v1159_v32, 0.0  ;;  %v1204_v41 = vadd.f32 %v1203_v39, %v769_v27  ;;  %v1302_v43 = vmax.f32 %v1202_v35, 0.0  ;;  %v441_v27 = vld [vmem:[#allocation5 + $0xa80] sm:$0xff] }
 0x13c   :  { %v8313_v24 = vcombine.low %v585_v13, %v589_v14  ;;  %v9659_v32 = vsub.s32 5, %v9616_v16  ;;  %v8170_v34 = vcombine.high %v441_v27, %v445_v28  ;;  %v8298_v35 = vcombine.high %v569_v29, %v573_v30  ;;  %v433_v36 = vld [vmem:[#allocation5 + $0xa40] sm:$0xff] }
 0x13d   :  { %v1301_v44 = vmax.f32 %v1161_v38, 0.0  ;;  %v1303_v53 = vmax.f32 %v1204_v41, 0.0  ;;  %v9642_v60 = vpack.c.bf16 %v1300_v40, %v1292_v51  ;;  %v9646_v63 = vpack.c.bf16 %v1302_v43, %v1294_v58  ;;  %v561_v38 = vld [vmem:[#allocation5 + $0xe40] sm:$0xff] }
 0x13e   :  { %v565_v39 = vld [vmem:[#allocation5 + $0xe60] sm:$0xff]  ;;  %v8169_v40 = vcombine.low %v441_v27, %v445_v28  ;;  %v777_v41 = vrot.slane %v9627_v20, %v9659_v32  ;;  %v8162_v43 = vcombine.high %v433_v36, %v437_v37  ;;  %v785_v45 = vrot.slane %v9627_v20, %v9662_v10 }
 0x13f   :  { %v9640_v59 = vpack.c.bf16 %v1301_v44, %v1293_v42  ;;  %v9644_v61 = vpack.c.bf16 %v1303_v53, %v1295_v52  ;;  %v8297_v42 = vcombine.low %v569_v29, %v573_v30  ;;  %v8290_v46 = vcombine.high %v561_v38, %v565_v39  ;;  %v425_v51 = vld [vmem:[#allocation5 + $0xa00] sm:$0xff] }
 0x140   :  { %v429_v52 = vld [vmem:[#allocation5 + $0xa20] sm:$0xff]  ;;  %v8289_v3 = vcombine.low %v561_v38, %v565_v39 }
 0x141   :  { %3949 = vmatprep.mubr.bf16.mxu0 %v9640_v59  ;;  %3992 = vmatprep.mubr.bf16.mxu1 %v9644_v61  ;;  %v8154_v4 = vcombine.high %v425_v51, %v429_v52  ;;  %v665_v27 = vld [vmem:[#allocation5 + $0x1180] sm:$0xff] }
 0x142   :  { %3950 = vmatmul.mubr.bf16.vlgmr.msra.gmra.mxu0 %v9642_v60  ;;  %3993 = vmatmul.mubr.bf16.vlgmr.msra.gmra.mxu1 %v9646_v63  ;;  %v669_v28 = vld [vmem:[#allocation5 + $0x11a0] sm:$0xff] }
 0x143   :  { %4004 = vmatpush1.bf16.msra.mxu0 %v8209_v54  ;;  %4047 = vmatpush1.bf16.msra.mxu1 %v8337_v55  ;;  %v8314_v54 = vcombine.high %v585_v13, %v589_v14  ;;  %v581_v55 = vld [vmem:[#allocation5 + $0xee0] sm:$0xff] }
 0x144   :  { %4005 = vmatprep.subr.bf16.mxu0 %v8202_v62  ;;  %4048 = vmatprep.subr.bf16.mxu1 %v8330_v1  ;;  %v8306_v26 = vcombine.high %v577_v50, %v581_v55  ;;  %v8305_v33 = vcombine.low %v577_v50, %v581_v55  ;;  %v8161_v62 = vcombine.low %v433_v36, %v437_v37  ;;  %v677_v13 = vld [vmem:[#allocation5 + $0x11e0] sm:$0xff] }
 0x145   :  { %v8394_v36 = vcombine.high %v665_v27, %v669_v28  ;;  %v529_v37 = vld [vmem:[#allocation5 + $0xd40] sm:$0xff] }
 0x146   :  { %v533_v38 = vld [vmem:[#allocation5 + $0xd60] sm:$0xff] }
 0x147   :  { %4006 = vmatpush1.bf16.msra.mxu0 %v8201_v6  ;;  %4049 = vmatpush1.bf16.msra.mxu1 %v8329_v7  ;;  %v8282_v7 = vcombine.high %v553_v56, %v557_v57  ;;  %v657_v39 = vld [vmem:[#allocation5 + $0x1140] sm:$0xff]  ;;  %v8257_v57 = vcombine.low %v529_v37, %v533_v38 }
 0x148   :  { %4007 = vmatprep.subr.bf16.mxu0 %v8194_v8  ;;  %4050 = vmatprep.subr.bf16.mxu1 %v8322_v9  ;;  %v545_v8 = vld [vmem:[#allocation5 + $0xdc0] sm:$0xff] }
 0x149   :  { %v549_v9 = vld [vmem:[#allocation5 + $0xde0] sm:$0xff] }
 0x14a   :  { %v8274_v49 = vcombine.high %v545_v8, %v549_v9  ;;  %v8273_v30 = vcombine.low %v545_v8, %v549_v9  ;;  %v653_v56 = vld [vmem:[#allocation5 + $0x1120] sm:$0xff] }
 0x14b   :  { %4008 = vmatpush1.bf16.msra.mxu0 %v8193_v15  ;;  %4051 = vmatpush1.bf16.msra.mxu1 %v8321_v47  ;;  %v8153_v15 = vcombine.low %v425_v51, %v429_v52  ;;  %v525_v51 = vld [vmem:[#allocation5 + $0xd20] sm:$0xff] }
 0x14c   :  { %4009 = vmatprep.subr.bf16.mxu0 %v8186_v48  ;;  %4052 = vmatprep.subr.bf16.mxu1 %v8314_v54  ;;  %v649_v52 = vld [vmem:[#allocation5 + $0x1100] sm:$0xff] }
 0x14d   :  { %v8377_v8 = vcombine.low %v649_v52, %v653_v56 }
 0x14f   :  { %4010 = vmatpush1.bf16.msra.mxu0 %v8185_v23  ;;  %4053 = vmatpush1.bf16.msra.mxu1 %v8313_v24  ;;  %v8402_v23 = vcombine.high %v673_v12, %v677_v13  ;;  %v537_v24 = vld [vmem:[#allocation5 + $0xd80] sm:$0xff] }
 0x150   :  { %4011 = vmatprep.subr.bf16.mxu0 %v8178_v25  ;;  %4054 = vmatprep.subr.bf16.mxu1 %v8306_v26  ;;  %v541_v25 = vld [vmem:[#allocation5 + $0xda0] sm:$0xff] }
 0x153   :  { %4012 = vmatpush1.bf16.msra.mxu0 %v8177_v31  ;;  %4055 = vmatpush1.bf16.msra.mxu1 %v8305_v33  ;;  %v8401_v33 = vcombine.low %v673_v12, %v677_v13  ;;  %v505_v13 = vld [vmem:[#allocation5 + $0xc80] sm:$0xff] }
 0x154   :  { %4013 = vmatprep.subr.bf16.mxu0 %v8170_v34  ;;  %v9666_v44 = vpop.f32.mrf.mxu0  ;;  %4056 = vmatprep.subr.bf16.mxu1 %v8298_v35  ;;  %v9670_v53 = vpop.f32.mrf.mxu1  ;;  %v8266_v34 = vcombine.high %v537_v24, %v541_v25 }
 0x156   :  { %v1242_v58 = vpop.f32.mrf.mxu0  ;;  %v1285_v2 = vpop.f32.mrf.mxu1 }
 0x157   :  { %4014 = vmatpush1.bf16.msra.mxu0 %v8169_v40  ;;  %v1243_v1 = vadd.f32 %v1242_v58, %v777_v41  ;;  %4057 = vmatpush1.bf16.msra.mxu1 %v8297_v42  ;;  %v1286_v6 = vadd.f32 %v1285_v2, %v785_v45  ;;  %v661_v40 = vld [vmem:[#allocation5 + $0x1160] sm:$0xff]  ;;  %v8393_v42 = vcombine.low %v665_v27, %v669_v28 }
 0x158   :  { %4015 = vmatprep.subr.bf16.mxu0 %v8162_v43  ;;  %v9672_v5 = vpop.f32.mrf.mxu0  ;;  %4058 = vmatprep.subr.bf16.mxu1 %v8290_v46  ;;  %v9674_v11 = vpop.f32.mrf.mxu1  ;;  %v8258_v43 = vcombine.high %v529_v37, %v533_v38  ;;  %v521_v46 = vld [vmem:[#allocation5 + $0xd00] sm:$0xff]  ;;  %v8385_v58 = vcombine.low %v657_v39, %v661_v40 }
 0x159   :  { %v1297_v47 = vmax.f32 %v1243_v1, 0.0  ;;  %v1299_v50 = vmax.f32 %v1286_v6, 0.0  ;;  %v8378_v1 = vcombine.high %v649_v52, %v653_v56  ;;  %v513_v2 = vld [vmem:[#allocation5 + $0xcc0] sm:$0xff]  ;;  %v230_v52 = vld [vmem:[#allocation5 + $0x3e8] sm:$0xff] }
 0x15a   :  { %v1246_v14 = vpop.f32.mrf.mxu0  ;;  %v1289_v54 = vpop.f32.mrf.mxu1  ;;  %v645_v6 = vld [vmem:[#allocation5 + $0x10e0] sm:$0xff]  ;;  %v354_v56 = vld [vmem:[#allocation5 + $0x7c8] sm:$0xff] }
 0x15b   :  { %4016 = vmatpush1.bf16.msra.mxu0 %v8161_v62  ;;  %v1247_v48 = vadd.f32 %v1246_v14, %v777_v41  ;;  %4059 = vmatpush1.bf16.msra.mxu1 %v8289_v3  ;;  %v1290_v55 = vadd.f32 %v1289_v54, %v785_v45  ;;  %v8265_v41 = vcombine.low %v537_v24, %v541_v25  ;;  %v517_v3 = vld [vmem:[#allocation5 + $0xce0] sm:$0xff]  ;;  %v9683_v54 = vsub.s32 4, %v9616_v16 }
 0x15c   :  { %4017 = vmatprep.subr.bf16.mxu0 %v8154_v4  ;;  %4060 = vmatprep.subr.bf16.mxu1 %v8282_v7  ;;  %v8386_v45 = vcombine.high %v657_v39, %v661_v40  ;;  %v8250_v62 = vcombine.high %v521_v46, %v525_v51  ;;  %v641_v4 = vld [vmem:[#allocation5 + $0x10c0] sm:$0xff]  ;;  %v8249_v7 = vcombine.low %v521_v46, %v525_v51  ;;  %v226_v51 = vld [vmem:[#allocation5 + $0x3c8] sm:$0xff] }
 0x15d   :  { %v1305_v26 = vmax.f32 %v1247_v48, 0.0  ;;  %v1307_v29 = vmax.f32 %v1290_v55, 0.0  ;;  %v8242_v9 = vcombine.high %v513_v2, %v517_v3  ;;  %v8370_v12 = vcombine.high %v641_v4, %v645_v6  ;;  %v509_v14 = vld [vmem:[#allocation5 + $0xca0] sm:$0xff] }
 0x15e   :  { %v8241_v48 = vcombine.low %v513_v2, %v517_v3  ;;  %v501_v24 = vld [vmem:[#allocation5 + $0xc60] sm:$0xff]  ;;  %v8233_v27 = vcombine.low %v505_v13, %v509_v14  ;;  %v773_v28 = vrot.slane %v9627_v20, %v9683_v54 }
 0x15f   :  { %4018 = vmatpush1.bf16.msra.mxu0 %v8153_v15  ;;  %v9676_v31 = vpack.c.bf16 %v1305_v26, %v1297_v47  ;;  %4061 = vmatpush1.bf16.msra.mxu1 %v8281_v22  ;;  %v9678_v35 = vpack.c.bf16 %v1307_v29, %v1299_v50  ;;  %v633_v15 = vld [vmem:[#allocation5 + $0x1080] sm:$0xff]  ;;  %v8369_v22 = vcombine.low %v641_v4, %v645_v6  ;;  %v9686_v50 = vsub.s32 6, %v9616_v16  ;;  %v218_v4 = vld [vmem:[#allocation5 + $0x388] sm:$0xff] }
 0x160   :  { %4019 = vmatprep.subr.bf16.mxu0 %v8274_v49  ;;  %4062 = vmatprep.subr.bf16.mxu1 %v8402_v23  ;;  %v637_v47 = vld [vmem:[#allocation5 + $0x10a0] sm:$0xff]  ;;  %v8234_v49 = vcombine.high %v505_v13, %v509_v14  ;;  %v7955_v6 = vcombine.low %v226_v51, %v230_v52 }
 0x161   :  { %4035 = vmatprep.mubr.bf16.mxu0 %v9676_v31  ;;  %4078 = vmatprep.mubr.bf16.mxu1 %v9678_v35  ;;  %v8362_v55 = vcombine.high %v633_v15, %v637_v47  ;;  %v497_v23 = vld [vmem:[#allocation5 + $0xc40] sm:$0xff]  ;;  %v8361_v29 = vcombine.low %v633_v15, %v637_v47  ;;  %v210_v15 = vld [vmem:[#allocation5 + $0x348] sm:$0xff] }
 0x162   :  { %v625_v25 = vld [vmem:[#allocation5 + $0x1040] sm:$0xff]  ;;  %v8225_v39 = vcombine.low %v497_v23, %v501_v24  ;;  %v214_v47 = vld [vmem:[#allocation5 + $0x368] sm:$0xff] }
 0x163   :  { %4020 = vmatpush2.bf16.msra.mxu0 %v8273_v30  ;;  %4063 = vmatpush2.bf16.msra.mxu1 %v8401_v33  ;;  %v629_v26 = vld [vmem:[#allocation5 + $0x1060] sm:$0xff]  ;;  %v8226_v30 = vcombine.high %v497_v23, %v501_v24  ;;  %v781_v33 = vrot.slane %v9627_v20, %v9686_v50  ;;  %v7940_v24 = vcombine.high %v210_v15, %v214_v47 }
 0x164   :  { %4021 = vmatprep.subr.bf16.mxu0 %v8266_v34  ;;  %4064 = vmatprep.subr.bf16.mxu1 %v8394_v36  ;;  %v8354_v16 = vcombine.high %v625_v25, %v629_v26  ;;  %v489_v34 = vld [vmem:[#allocation5 + $0xc00] sm:$0xff]  ;;  %v8353_v40 = vcombine.low %v625_v25, %v629_v26  ;;  %v202_v26 = vld [vmem:[#allocation5 + $0x308] sm:$0xff] }
 0x165   :  { %v493_v36 = vld [vmem:[#allocation5 + $0xc20] sm:$0xff]  ;;  %v1288_v20 = vadd.f32 %v9674_v11, %v781_v33  ;;  %v222_v11 = vld [vmem:[#allocation5 + $0x3a8] sm:$0xff] }
 0x166   :  { %v617_v37 = vld [vmem:[#allocation5 + $0x1000] sm:$0xff]  ;;  %v7948_v14 = vcombine.high %v218_v4, %v222_v11 }
 0x167   :  { %4022 = vmatpush2.bf16.msra.mxu0 %v8265_v41  ;;  %4065 = vmatpush2.bf16.msra.mxu1 %v8393_v42  ;;  %v621_v38 = vld [vmem:[#allocation5 + $0x1020] sm:$0xff]  ;;  %v1241_v41 = vadd.f32 %v9666_v44, %v773_v28  ;;  %v1245_v42 = vadd.f32 %v9672_v5, %v773_v28  ;;  %v7956_v5 = vcombine.high %v226_v51, %v230_v52  ;;  %v1306_v3 = vmax.f32 %v1288_v20, 0.0  ;;  %v330_v28 = vld [vmem:[#allocation5 + $0x708] sm:$0xff] }
 0x168   :  { %4023 = vmatprep.subr.bf16.mxu0 %v8258_v43  ;;  %4066 = vmatprep.subr.bf16.mxu1 %v8386_v45  ;;  %v8218_v43 = vcombine.high %v489_v34, %v493_v36  ;;  %v1284_v45 = vadd.f32 %v9670_v53, %v781_v33  ;;  %v8346_v46 = vcombine.high %v617_v37, %v621_v38  ;;  %v190_v20 = vld [vmem:[#allocation5 + $0x2a8] sm:$0xff] }
 0x169   :  { %v8345_v44 = vcombine.low %v617_v37, %v621_v38  ;;  %v198_v37 = vld [vmem:[#allocation5 + $0x2e8] sm:$0xff] }
 0x16a   :  { %v1298_v2 = vmax.f32 %v1284_v45, 0.0  ;;  %v322_v38 = vld [vmem:[#allocation5 + $0x6c8] sm:$0xff] }
 0x16b   :  { %4024 = vmatpush2.bf16.msra.mxu0 %v8257_v57  ;;  %4067 = vmatpush2.bf16.msra.mxu1 %v8385_v58  ;;  %v358_v57 = vld [vmem:[#allocation5 + $0x7e8] sm:$0xff]  ;;  %v8217_v58 = vcombine.low %v489_v34, %v493_v36 }
 0x16c   :  { %4025 = vmatprep.subr.bf16.mxu0 %v8250_v62  ;;  %4068 = vmatprep.subr.bf16.mxu1 %v8378_v1  ;;  %v1296_v62 = vmax.f32 %v1241_v41, 0.0  ;;  %v1304_v1 = vmax.f32 %v1245_v42, 0.0  ;;  %v8084_v53 = vcombine.high %v354_v56, %v358_v57  ;;  %v9698_v13 = vpack.c.bf16 %v1306_v3, %v1298_v2  ;;  %v194_v36 = vld [vmem:[#allocation5 + $0x2c8] sm:$0xff] }
 0x16d   :  { %v7924_v42 = vcombine.high %v194_v36, %v198_v37  ;;  %v186_v45 = vld [vmem:[#allocation5 + $0x288] sm:$0xff]  ;;  %v7923_v52 = vcombine.low %v194_v36, %v198_v37 }
 0x16e   :  { %v318_v51 = vld [vmem:[#allocation5 + $0x6a8] sm:$0xff]  ;;  %v7915_v2 = vcombine.low %v186_v45, %v190_v20 }
 0x16f   :  { %4026 = vmatpush2.bf16.msra.mxu0 %v8249_v7  ;;  %4069 = vmatpush2.bf16.msra.mxu1 %v8377_v8  ;;  %v346_v7 = vld [vmem:[#allocation5 + $0x788] sm:$0xff] }
 0x170   :  { %4027 = vmatprep.subr.bf16.mxu0 %v8242_v9  ;;  %4070 = vmatprep.subr.bf16.mxu1 %v8370_v12  ;;  %v350_v8 = vld [vmem:[#allocation5 + $0x7a8] sm:$0xff]  ;;  %v9696_v9 = vpack.c.bf16 %v1304_v1, %v1296_v62  ;;  %v8083_v12 = vcombine.low %v354_v56, %v358_v57  ;;  %v7916_v57 = vcombine.high %v186_v45, %v190_v20 }
 0x171   :  { %v8075_v23 = vcombine.low %v346_v7, %v350_v8  ;;  %v178_v62 = vld [vmem:[#allocation5 + $0x248] sm:$0xff] }
 0x172   :  { %v182_v1 = vld [vmem:[#allocation5 + $0x268] sm:$0xff] }
 0x173   :  { %4028 = vmatpush2.bf16.msra.mxu0 %v8241_v48  ;;  %4071 = vmatpush2.bf16.msra.mxu1 %v8369_v22  ;;  %v8076_v48 = vcombine.high %v346_v7, %v350_v8  ;;  %v338_v22 = vld [vmem:[#allocation5 + $0x748] sm:$0xff] }
 0x174   :  { %4029 = vmatprep.subr.bf16.mxu0 %v8234_v49  ;;  %4072 = vmatprep.subr.bf16.mxu1 %v8362_v55  ;;  %v342_v49 = vld [vmem:[#allocation5 + $0x768] sm:$0xff]  ;;  %v7947_v55 = vcombine.low %v218_v4, %v222_v11 }
 0x175   :  { %v8068_v25 = vcombine.high %v338_v22, %v342_v49  ;;  %v8067_v33 = vcombine.low %v338_v22, %v342_v49  ;;  %v170_v11 = vld [vmem:[#allocation5 + $0x208] sm:$0xff] }
 0x176   :  { %v298_v7 = vld [vmem:[#allocation5 + $0x608] sm:$0xff] }
 0x177   :  { %4030 = vmatpush2.bf16.msra.mxu0 %v8233_v27  ;;  %4073 = vmatpush2.bf16.msra.mxu1 %v8361_v29  ;;  %v206_v27 = vld [vmem:[#allocation5 + $0x328] sm:$0xff] }
 0x178   :  { %4031 = vmatprep.subr.bf16.mxu0 %v8226_v30  ;;  %4074 = vmatprep.subr.bf16.mxu1 %v8354_v16  ;;  %v334_v29 = vld [vmem:[#allocation5 + $0x728] sm:$0xff]  ;;  %v7939_v30 = vcombine.low %v210_v15, %v214_v47  ;;  %v7932_v16 = vcombine.high %v202_v26, %v206_v27 }
 0x179   :  { %v8060_v34 = vcombine.high %v330_v28, %v334_v29  ;;  %v8059_v41 = vcombine.low %v330_v28, %v334_v29  ;;  %v302_v8 = vld [vmem:[#allocation5 + $0x628] sm:$0xff] }
 0x17a   :  { %v8028_v47 = vcombine.high %v298_v7, %v302_v8  ;;  %v294_v22 = vld [vmem:[#allocation5 + $0x5e8] sm:$0xff] }
 0x17b   :  { %4032 = vmatpush2.bf16.msra.mxu0 %v8225_v39  ;;  %4075 = vmatpush2.bf16.msra.mxu1 %v8353_v40  ;;  %v326_v39 = vld [vmem:[#allocation5 + $0x6e8] sm:$0xff]  ;;  %v7931_v40 = vcombine.low %v202_v26, %v206_v27 }
 0x17c   :  { %4033 = vmatprep.subr.bf16.mxu0 %v8218_v43  ;;  %4076 = vmatprep.subr.bf16.mxu1 %v8346_v46  ;;  %v8052_v43 = vcombine.high %v322_v38, %v326_v39  ;;  %v314_v46 = vld [vmem:[#allocation5 + $0x688] sm:$0xff]  ;;  %v8051_v56 = vcombine.low %v322_v38, %v326_v39 }
 0x17d   :  { %v8043_v3 = vcombine.low %v314_v46, %v318_v51  ;;  %v418_v49 = vld [vmem:[#allocation5 + $0x9c8] sm:$0xff] }
 0x17e   :  { %v282_v27 = vld [vmem:[#allocation5 + $0x588] sm:$0xff] }
 0x17f   :  { %4034 = vmatpush2.bf16.msra.mxu0 %v8217_v58  ;;  %4077 = vmatpush2.bf16.msra.mxu1 %v8345_v44  ;;  %v8044_v58 = vcombine.high %v314_v46, %v318_v51  ;;  %v306_v44 = vld [vmem:[#allocation5 + $0x648] sm:$0xff] }
 0x180   :  { %4089 = vmatprep.subr.bf16.mxu0 %v7956_v5  ;;  %4132 = vmatprep.subr.bf16.mxu1 %v8084_v53  ;;  %v310_v5 = vld [vmem:[#allocation5 + $0x668] sm:$0xff]  ;;  %v7908_v53 = vcombine.high %v178_v62, %v182_v1 }
 0x181   :  { %v8036_v4 = vcombine.high %v306_v44, %v310_v5  ;;  %v286_v28 = vld [vmem:[#allocation5 + $0x5a8] sm:$0xff] }
 0x182   :  { %4036 = vmatmul.mubr.bf16.vlgmr.msra.gmra.mxu0 %v9696_v9  ;;  %4079 = vmatmul.mubr.bf16.vlgmr.msra.gmra.mxu1 %v9698_v13  ;;  %v410_v29 = vld [vmem:[#allocation5 + $0x988] sm:$0xff] }
 0x183   :  { %4090 = vmatpush1.bf16.msra.mxu0 %v7955_v6  ;;  %4121 = vmatprep.mubr.bf16.mxu0 %v9640_v59  ;;  %v174_v6 = vld [vmem:[#allocation5 + $0x228] sm:$0xff] }
 0x184   :  { %4133 = vmatpush1.bf16.msra.mxu1 %v8083_v12  ;;  %4164 = vmatprep.mubr.bf16.mxu1 %v9644_v61  ;;  %v7907_v12 = vcombine.low %v178_v62, %v182_v1  ;;  %v7900_v15 = vcombine.high %v170_v11, %v174_v6  ;;  %v274_v37 = vld [vmem:[#allocation5 + $0x548] sm:$0xff] }
 0x185   :  { %4091 = vmatprep.subr.bf16.mxu0 %v7948_v14  ;;  %4134 = vmatprep.subr.bf16.mxu1 %v8076_v48  ;;  %v8035_v14 = vcombine.low %v306_v44, %v310_v5  ;;  %v290_v48 = vld [vmem:[#allocation5 + $0x5c8] sm:$0xff] }
 0x186   :  { %v278_v38 = vld [vmem:[#allocation5 + $0x568] sm:$0xff] }
 0x187   :  { %4092 = vmatpush1.bf16.msra.mxu0 %v7947_v55  ;;  %v422_v55 = vld [vmem:[#allocation5 + $0x9e8] sm:$0xff] }
 0x188   :  { %4135 = vmatpush1.bf16.msra.mxu1 %v8075_v23  ;;  %4093 = vmatprep.subr.bf16.mxu0 %v7940_v24  ;;  %v7899_v23 = vcombine.low %v170_v11, %v174_v6  ;;  %v8027_v24 = vcombine.low %v298_v7, %v302_v8  ;;  %v8148_v26 = vcombine.high %v418_v49, %v422_v55  ;;  %v402_v39 = vld [vmem:[#allocation5 + $0x948] sm:$0xff] }
 0x189   :  { %4136 = vmatprep.subr.bf16.mxu1 %v8068_v25  ;;  %v8020_v25 = vcombine.high %v290_v48, %v294_v22  ;;  %v266_v20 = vld [vmem:[#allocation5 + $0x508] sm:$0xff] }
 0x18a   :  { %v270_v46 = vld [vmem:[#allocation5 + $0x528] sm:$0xff] }
 0x18b   :  { %4094 = vmatpush1.bf16.msra.mxu0 %v7939_v30  ;;  %v414_v30 = vld [vmem:[#allocation5 + $0x9a8] sm:$0xff] }
 0x18c   :  { %4137 = vmatpush1.bf16.msra.mxu1 %v8067_v33  ;;  %4095 = vmatprep.subr.bf16.mxu0 %v7932_v16  ;;  %v8019_v33 = vcombine.low %v290_v48, %v294_v22  ;;  %v8147_v16 = vcombine.low %v418_v49, %v422_v55  ;;  %v8140_v36 = vcombine.high %v410_v29, %v414_v30  ;;  %v394_v51 = vld [vmem:[#allocation5 + $0x908] sm:$0xff] }
 0x18d   :  { %4138 = vmatprep.subr.bf16.mxu1 %v8060_v34  ;;  %v8012_v34 = vcombine.high %v282_v27, %v286_v28  ;;  %v258_v1 = vld [vmem:[#allocation5 + $0x4c8] sm:$0xff] }
 0x18e   :  { %v262_v44 = vld [vmem:[#allocation5 + $0x4e8] sm:$0xff] }
 0x18f   :  { %4096 = vmatpush1.bf16.msra.mxu0 %v7931_v40  ;;  %v406_v40 = vld [vmem:[#allocation5 + $0x968] sm:$0xff] }
 0x190   :  { %4139 = vmatpush1.bf16.msra.mxu1 %v8059_v41  ;;  %4097 = vmatprep.subr.bf16.mxu0 %v7924_v42  ;;  %v8011_v41 = vcombine.low %v282_v27, %v286_v28  ;;  %v8139_v42 = vcombine.low %v410_v29, %v414_v30  ;;  %v8132_v45 = vcombine.high %v402_v39, %v406_v40  ;;  %v386_v5 = vld [vmem:[#allocation5 + $0x8c8] sm:$0xff] }
 0x191   :  { %4140 = vmatprep.subr.bf16.mxu1 %v8052_v43  ;;  %v8004_v43 = vcombine.high %v274_v37, %v278_v38  ;;  %v250_v6 = vld [vmem:[#allocation5 + $0x488] sm:$0xff] }
 0x192   :  { %v254_v7 = vld [vmem:[#allocation5 + $0x4a8] sm:$0xff] }
 0x193   :  { %4098 = vmatpush1.bf16.msra.mxu0 %v7923_v52  ;;  %v398_v52 = vld [vmem:[#allocation5 + $0x928] sm:$0xff] }
 0x194   :  { %4141 = vmatpush1.bf16.msra.mxu1 %v8051_v56  ;;  %4099 = vmatprep.subr.bf16.mxu0 %v7916_v57  ;;  %v8003_v56 = vcombine.low %v274_v37, %v278_v38  ;;  %v8131_v57 = vcombine.low %v402_v39, %v406_v40  ;;  %v8124_v62 = vcombine.high %v394_v51, %v398_v52  ;;  %v378_v8 = vld [vmem:[#allocation5 + $0x888] sm:$0xff] }
 0x195   :  { %4142 = vmatprep.subr.bf16.mxu1 %v8044_v58  ;;  %v7996_v58 = vcombine.high %v266_v20, %v270_v46  ;;  %v242_v22 = vld [vmem:[#allocation5 + $0x448] sm:$0xff] }
 0x196   :  { %v246_v49 = vld [vmem:[#allocation5 + $0x468] sm:$0xff] }
 0x197   :  { %4100 = vmatpush1.bf16.msra.mxu0 %v7915_v2  ;;  %v390_v2 = vld [vmem:[#allocation5 + $0x8e8] sm:$0xff] }
 0x198   :  { %4143 = vmatpush1.bf16.msra.mxu1 %v8043_v3  ;;  %4101 = vmatprep.subr.bf16.mxu0 %v7908_v53  ;;  %v7995_v3 = vcombine.low %v266_v20, %v270_v46  ;;  %v8123_v53 = vcombine.low %v394_v51, %v398_v52  ;;  %v8116_v11 = vcombine.high %v386_v5, %v390_v2  ;;  %v370_v55 = vld [vmem:[#allocation5 + $0x848] sm:$0xff] }
 0x199   :  { %4144 = vmatprep.subr.bf16.mxu1 %v8036_v4  ;;  %v7988_v4 = vcombine.high %v258_v1, %v262_v44  ;;  %v234_v28 = vld [vmem:[#allocation5 + $0x408] sm:$0xff] }
 0x19a   :  { %v238_v29 = vld [vmem:[#allocation5 + $0x428] sm:$0xff] }
 0x19b   :  { %4102 = vmatpush1.bf16.msra.mxu0 %v7907_v12  ;;  %v382_v12 = vld [vmem:[#allocation5 + $0x8a8] sm:$0xff] }
 0x19c   :  { %4145 = vmatpush1.bf16.msra.mxu1 %v8035_v14  ;;  %4103 = vmatprep.subr.bf16.mxu0 %v7900_v15  ;;  %v7987_v14 = vcombine.low %v258_v1, %v262_v44  ;;  %v8115_v15 = vcombine.low %v386_v5, %v390_v2  ;;  %v8108_v48 = vcombine.high %v378_v8, %v382_v12  ;;  %v362_v30 = vld [vmem:[#allocation5 + $0x808] sm:$0xff] }
 0x19d   :  { %4146 = vmatprep.subr.bf16.mxu1 %v8028_v47  ;;  %v7980_v47 = vcombine.high %v250_v6, %v254_v7  ;;  %v482_v38 = vld [vmem:[#allocation5 + $0xbc8] sm:$0xff] }
 0x19e   :  { %v486_v39 = vld [vmem:[#allocation5 + $0xbe8] sm:$0xff] }
 0x19f   :  { %4104 = vmatpush1.bf16.msra.mxu0 %v7899_v23  ;;  %v374_v23 = vld [vmem:[#allocation5 + $0x868] sm:$0xff]  ;;  %v8211_v52 = vcombine.low %v482_v38, %v486_v39 }
 0x1a0   :  { %4147 = vmatpush1.bf16.msra.mxu1 %v8027_v24  ;;  %4105 = vmatprep.subr.bf16.mxu0 %v8020_v25  ;;  %v7979_v24 = vcombine.low %v250_v6, %v254_v7  ;;  %v8107_v25 = vcombine.low %v378_v8, %v382_v12  ;;  %v8100_v27 = vcombine.high %v370_v55, %v374_v23  ;;  %v610_v40 = vld [vmem:[#allocation5 + $0xfc8] sm:$0xff] }
 0x1a1   :  { %4148 = vmatprep.subr.bf16.mxu1 %v8148_v26  ;;  %v7972_v26 = vcombine.high %v242_v22, %v246_v49  ;;  %v474_v46 = vld [vmem:[#allocation5 + $0xb88] sm:$0xff] }
 0x1a2   :  { %v478_v51 = vld [vmem:[#allocation5 + $0xba8] sm:$0xff] }
 0x1a3   :  { %4106 = vmatpush2.bf16.msra.mxu0 %v8019_v33  ;;  %v366_v33 = vld [vmem:[#allocation5 + $0x828] sm:$0xff] }
 0x1a4   :  { %4149 = vmatpush2.bf16.msra.mxu1 %v8147_v16  ;;  %4107 = vmatprep.subr.bf16.mxu0 %v8012_v34  ;;  %v7971_v16 = vcombine.low %v242_v22, %v246_v49  ;;  %v8099_v34 = vcombine.low %v370_v55, %v374_v23  ;;  %v8092_v37 = vcombine.high %v362_v30, %v366_v33  ;;  %v466_v1 = vld [vmem:[#allocation5 + $0xb48] sm:$0xff] }
 0x1a5   :  { %4150 = vmatprep.subr.bf16.mxu1 %v8140_v36  ;;  %v7964_v36 = vcombine.high %v234_v28, %v238_v29  ;;  %v470_v44 = vld [vmem:[#allocation5 + $0xb68] sm:$0xff] }
 0x1a6   :  { %v594_v2 = vld [vmem:[#allocation5 + $0xf48] sm:$0xff] }
 0x1a7   :  { %4108 = vmatpush2.bf16.msra.mxu0 %v8011_v41  ;;  %v614_v41 = vld [vmem:[#allocation5 + $0xfe8] sm:$0xff] }
 0x1a8   :  { %4151 = vmatpush2.bf16.msra.mxu1 %v8139_v42  ;;  %4109 = vmatprep.subr.bf16.mxu0 %v8004_v43  ;;  %v7963_v42 = vcombine.low %v234_v28, %v238_v29  ;;  %v8091_v43 = vcombine.low %v362_v30, %v366_v33  ;;  %v8340_v20 = vcombine.high %v610_v40, %v614_v41  ;;  %v458_v7 = vld [vmem:[#allocation5 + $0xb08] sm:$0xff] }
 0x1a9   :  { %4152 = vmatprep.subr.bf16.mxu1 %v8132_v45  ;;  %v8212_v45 = vcombine.high %v482_v38, %v486_v39  ;;  %v462_v8 = vld [vmem:[#allocation5 + $0xb28] sm:$0xff] }
 0x1aa   :  { %v586_v12 = vld [vmem:[#allocation5 + $0xf08] sm:$0xff] }
 0x1ab   :  { %4110 = vmatpush2.bf16.msra.mxu0 %v8003_v56  ;;  %v602_v56 = vld [vmem:[#allocation5 + $0xf88] sm:$0xff] }
 0x1ac   :  { %4153 = vmatpush2.bf16.msra.mxu1 %v8131_v57  ;;  %4111 = vmatprep.subr.bf16.mxu0 %v7996_v58  ;;  %v606_v57 = vld [vmem:[#allocation5 + $0xfa8] sm:$0xff]  ;;  %v8339_v58 = vcombine.low %v610_v40, %v614_v41 }
 0x1ad   :  { %4154 = vmatprep.subr.bf16.mxu1 %v8124_v62  ;;  %v8204_v62 = vcombine.high %v474_v46, %v478_v51  ;;  %v8332_v5 = vcombine.high %v602_v56, %v606_v57  ;;  %v450_v49 = vld [vmem:[#allocation5 + $0xac8] sm:$0xff] }
 0x1ae   :  { %v454_v55 = vld [vmem:[#allocation5 + $0xae8] sm:$0xff] }
 0x1af   :  { %4112 = vmatpush2.bf16.msra.mxu0 %v7995_v3  ;;  %v598_v3 = vld [vmem:[#allocation5 + $0xf68] sm:$0xff] }
 0x1b0   :  { %4155 = vmatpush2.bf16.msra.mxu1 %v8123_v53  ;;  %4113 = vmatprep.subr.bf16.mxu0 %v7988_v4  ;;  %v8203_v53 = vcombine.low %v474_v46, %v478_v51  ;;  %v8331_v4 = vcombine.low %v602_v56, %v606_v57  ;;  %v8324_v6 = vcombine.high %v594_v2, %v598_v3  ;;  %v578_v23 = vld [vmem:[#allocation5 + $0xec8] sm:$0xff] }
 0x1b1   :  { %4156 = vmatprep.subr.bf16.mxu1 %v8116_v11  ;;  %v8196_v11 = vcombine.high %v466_v1, %v470_v44  ;;  %v442_v29 = vld [vmem:[#allocation5 + $0xa88] sm:$0xff] }
 0x1b2   :  { %v446_v30 = vld [vmem:[#allocation5 + $0xaa8] sm:$0xff] }
 0x1b3   :  { %4114 = vmatpush2.bf16.msra.mxu0 %v7987_v14  ;;  %v590_v14 = vld [vmem:[#allocation5 + $0xf28] sm:$0xff] }
 0x1b4   :  { %4157 = vmatpush2.bf16.msra.mxu1 %v8115_v15  ;;  %4115 = vmatprep.subr.bf16.mxu0 %v7980_v47  ;;  %v8195_v15 = vcombine.low %v466_v1, %v470_v44  ;;  %v8323_v47 = vcombine.low %v594_v2, %v598_v3  ;;  %v8316_v22 = vcombine.high %v586_v12, %v590_v14  ;;  %v570_v33 = vld [vmem:[#allocation5 + $0xe88] sm:$0xff] }
 0x1b5   :  { %4158 = vmatprep.subr.bf16.mxu1 %v8108_v48  ;;  %v8188_v48 = vcombine.high %v458_v7, %v462_v8  ;;  %v434_v39 = vld [vmem:[#allocation5 + $0xa48] sm:$0xff] }
 0x1b6   :  { %v438_v40 = vld [vmem:[#allocation5 + $0xa68] sm:$0xff] }
 0x1b7   :  { %4116 = vmatpush2.bf16.msra.mxu0 %v7979_v24  ;;  %v582_v24 = vld [vmem:[#allocation5 + $0xee8] sm:$0xff] }
 0x1b8   :  { %4159 = vmatpush2.bf16.msra.mxu1 %v8107_v25  ;;  %4117 = vmatprep.subr.bf16.mxu0 %v7972_v26  ;;  %v8187_v25 = vcombine.low %v458_v7, %v462_v8  ;;  %v8315_v26 = vcombine.low %v586_v12, %v590_v14  ;;  %v8308_v28 = vcombine.high %v578_v23, %v582_v24  ;;  %v562_v41 = vld [vmem:[#allocation5 + $0xe48] sm:$0xff] }
 0x1b9   :  { %4160 = vmatprep.subr.bf16.mxu1 %v8100_v27  ;;  %v8180_v27 = vcombine.high %v450_v49, %v454_v55  ;;  %v426_v51 = vld [vmem:[#allocation5 + $0xa08] sm:$0xff] }
 0x1ba   :  { %v554_v56 = vld [vmem:[#allocation5 + $0xe08] sm:$0xff] }
 0x1bb   :  { %4118 = vmatpush2.bf16.msra.mxu0 %v7971_v16  ;;  %v574_v16 = vld [vmem:[#allocation5 + $0xea8] sm:$0xff] }
 0x1bc   :  { %4161 = vmatpush2.bf16.msra.mxu1 %v8099_v34  ;;  %4119 = vmatprep.subr.bf16.mxu0 %v7964_v36  ;;  %v8179_v34 = vcombine.low %v450_v49, %v454_v55  ;;  %v8307_v36 = vcombine.low %v578_v23, %v582_v24  ;;  %v8300_v38 = vcombine.high %v570_v33, %v574_v16  ;;  %v558_v57 = vld [vmem:[#allocation5 + $0xe28] sm:$0xff] }
 0x1bd   :  { %4162 = vmatprep.subr.bf16.mxu1 %v8092_v37  ;;  %v8172_v37 = vcombine.high %v442_v29, %v446_v30  ;;  %v8284_v44 = vcombine.high %v554_v56, %v558_v57  ;;  %v550_v2 = vld [vmem:[#allocation5 + $0xde8] sm:$0xff] }
 0x1be   :  { %v674_v3 = vld [vmem:[#allocation5 + $0x11c8] sm:$0xff] }
 0x1bf   :  { %4120 = vmatpush2.bf16.msra.mxu0 %v7963_v42  ;;  %v566_v42 = vld [vmem:[#allocation5 + $0xe68] sm:$0xff] }
 0x1c0   :  { %4163 = vmatpush2.bf16.msra.mxu1 %v8091_v43  ;;  %4175 = vmatprep.subr.bf16.mxu0 %v8212_v45  ;;  %v8171_v43 = vcombine.low %v442_v29, %v446_v30  ;;  %v8299_v45 = vcombine.low %v570_v33, %v574_v16  ;;  %v8292_v46 = vcombine.high %v562_v41, %v566_v42  ;;  %v538_v8 = vld [vmem:[#allocation5 + $0xd88] sm:$0xff] }
 0x1c1   :  { %4218 = vmatprep.subr.bf16.mxu1 %v8340_v20  ;;  %v8164_v20 = vcombine.high %v434_v39, %v438_v40  ;;  %v542_v12 = vld [vmem:[#allocation5 + $0xda8] sm:$0xff] }
 0x1c2   :  { %4122 = vmatmul.mubr.bf16.vlgmr.msra.gmra.mxu0 %v9642_v60  ;;  %v666_v14 = vld [vmem:[#allocation5 + $0x1188] sm:$0xff] }
 0x1c3   :  { %4165 = vmatmul.mubr.bf16.vlgmr.msra.gmra.mxu1 %v9646_v63  ;;  %4176 = vmatpush1.bf16.msra.mxu0 %v8211_v52  ;;  %v430_v52 = vld [vmem:[#allocation5 + $0xa28] sm:$0xff] }
 0x1c4   :  { %4207 = vmatprep.mubr.bf16.mxu0 %v9676_v31  ;;  %4219 = vmatpush1.bf16.msra.mxu1 %v8339_v58  ;;  %v8163_v58 = vcombine.low %v434_v39, %v438_v40  ;;  %v8156_v1 = vcombine.high %v426_v51, %v430_v52  ;;  %v530_v55 = vld [vmem:[#allocation5 + $0xd48] sm:$0xff] }
 0x1c5   :  { %4250 = vmatprep.mubr.bf16.mxu1 %v9678_v35  ;;  %4177 = vmatprep.subr.bf16.mxu0 %v8204_v62  ;;  %v8291_v62 = vcombine.low %v562_v41, %v566_v42  ;;  %v534_v23 = vld [vmem:[#allocation5 + $0xd68] sm:$0xff] }
 0x1c6   :  { %4220 = vmatprep.subr.bf16.mxu1 %v8332_v5  ;;  %v546_v5 = vld [vmem:[#allocation5 + $0xdc8] sm:$0xff] }
 0x1c7   :  { %4178 = vmatpush1.bf16.msra.mxu0 %v8203_v53  ;;  %v678_v53 = vld [vmem:[#allocation5 + $0x11e8] sm:$0xff] }
 0x1c8   :  { %4221 = vmatpush1.bf16.msra.mxu1 %v8331_v4  ;;  %4179 = vmatprep.subr.bf16.mxu0 %v8196_v11  ;;  %v8155_v4 = vcombine.low %v426_v51, %v430_v52  ;;  %v8283_v11 = vcombine.low %v554_v56, %v558_v57  ;;  %v8404_v7 = vcombine.high %v674_v3, %v678_v53  ;;  %v658_v24 = vld [vmem:[#allocation5 + $0x1148] sm:$0xff] }
 0x1c9   :  { %4222 = vmatprep.subr.bf16.mxu1 %v8324_v6  ;;  %v8276_v6 = vcombine.high %v546_v5, %v550_v2  ;;  %v522_v30 = vld [vmem:[#allocation5 + $0xd08] sm:$0xff] }
 0x1ca   :  { %v526_v33 = vld [vmem:[#allocation5 + $0xd28] sm:$0xff] }
 0x1cb   :  { %4180 = vmatpush1.bf16.msra.mxu0 %v8195_v15  ;;  %v670_v15 = vld [vmem:[#allocation5 + $0x11a8] sm:$0xff] }
 0x1cc   :  { %4223 = vmatpush1.bf16.msra.mxu1 %v8323_v47  ;;  %4181 = vmatprep.subr.bf16.mxu0 %v8188_v48  ;;  %v8275_v47 = vcombine.low %v546_v5, %v550_v2  ;;  %v8403_v48 = vcombine.low %v674_v3, %v678_v53  ;;  %v8396_v49 = vcombine.high %v666_v14, %v670_v15  ;;  %v650_v16 = vld [vmem:[#allocation5 + $0x1108] sm:$0xff] }
 0x1cd   :  { %4224 = vmatprep.subr.bf16.mxu1 %v8316_v22  ;;  %v8268_v22 = vcombine.high %v538_v8, %v542_v12  ;;  %v514_v40 = vld [vmem:[#allocation5 + $0xcc8] sm:$0xff] }
 0x1ce   :  { %v518_v41 = vld [vmem:[#allocation5 + $0xce8] sm:$0xff] }
 0x1cf   :  { %4182 = vmatpush1.bf16.msra.mxu0 %v8187_v25  ;;  %v662_v25 = vld [vmem:[#allocation5 + $0x1168] sm:$0xff] }
 0x1d0   :  { %4225 = vmatpush1.bf16.msra.mxu1 %v8315_v26  ;;  %4183 = vmatprep.subr.bf16.mxu0 %v8180_v27  ;;  %v8267_v26 = vcombine.low %v538_v8, %v542_v12  ;;  %v8395_v27 = vcombine.low %v666_v14, %v670_v15  ;;  %v8388_v29 = vcombine.high %v658_v24, %v662_v25  ;;  %v642_v42 = vld [vmem:[#allocation5 + $0x10c8] sm:$0xff] }
 0x1d1   :  { %4226 = vmatprep.subr.bf16.mxu1 %v8308_v28  ;;  %v8260_v28 = vcombine.high %v530_v55, %v534_v23  ;;  %v506_v52 = vld [vmem:[#allocation5 + $0xc88] sm:$0xff] }
 0x1d2   :  { %v510_v56 = vld [vmem:[#allocation5 + $0xca8] sm:$0xff] }
 0x1d3   :  { %4184 = vmatpush1.bf16.msra.mxu0 %v8179_v34  ;;  %v654_v34 = vld [vmem:[#allocation5 + $0x1128] sm:$0xff] }
 0x1d4   :  { %4227 = vmatpush1.bf16.msra.mxu1 %v8307_v36  ;;  %4185 = vmatprep.subr.bf16.mxu0 %v8172_v37  ;;  %v8259_v36 = vcombine.low %v530_v55, %v534_v23  ;;  %v8387_v37 = vcombine.low %v658_v24, %v662_v25  ;;  %v8380_v39 = vcombine.high %v650_v16, %v654_v34  ;;  %v634_v57 = vld [vmem:[#allocation5 + $0x1088] sm:$0xff]  ;;  %v227_v23 = vld [vmem:[#allocation5 + $0x3d0] sm:$0xff] }
 0x1d5   :  { %4228 = vmatprep.subr.bf16.mxu1 %v8300_v38  ;;  %v8252_v38 = vcombine.high %v522_v30, %v526_v33  ;;  %v498_v2 = vld [vmem:[#allocation5 + $0xc48] sm:$0xff]  ;;  %v231_v24 = vld [vmem:[#allocation5 + $0x3f0] sm:$0xff] }
 0x1d6   :  { %v502_v3 = vld [vmem:[#allocation5 + $0xc68] sm:$0xff]  ;;  %v355_v25 = vld [vmem:[#allocation5 + $0x7d0] sm:$0xff] }
 0x1d7   :  { %4186 = vmatpush1.bf16.msra.mxu0 %v8171_v43  ;;  %v646_v43 = vld [vmem:[#allocation5 + $0x10e8] sm:$0xff] }
 0x1d8   :  { %4229 = vmatpush1.bf16.msra.mxu1 %v8299_v45  ;;  %4187 = vmatprep.subr.bf16.mxu0 %v8164_v20  ;;  %v8251_v45 = vcombine.low %v522_v30, %v526_v33  ;;  %v8379_v20 = vcombine.low %v650_v16, %v654_v34  ;;  %v8372_v51 = vcombine.high %v642_v42, %v646_v43  ;;  %v626_v53 = vld [vmem:[#allocation5 + $0x1048] sm:$0xff]  ;;  %v219_v16 = vld [vmem:[#allocation5 + $0x390] sm:$0xff] }
 0x1d9   :  { %4230 = vmatprep.subr.bf16.mxu1 %v8292_v46  ;;  %v8244_v46 = vcombine.high %v514_v40, %v518_v41  ;;  %v490_v12 = vld [vmem:[#allocation5 + $0xc08] sm:$0xff]  ;;  %v223_v34 = vld [vmem:[#allocation5 + $0x3b0] sm:$0xff] }
 0x1da   :  { %v494_v14 = vld [vmem:[#allocation5 + $0xc28] sm:$0xff] }
 0x1db   :  { %4188 = vmatpush1.bf16.msra.mxu0 %v8163_v58  ;;  %v638_v58 = vld [vmem:[#allocation5 + $0x10a8] sm:$0xff] }
 0x1dc   :  { %4231 = vmatpush1.bf16.msra.mxu1 %v8291_v62  ;;  %4189 = vmatprep.subr.bf16.mxu0 %v8156_v1  ;;  %v8243_v62 = vcombine.low %v514_v40, %v518_v41  ;;  %v8371_v1 = vcombine.low %v642_v42, %v646_v43  ;;  %v8364_v5 = vcombine.high %v634_v57, %v638_v58  ;;  %v618_v15 = vld [vmem:[#allocation5 + $0x1008] sm:$0xff]  ;;  %v211_v42 = vld [vmem:[#allocation5 + $0x350] sm:$0xff] }
 0x1dd   :  { %4232 = vmatprep.subr.bf16.mxu1 %v8284_v44  ;;  %v8236_v44 = vcombine.high %v506_v52, %v510_v56  ;;  %v9708_v30 = vld [vmem:[#allocation11 + $0x8] sm:$0xff]  ;;  %v7950_v41 = vcombine.high %v219_v16, %v223_v34  ;;  %v215_v43 = vld [vmem:[#allocation5 + $0x370] sm:$0xff] }
 0x1df   :  { %4190 = vmatpush1.bf16.msra.mxu0 %v8155_v4  ;;  %v630_v4 = vld [vmem:[#allocation5 + $0x1068] sm:$0xff] }
 0x1e0   :  { %4233 = vmatpush1.bf16.msra.mxu1 %v8283_v11  ;;  %4191 = vmatprep.subr.bf16.mxu0 %v8276_v6  ;;  %v8235_v11 = vcombine.low %v506_v52, %v510_v56  ;;  %v8363_v6 = vcombine.low %v634_v57, %v638_v58  ;;  %v8356_v8 = vcombine.high %v626_v53, %v630_v4 }
 0x1e1   :  { %4234 = vmatprep.subr.bf16.mxu1 %v8404_v7  ;;  %v8228_v7 = vcombine.high %v498_v2, %v502_v3  ;;  %v7949_v57 = vcombine.low %v219_v16, %v223_v34  ;;  %v319_v16 = vld [vmem:[#allocation5 + $0x6b0] sm:$0xff] }
 0x1e3   :  { %4192 = vmatpush2.bf16.msra.mxu0 %v8275_v47  ;;  %v622_v47 = vld [vmem:[#allocation5 + $0x1028] sm:$0xff] }
 0x1e4   :  { %4235 = vmatpush2.bf16.msra.mxu1 %v8403_v48  ;;  %4193 = vmatprep.subr.bf16.mxu0 %v8268_v22  ;;  %v8227_v48 = vcombine.low %v498_v2, %v502_v3  ;;  %v8355_v22 = vcombine.low %v626_v53, %v630_v4  ;;  %v8348_v55 = vcombine.high %v618_v15, %v622_v47  ;;  %v203_v3 = vld [vmem:[#allocation5 + $0x310] sm:$0xff] }
 0x1e5   :  { %4236 = vmatprep.subr.bf16.mxu1 %v8396_v49  ;;  %v8220_v49 = vcombine.high %v490_v12, %v494_v14  ;;  %v207_v53 = vld [vmem:[#allocation5 + $0x330] sm:$0xff] }
 0x1e7   :  { %4194 = vmatpush2.bf16.msra.mxu0 %v8267_v26  ;;  %v359_v26 = vld [vmem:[#allocation5 + $0x7f0] sm:$0xff] }
 0x1e8   :  { %4237 = vmatpush2.bf16.msra.mxu1 %v8395_v27  ;;  %4195 = vmatprep.subr.bf16.mxu0 %v8260_v28  ;;  %v8219_v27 = vcombine.low %v490_v12, %v494_v14  ;;  %v8347_v28 = vcombine.low %v618_v15, %v622_v47  ;;  %v8086_v33 = vcombine.high %v355_v25, %v359_v26 }
 0x1e9   :  { %4238 = vmatprep.subr.bf16.mxu1 %v8388_v29  ;;  %v7958_v29 = vcombine.high %v227_v23, %v231_v24  ;;  %v8085_v40 = vcombine.low %v355_v25, %v359_v26  ;;  %v7934_v15 = vcombine.high %v203_v3, %v207_v53 }
 0x1eb   :  { %4196 = vmatpush2.bf16.msra.mxu0 %v8259_v36  ;;  %v7957_v36 = vcombine.low %v227_v23, %v231_v24  ;;  %v327_v23 = vld [vmem:[#allocation5 + $0x6f0] sm:$0xff]  ;;  %v7933_v24 = vcombine.low %v203_v3, %v207_v53 }
 0x1ec   :  { %4239 = vmatpush2.bf16.msra.mxu1 %v8387_v37  ;;  %4197 = vmatprep.subr.bf16.mxu0 %v8252_v38  ;;  %v1320_v37 = vrot.slane %v9708_v30, %v9622_v18  ;;  %v347_v38 = vld [vmem:[#allocation5 + $0x790] sm:$0xff] }
 0x1ed   :  { %4240 = vmatprep.subr.bf16.mxu1 %v8380_v39  ;;  %v351_v39 = vld [vmem:[#allocation5 + $0x7b0] sm:$0xff] }
 0x1ee   :  { %v291_v53 = vld [vmem:[#allocation5 + $0x5d0] sm:$0xff] }
 0x1ef   :  { %4198 = vmatpush2.bf16.msra.mxu0 %v8251_v45 }
 0x1f0   :  { %4241 = vmatpush2.bf16.msra.mxu1 %v8379_v20  ;;  %4199 = vmatprep.subr.bf16.mxu0 %v8244_v46  ;;  %v8078_v20 = vcombine.high %v347_v38, %v351_v39  ;;  %v339_v46 = vld [vmem:[#allocation5 + $0x750] sm:$0xff] }
 0x1f1   :  { %4242 = vmatprep.subr.bf16.mxu1 %v8372_v51  ;;  %v343_v51 = vld [vmem:[#allocation5 + $0x770] sm:$0xff] }
 0x1f2   :  { %v8070_v2 = vcombine.high %v339_v46, %v343_v51  ;;  %v8069_v14 = vcombine.low %v339_v46, %v343_v51  ;;  %v171_v51 = vld [vmem:[#allocation5 + $0x210] sm:$0xff] }
 0x1f3   :  { %4200 = vmatpush2.bf16.msra.mxu0 %v8243_v62  ;;  %v8077_v62 = vcombine.low %v347_v38, %v351_v39  ;;  %v179_v39 = vld [vmem:[#allocation5 + $0x250] sm:$0xff] }
 0x1f4   :  { %4243 = vmatpush2.bf16.msra.mxu1 %v8371_v1  ;;  %4201 = vmatprep.subr.bf16.mxu0 %v8236_v44  ;;  %v7942_v1 = vcombine.high %v211_v42, %v215_v43 }
 0x1f5   :  { %4244 = vmatprep.subr.bf16.mxu1 %v8364_v5 }
 0x1f7   :  { %4202 = vmatpush2.bf16.msra.mxu0 %v8235_v11  ;;  %v331_v11 = vld [vmem:[#allocation5 + $0x710] sm:$0xff] }
 0x1f8   :  { %4245 = vmatpush2.bf16.msra.mxu1 %v8363_v6  ;;  %4203 = vmatprep.subr.bf16.mxu0 %v8228_v7  ;;  %v335_v6 = vld [vmem:[#allocation5 + $0x730] sm:$0xff] }
 0x1f9   :  { %4246 = vmatprep.subr.bf16.mxu1 %v8356_v8  ;;  %v7941_v8 = vcombine.low %v211_v42, %v215_v43  ;;  %v8061_v25 = vcombine.low %v331_v11, %v335_v6  ;;  %v311_v42 = vld [vmem:[#allocation5 + $0x670] sm:$0xff] }
 0x1fb   :  { %4204 = vmatpush2.bf16.msra.mxu0 %v8227_v48  ;;  %v8062_v48 = vcombine.high %v331_v11, %v335_v6  ;;  %v419_v11 = vld [vmem:[#allocation5 + $0x9d0] sm:$0xff] }
 0x1fc   :  { %4247 = vmatpush2.bf16.msra.mxu1 %v8355_v22  ;;  %4205 = vmatprep.subr.bf16.mxu0 %v8220_v49  ;;  %v195_v22 = vld [vmem:[#allocation5 + $0x2d0] sm:$0xff] }
 0x1fd   :  { %4248 = vmatprep.subr.bf16.mxu1 %v8348_v55  ;;  %v199_v49 = vld [vmem:[#allocation5 + $0x2f0] sm:$0xff] }
 0x1fe   :  { %v323_v55 = vld [vmem:[#allocation5 + $0x6d0] sm:$0xff]  ;;  %v7926_v26 = vcombine.high %v195_v22, %v199_v49  ;;  %v7925_v34 = vcombine.low %v195_v22, %v199_v49 }
 0x1ff   :  { %4206 = vmatpush2.bf16.msra.mxu0 %v8219_v27  ;;  %v8054_v27 = vcombine.high %v323_v55, %v327_v23  ;;  %v423_v6 = vld [vmem:[#allocation5 + $0x9f0] sm:$0xff] }
 0x200   :  { %4249 = vmatpush2.bf16.msra.mxu1 %v8347_v28  ;;  %4261 = vmatprep.subr.bf16.mxu0 %v7958_v29  ;;  %v187_v28 = vld [vmem:[#allocation5 + $0x290] sm:$0xff] }
 0x201   :  { %4304 = vmatprep.subr.bf16.mxu1 %v8086_v33  ;;  %v191_v29 = vld [vmem:[#allocation5 + $0x2b0] sm:$0xff] }
 0x202   :  { %4208 = vmatmul.mubr.bf16.vlgmr.msra.gmra.mxu0 %v9696_v9  ;;  %v3951_v45 = vpop.f32.mrf.mxu0  ;;  %v3994_v56 = vpop.f32.mrf.mxu1  ;;  %v315_v33 = vld [vmem:[#allocation5 + $0x690] sm:$0xff]  ;;  %v7917_v43 = vcombine.low %v187_v28, %v191_v29 }
 0x203   :  { %4251 = vmatmul.mubr.bf16.vlgmr.msra.gmra.mxu1 %v9698_v13  ;;  %v3952_v52 = vadd.f32 %v3951_v45, %v1320_v37  ;;  %4262 = vmatpush1.bf16.msra.mxu0 %v7957_v36  ;;  %v8053_v36 = vcombine.low %v323_v55, %v327_v23  ;;  %v8046_v38 = vcombine.high %v315_v33, %v319_v16  ;;  %v411_v22 = vld [vmem:[#allocation5 + $0x990] sm:$0xff] }
 0x204   :  { %4293 = vmatprep.mubr.bf16.mxu0 %v9640_v59  ;;  %4305 = vmatpush1.bf16.msra.mxu1 %v8085_v40  ;;  %v9715_v58 = vpop.f32.mrf.mxu0  ;;  %v9720_v5 = vpop.f32.mrf.mxu1  ;;  %v183_v40 = vld [vmem:[#allocation5 + $0x270] sm:$0xff]  ;;  %v8045_v45 = vcombine.low %v315_v33, %v319_v16  ;;  %v8149_v23 = vcombine.low %v419_v11, %v423_v6 }
 0x205   :  { %v9717_v44 = vadd.f32 %v3994_v56, %v3952_v52  ;;  %4336 = vmatprep.mubr.bf16.mxu1 %v9644_v61  ;;  %4263 = vmatprep.subr.bf16.mxu0 %v7950_v41  ;;  %v307_v41 = vld [vmem:[#allocation5 + $0x650] sm:$0xff] }
 0x206   :  { %4306 = vmatprep.subr.bf16.mxu1 %v8078_v20  ;;  %v3955_v4 = vpop.f32.mrf.mxu0  ;;  %v3998_v12 = vpop.f32.mrf.mxu1  ;;  %v7910_v20 = vcombine.high %v179_v39, %v183_v40  ;;  %v8038_v46 = vcombine.high %v307_v41, %v311_v42  ;;  %v175_v52 = vld [vmem:[#allocation5 + $0x230] sm:$0xff] }
 0x207   :  { %v3956_v7 = vadd.f32 %v3955_v4, %v1320_v37  ;;  %4264 = vmatpush1.bf16.msra.mxu0 %v7949_v57  ;;  %v7918_v37 = vcombine.high %v187_v28, %v191_v29  ;;  %v299_v56 = vld [vmem:[#allocation5 + $0x610] sm:$0xff] }
 0x208   :  { %4307 = vmatpush1.bf16.msra.mxu1 %v8077_v62  ;;  %4265 = vmatprep.subr.bf16.mxu0 %v7942_v1  ;;  %v303_v57 = vld [vmem:[#allocation5 + $0x630] sm:$0xff]  ;;  %v7909_v62 = vcombine.low %v179_v39, %v183_v40  ;;  %v8037_v1 = vcombine.low %v307_v41, %v311_v42 }
 0x209   :  { %v9722_v47 = vadd.f32 %v3998_v12, %v3956_v7  ;;  %4308 = vmatprep.subr.bf16.mxu1 %v8070_v2  ;;  %v7902_v2 = vcombine.high %v171_v51, %v175_v52  ;;  %v8030_v3 = vcombine.high %v299_v56, %v303_v57  ;;  %v295_v4 = vld [vmem:[#allocation5 + $0x5f0] sm:$0xff]  ;;  %v7901_v7 = vcombine.low %v171_v51, %v175_v52 }
 0x20a   :  { %v8022_v12 = vcombine.high %v291_v53, %v295_v4  ;;  %v415_v49 = vld [vmem:[#allocation5 + $0x9b0] sm:$0xff]  ;;  %v8021_v55 = vcombine.low %v291_v53, %v295_v4 }
 0x20b   :  { %4266 = vmatpush1.bf16.msra.mxu0 %v7941_v8  ;;  %v8029_v8 = vcombine.low %v299_v56, %v303_v57  ;;  %v403_v28 = vld [vmem:[#allocation5 + $0x950] sm:$0xff]  ;;  %v8141_v16 = vcombine.low %v411_v22, %v415_v49 }
 0x20c   :  { %4309 = vmatpush1.bf16.msra.mxu1 %v8069_v14  ;;  %4267 = vmatprep.subr.bf16.mxu0 %v7934_v15  ;;  %v8150_v14 = vcombine.high %v419_v11, %v423_v6  ;;  %v283_v15 = vld [vmem:[#allocation5 + $0x590] sm:$0xff] }
 0x20d   :  { %4310 = vmatprep.subr.bf16.mxu1 %v8062_v48  ;;  %v287_v48 = vld [vmem:[#allocation5 + $0x5b0] sm:$0xff] }
 0x20e   :  { %v407_v29 = vld [vmem:[#allocation5 + $0x970] sm:$0xff]  ;;  %v8013_v33 = vcombine.low %v283_v15, %v287_v48 }
 0x20f   :  { %4268 = vmatpush1.bf16.msra.mxu0 %v7933_v24  ;;  %v8014_v24 = vcombine.high %v283_v15, %v287_v48  ;;  %v395_v39 = vld [vmem:[#allocation5 + $0x910] sm:$0xff]  ;;  %v8133_v42 = vcombine.low %v403_v28, %v407_v29 }
 0x210   :  { %4311 = vmatpush1.bf16.msra.mxu1 %v8061_v25  ;;  %4269 = vmatprep.subr.bf16.mxu0 %v7926_v26  ;;  %v8142_v25 = vcombine.high %v411_v22, %v415_v49  ;;  %v275_v26 = vld [vmem:[#allocation5 + $0x550] sm:$0xff] }
 0x211   :  { %4312 = vmatprep.subr.bf16.mxu1 %v8054_v27  ;;  %v279_v27 = vld [vmem:[#allocation5 + $0x570] sm:$0xff] }
 0x212   :  { %v399_v40 = vld [vmem:[#allocation5 + $0x930] sm:$0xff]  ;;  %v8005_v41 = vcombine.low %v275_v26, %v279_v27 }
 0x213   :  { %4270 = vmatpush1.bf16.msra.mxu0 %v7925_v34  ;;  %v8006_v34 = vcombine.high %v275_v26, %v279_v27  ;;  %v387_v51 = vld [vmem:[#allocation5 + $0x8d0] sm:$0xff]  ;;  %v8125_v57 = vcombine.low %v395_v39, %v399_v40 }
 0x214   :  { %4313 = vmatpush1.bf16.msra.mxu1 %v8053_v36  ;;  %4271 = vmatprep.subr.bf16.mxu0 %v7918_v37  ;;  %v8134_v36 = vcombine.high %v403_v28, %v407_v29  ;;  %v267_v37 = vld [vmem:[#allocation5 + $0x510] sm:$0xff] }
 0x215   :  { %4314 = vmatprep.subr.bf16.mxu1 %v8046_v38  ;;  %v271_v38 = vld [vmem:[#allocation5 + $0x530] sm:$0xff] }
 0x216   :  { %v391_v52 = vld [vmem:[#allocation5 + $0x8f0] sm:$0xff]  ;;  %v7997_v56 = vcombine.low %v267_v37, %v271_v38 }
 0x217   :  { %4272 = vmatpush1.bf16.msra.mxu0 %v7917_v43  ;;  %v7998_v43 = vcombine.high %v267_v37, %v271_v38  ;;  %v379_v53 = vld [vmem:[#allocation5 + $0x890] sm:$0xff]  ;;  %v8117_v6 = vcombine.low %v387_v51, %v391_v52 }
 0x218   :  { %4315 = vmatpush1.bf16.msra.mxu1 %v8045_v45  ;;  %4273 = vmatprep.subr.bf16.mxu0 %v7910_v20  ;;  %v8126_v45 = vcombine.high %v395_v39, %v399_v40  ;;  %v259_v20 = vld [vmem:[#allocation5 + $0x4d0] sm:$0xff] }
 0x219   :  { %4316 = vmatprep.subr.bf16.mxu1 %v8038_v46  ;;  %v263_v46 = vld [vmem:[#allocation5 + $0x4f0] sm:$0xff] }
 0x21a   :  { %v383_v4 = vld [vmem:[#allocation5 + $0x8b0] sm:$0xff]  ;;  %v7989_v11 = vcombine.low %v259_v20, %v263_v46 }
 0x21b   :  { %4274 = vmatpush1.bf16.msra.mxu0 %v7909_v62  ;;  %v7990_v62 = vcombine.high %v259_v20, %v263_v46  ;;  %v371_v15 = vld [vmem:[#allocation5 + $0x850] sm:$0xff]  ;;  %v8109_v49 = vcombine.low %v379_v53, %v383_v4 }
 0x21c   :  { %4317 = vmatpush1.bf16.msra.mxu1 %v8037_v1  ;;  %4275 = vmatprep.subr.bf16.mxu0 %v7902_v2  ;;  %v8118_v1 = vcombine.high %v387_v51, %v391_v52  ;;  %v251_v2 = vld [vmem:[#allocation5 + $0x490] sm:$0xff]  ;;  %v9724_v52 = vpop.f32.mrf.mxu0 }
 0x21d   :  { %4318 = vmatprep.subr.bf16.mxu1 %v8030_v3  ;;  %v255_v3 = vld [vmem:[#allocation5 + $0x4b0] sm:$0xff] }
 0x21e   :  { %v375_v48 = vld [vmem:[#allocation5 + $0x870] sm:$0xff]  ;;  %v7981_v22 = vcombine.low %v251_v2, %v255_v3 }
 0x21f   :  { %4276 = vmatpush1.bf16.msra.mxu0 %v7901_v7  ;;  %v7982_v7 = vcombine.high %v251_v2, %v255_v3  ;;  %v363_v26 = vld [vmem:[#allocation5 + $0x810] sm:$0xff]  ;;  %v8101_v29 = vcombine.low %v371_v15, %v375_v48 }
 0x220   :  { %4319 = vmatpush1.bf16.msra.mxu1 %v8029_v8  ;;  %4277 = vmatprep.subr.bf16.mxu0 %v8022_v12  ;;  %v8110_v8 = vcombine.high %v379_v53, %v383_v4  ;;  %v243_v12 = vld [vmem:[#allocation5 + $0x450] sm:$0xff] }
 0x221   :  { %4320 = vmatprep.subr.bf16.mxu1 %v8150_v14  ;;  %v247_v14 = vld [vmem:[#allocation5 + $0x470] sm:$0xff] }
 0x222   :  { %v367_v27 = vld [vmem:[#allocation5 + $0x830] sm:$0xff]  ;;  %v7973_v28 = vcombine.low %v243_v12, %v247_v14 }
 0x223   :  { %4278 = vmatpush2.bf16.msra.mxu0 %v8021_v55  ;;  %v7974_v55 = vcombine.high %v243_v12, %v247_v14  ;;  %v611_v37 = vld [vmem:[#allocation5 + $0xfd0] sm:$0xff]  ;;  %v8093_v40 = vcombine.low %v363_v26, %v367_v27 }
 0x224   :  { %4321 = vmatpush2.bf16.msra.mxu1 %v8149_v23  ;;  %4279 = vmatprep.subr.bf16.mxu0 %v8014_v24  ;;  %v8102_v23 = vcombine.high %v371_v15, %v375_v48  ;;  %v235_v24 = vld [vmem:[#allocation5 + $0x410] sm:$0xff] }
 0x225   :  { %4322 = vmatprep.subr.bf16.mxu1 %v8142_v25  ;;  %v239_v25 = vld [vmem:[#allocation5 + $0x430] sm:$0xff] }
 0x226   :  { %v615_v38 = vld [vmem:[#allocation5 + $0xff0] sm:$0xff]  ;;  %v7965_v39 = vcombine.low %v235_v24, %v239_v25 }
 0x227   :  { %4280 = vmatpush2.bf16.msra.mxu0 %v8013_v33  ;;  %v7966_v33 = vcombine.high %v235_v24, %v239_v25  ;;  %v603_v46 = vld [vmem:[#allocation5 + $0xf90] sm:$0xff] }
 0x228   :  { %4323 = vmatpush2.bf16.msra.mxu1 %v8141_v16  ;;  %4281 = vmatprep.subr.bf16.mxu0 %v8006_v34  ;;  %v8094_v16 = vcombine.high %v363_v26, %v367_v27  ;;  %v483_v34 = vld [vmem:[#allocation5 + $0xbd0] sm:$0xff] }
 0x229   :  { %4324 = vmatprep.subr.bf16.mxu1 %v8134_v36  ;;  %v487_v36 = vld [vmem:[#allocation5 + $0xbf0] sm:$0xff] }
 0x22a   :  { %v8213_v20 = vcombine.low %v483_v34, %v487_v36  ;;  %v607_v51 = vld [vmem:[#allocation5 + $0xfb0] sm:$0xff] }
 0x22b   :  { %4282 = vmatpush2.bf16.msra.mxu0 %v8005_v41  ;;  %v8214_v41 = vcombine.high %v483_v34, %v487_v36  ;;  %v471_v2 = vld [vmem:[#allocation5 + $0xb70] sm:$0xff]  ;;  %v8334_v53 = vcombine.high %v603_v46, %v607_v51  ;;  %v8333_v14 = vcombine.low %v603_v46, %v607_v51 }
 0x22c   :  { %4325 = vmatpush2.bf16.msra.mxu1 %v8133_v42  ;;  %4283 = vmatprep.subr.bf16.mxu0 %v7998_v43  ;;  %v8342_v42 = vcombine.high %v611_v37, %v615_v38  ;;  %v475_v43 = vld [vmem:[#allocation5 + $0xb90] sm:$0xff] }
 0x22d   :  { %4326 = vmatprep.subr.bf16.mxu1 %v8126_v45  ;;  %v479_v45 = vld [vmem:[#allocation5 + $0xbb0] sm:$0xff] }
 0x22e   :  { %v595_v4 = vld [vmem:[#allocation5 + $0xf50] sm:$0xff] }
 0x22f   :  { %4284 = vmatpush2.bf16.msra.mxu0 %v7997_v56  ;;  %v8341_v56 = vcombine.low %v611_v37, %v615_v38  ;;  %v587_v24 = vld [vmem:[#allocation5 + $0xf10] sm:$0xff] }
 0x230   :  { %4327 = vmatpush2.bf16.msra.mxu1 %v8125_v57  ;;  %4285 = vmatprep.subr.bf16.mxu0 %v7990_v62  ;;  %v9726_v57 = vpop.f32.mrf.mxu1  ;;  %v8206_v62 = vcombine.high %v475_v43, %v479_v45  ;;  %v591_v25 = vld [vmem:[#allocation5 + $0xf30] sm:$0xff] }
 0x231   :  { %4328 = vmatprep.subr.bf16.mxu1 %v8118_v1  ;;  %v467_v1 = vld [vmem:[#allocation5 + $0xb50] sm:$0xff]  ;;  %v8318_v34 = vcombine.high %v587_v24, %v591_v25 }
 0x232   :  { %v8198_v15 = vcombine.high %v467_v1, %v471_v2  ;;  %v8197_v27 = vcombine.low %v467_v1, %v471_v2  ;;  %v451_v36 = vld [vmem:[#allocation5 + $0xad0] sm:$0xff] }
 0x233   :  { %4286 = vmatpush2.bf16.msra.mxu0 %v7989_v11  ;;  %v599_v11 = vld [vmem:[#allocation5 + $0xf70] sm:$0xff] }
 0x234   :  { %4329 = vmatpush2.bf16.msra.mxu1 %v8117_v6  ;;  %4287 = vmatprep.subr.bf16.mxu0 %v7982_v7  ;;  %v455_v37 = vld [vmem:[#allocation5 + $0xaf0] sm:$0xff] }
 0x235   :  { %4330 = vmatprep.subr.bf16.mxu1 %v8110_v8  ;;  %v8205_v8 = vcombine.low %v475_v43, %v479_v45  ;;  %v579_v38 = vld [vmem:[#allocation5 + $0xed0] sm:$0xff]  ;;  %v8182_v43 = vcombine.high %v451_v36, %v455_v37  ;;  %v8181_v1 = vcombine.low %v451_v36, %v455_v37 }
 0x236   :  { %v443_v46 = vld [vmem:[#allocation5 + $0xa90] sm:$0xff] }
 0x237   :  { %4288 = vmatpush2.bf16.msra.mxu0 %v7981_v22  ;;  %v447_v51 = vld [vmem:[#allocation5 + $0xab0] sm:$0xff] }
 0x238   :  { %4331 = vmatpush2.bf16.msra.mxu1 %v8109_v49  ;;  %4289 = vmatprep.subr.bf16.mxu0 %v7974_v55  ;;  %v8326_v49 = vcombine.high %v595_v4, %v599_v11  ;;  %v463_v55 = vld [vmem:[#allocation5 + $0xb30] sm:$0xff] }
 0x239   :  { %4332 = vmatprep.subr.bf16.mxu1 %v8102_v23 }
 0x23b   :  { %4290 = vmatpush2.bf16.msra.mxu0 %v7973_v28 }
 0x23c   :  { %4333 = vmatpush2.bf16.msra.mxu1 %v8101_v29  ;;  %4291 = vmatprep.subr.bf16.mxu0 %v7966_v33  ;;  %v8325_v29 = vcombine.low %v595_v4, %v599_v11  ;;  %v435_v4 = vld [vmem:[#allocation5 + $0xa50] sm:$0xff] }
 0x23d   :  { %4334 = vmatprep.subr.bf16.mxu1 %v8094_v16  ;;  %v439_v11 = vld [vmem:[#allocation5 + $0xa70] sm:$0xff] }
 0x23f   :  { %4292 = vmatpush2.bf16.msra.mxu0 %v7965_v39  ;;  %v583_v39 = vld [vmem:[#allocation5 + $0xef0] sm:$0xff] }
 0x240   :  { %4335 = vmatpush2.bf16.msra.mxu1 %v8093_v40  ;;  %4347 = vmatprep.subr.bf16.mxu0 %v8214_v41  ;;  %v8309_v2 = vcombine.low %v579_v38, %v583_v39 }
 0x241   :  { %4390 = vmatprep.subr.bf16.mxu1 %v8342_v42 }
 0x242   :  { %v4037_v3 = vpop.f32.mrf.mxu0  ;;  %4294 = vmatmul.mubr.bf16.vlgmr.msra.gmra.mxu0 %v9642_v60  ;;  %v4080_v7 = vpop.f32.mrf.mxu1 }
 0x243   :  { %v4038_v6 = vadd.f32 %v4037_v3, %v9717_v44  ;;  %4337 = vmatmul.mubr.bf16.vlgmr.msra.gmra.mxu1 %v9646_v63  ;;  %4348 = vmatpush1.bf16.msra.mxu0 %v8213_v20  ;;  %v459_v44 = vld [vmem:[#allocation5 + $0xb10] sm:$0xff]  ;;  %v8310_v20 = vcombine.high %v579_v38, %v583_v39  ;;  %v8174_v3 = vcombine.high %v443_v46, %v447_v51 }
 0x244   :  { %4379 = vmatprep.mubr.bf16.mxu0 %v9676_v31  ;;  %4391 = vmatpush1.bf16.msra.mxu1 %v8341_v56  ;;  %v9732_v12 = vpop.f32.mrf.mxu0  ;;  %v9735_v22 = vpop.f32.mrf.mxu1  ;;  %v8190_v33 = vcombine.high %v459_v44, %v463_v55  ;;  %v8189_v42 = vcombine.low %v459_v44, %v463_v55  ;;  %v571_v56 = vld [vmem:[#allocation5 + $0xe90] sm:$0xff] }
 0x245   :  { %v4081_v48 = vadd.f32 %v4080_v7, %v4038_v6  ;;  %4422 = vmatprep.mubr.bf16.mxu1 %v9678_v35  ;;  %4349 = vmatprep.subr.bf16.mxu0 %v8206_v62  ;;  %v575_v62 = vld [vmem:[#allocation5 + $0xeb0] sm:$0xff] }
 0x246   :  { %v4041_v23 = vpop.f32.mrf.mxu0  ;;  %4392 = vmatprep.subr.bf16.mxu1 %v8334_v53  ;;  %v4084_v28 = vpop.f32.mrf.mxu1  ;;  %v8302_v53 = vcombine.high %v571_v56, %v575_v62  ;;  %v563_v6 = vld [vmem:[#allocation5 + $0xe50] sm:$0xff] }
 0x247   :  { %v4042_v26 = vadd.f32 %v4041_v23, %v9722_v47  ;;  %4350 = vmatpush1.bf16.msra.mxu0 %v8205_v8  ;;  %v4605_v40 = vmax.f32 %v4081_v48, 0.0  ;;  %v8317_v47 = vcombine.low %v587_v24, %v591_v25  ;;  %v567_v7 = vld [vmem:[#allocation5 + $0xe70] sm:$0xff]  ;;  %v8173_v8 = vcombine.low %v443_v46, %v447_v51 }
 0x248   :  { %4393 = vmatpush1.bf16.msra.mxu1 %v8333_v14  ;;  %4351 = vmatprep.subr.bf16.mxu0 %v8198_v15  ;;  %v8301_v14 = vcombine.low %v571_v56, %v575_v62  ;;  %v8166_v15 = vcombine.high %v435_v4, %v439_v11  ;;  %v8294_v48 = vcombine.high %v563_v6, %v567_v7  ;;  %v431_v44 = vld [vmem:[#allocation5 + $0xa30] sm:$0xff] }
 0x249   :  { %v4085_v16 = vadd.f32 %v4084_v28, %v4042_v26  ;;  %4394 = vmatprep.subr.bf16.mxu1 %v8326_v49  ;;  %v427_v49 = vld [vmem:[#allocation5 + $0xa10] sm:$0xff]  ;;  %v8165_v24 = vcombine.low %v435_v4, %v439_v11  ;;  %v8293_v25 = vcombine.low %v563_v6, %v567_v7 }
 0x24a   :  { %v555_v55 = vld [vmem:[#allocation5 + $0xe10] sm:$0xff]  ;;  %v8158_v26 = vcombine.high %v427_v49, %v431_v44 }
 0x24b   :  { %v4613_v41 = vmax.f32 %v4085_v16, 0.0  ;;  %4352 = vmatpush1.bf16.msra.mxu0 %v8197_v27  ;;  %v559_v23 = vld [vmem:[#allocation5 + $0xe30] sm:$0xff] }
 0x24c   :  { %4395 = vmatpush1.bf16.msra.mxu1 %v8325_v29  ;;  %4353 = vmatprep.subr.bf16.mxu0 %v8190_v33  ;;  %v8286_v27 = vcombine.high %v555_v55, %v559_v23  ;;  %v547_v28 = vld [vmem:[#allocation5 + $0xdd0] sm:$0xff]  ;;  %v8285_v36 = vcombine.low %v555_v55, %v559_v23 }
 0x24d   :  { %v9738_v45 = vpack.c.bf16 %v4613_v41, %v4605_v40  ;;  %4396 = vmatprep.subr.bf16.mxu1 %v8318_v34  ;;  %v551_v29 = vld [vmem:[#allocation5 + $0xdf0] sm:$0xff]  ;;  %v8157_v34 = vcombine.low %v427_v49, %v431_v44 }
 0x24e   :  { %v675_v33 = vld [vmem:[#allocation5 + $0x11d0] sm:$0xff]  ;;  %v8278_v37 = vcombine.high %v547_v28, %v551_v29 }
 0x24f   :  { %4354 = vmatpush1.bf16.msra.mxu0 %v8189_v42  ;;  %v679_v16 = vld [vmem:[#allocation5 + $0x11f0] sm:$0xff] }
 0x250   :  { %4397 = vmatpush1.bf16.msra.mxu1 %v8317_v47  ;;  %4355 = vmatprep.subr.bf16.mxu0 %v8182_v43  ;;  %v8406_v38 = vcombine.high %v675_v33, %v679_v16  ;;  %v539_v39 = vld [vmem:[#allocation5 + $0xd90] sm:$0xff]  ;;  %v8277_v47 = vcombine.low %v547_v28, %v551_v29  ;;  %v8405_v43 = vcombine.low %v675_v33, %v679_v16 }
 0x251   :  { %4398 = vmatprep.subr.bf16.mxu1 %v8310_v20  ;;  %v543_v40 = vld [vmem:[#allocation5 + $0xdb0] sm:$0xff] }
 0x252   :  { %v667_v41 = vld [vmem:[#allocation5 + $0x1190] sm:$0xff]  ;;  %v8270_v20 = vcombine.high %v539_v39, %v543_v40 }
 0x253   :  { %4356 = vmatpush1.bf16.msra.mxu0 %v8181_v1  ;;  %v671_v42 = vld [vmem:[#allocation5 + $0x11b0] sm:$0xff] }
 0x254   :  { %4399 = vmatpush1.bf16.msra.mxu1 %v8309_v2  ;;  %4357 = vmatprep.subr.bf16.mxu0 %v8174_v3  ;;  %v8398_v46 = vcombine.high %v667_v41, %v671_v42  ;;  %v531_v51 = vld [vmem:[#allocation5 + $0xd50] sm:$0xff]  ;;  %v8269_v2 = vcombine.low %v539_v39, %v543_v40  ;;  %v8397_v3 = vcombine.low %v667_v41, %v671_v42 }
 0x255   :  { %4400 = vmatprep.subr.bf16.mxu1 %v8302_v53  ;;  %v535_v56 = vld [vmem:[#allocation5 + $0xd70] sm:$0xff] }
 0x256   :  { %v659_v62 = vld [vmem:[#allocation5 + $0x1150] sm:$0xff]  ;;  %v8262_v53 = vcombine.high %v531_v51, %v535_v56 }
 0x257   :  { %4358 = vmatpush1.bf16.msra.mxu0 %v8173_v8  ;;  %v663_v1 = vld [vmem:[#allocation5 + $0x1170] sm:$0xff] }
 0x258   :  { %4401 = vmatpush1.bf16.msra.mxu1 %v8301_v14  ;;  %4359 = vmatprep.subr.bf16.mxu0 %v8166_v15  ;;  %v8390_v4 = vcombine.high %v659_v62, %v663_v1  ;;  %v523_v11 = vld [vmem:[#allocation5 + $0xd10] sm:$0xff]  ;;  %v8261_v14 = vcombine.low %v531_v51, %v535_v56  ;;  %v8389_v15 = vcombine.low %v659_v62, %v663_v1 }
 0x259   :  { %4402 = vmatprep.subr.bf16.mxu1 %v8294_v48  ;;  %v527_v6 = vld [vmem:[#allocation5 + $0xd30] sm:$0xff] }
 0x25a   :  { %v651_v7 = vld [vmem:[#allocation5 + $0x1110] sm:$0xff]  ;;  %v8254_v48 = vcombine.high %v523_v11, %v527_v6 }
 0x25b   :  { %4360 = vmatpush1.bf16.msra.mxu0 %v8165_v24  ;;  %v655_v8 = vld [vmem:[#allocation5 + $0x1130] sm:$0xff] }
 0x25c   :  { %4403 = vmatpush1.bf16.msra.mxu1 %v8293_v25  ;;  %4361 = vmatprep.subr.bf16.mxu0 %v8158_v26  ;;  %v8382_v49 = vcombine.high %v651_v7, %v655_v8  ;;  %v515_v44 = vld [vmem:[#allocation5 + $0xcd0] sm:$0xff]  ;;  %v8253_v25 = vcombine.low %v523_v11, %v527_v6  ;;  %v8381_v26 = vcombine.low %v651_v7, %v655_v8  ;;  %v228_v6 = vld [vmem:[#allocation5 + $0x3d8] sm:$0xff] }
 0x25d   :  { %4404 = vmatprep.subr.bf16.mxu1 %v8286_v27  ;;  %v519_v55 = vld [vmem:[#allocation5 + $0xcf0] sm:$0xff]  ;;  %v232_v7 = vld [vmem:[#allocation5 + $0x3f8] sm:$0xff] }
 0x25e   :  { %v643_v23 = vld [vmem:[#allocation5 + $0x10d0] sm:$0xff]  ;;  %v8246_v27 = vcombine.high %v515_v44, %v519_v55  ;;  %v356_v8 = vld [vmem:[#allocation5 + $0x7d8] sm:$0xff] }
 0x25f   :  { %4362 = vmatpush1.bf16.msra.mxu0 %v8157_v34  ;;  %v647_v24 = vld [vmem:[#allocation5 + $0x10f0] sm:$0xff] }
 0x260   :  { %4405 = vmatpush1.bf16.msra.mxu1 %v8285_v36  ;;  %4363 = vmatprep.subr.bf16.mxu0 %v8278_v37  ;;  %v8374_v28 = vcombine.high %v643_v23, %v647_v24  ;;  %v507_v29 = vld [vmem:[#allocation5 + $0xc90] sm:$0xff]  ;;  %v8245_v36 = vcombine.low %v515_v44, %v519_v55  ;;  %v8373_v37 = vcombine.low %v643_v23, %v647_v24  ;;  %v220_v55 = vld [vmem:[#allocation5 + $0x398] sm:$0xff] }
 0x261   :  { %4406 = vmatprep.subr.bf16.mxu1 %v8406_v38  ;;  %v511_v33 = vld [vmem:[#allocation5 + $0xcb0] sm:$0xff]  ;;  %v224_v23 = vld [vmem:[#allocation5 + $0x3b8] sm:$0xff]  ;;  %v1328_v24 = vrot.slane %v9708_v30, %v9630_v21 }
 0x262   :  { %v635_v16 = vld [vmem:[#allocation5 + $0x1090] sm:$0xff]  ;;  %v8238_v38 = vcombine.high %v507_v29, %v511_v33  ;;  %v344_v30 = vld [vmem:[#allocation5 + $0x778] sm:$0xff] }
 0x263   :  { %4364 = vmatpush2.bf16.msra.mxu0 %v8277_v47  ;;  %v639_v34 = vld [vmem:[#allocation5 + $0x10b0] sm:$0xff] }
 0x264   :  { %4407 = vmatpush2.bf16.msra.mxu1 %v8405_v43  ;;  %4365 = vmatprep.subr.bf16.mxu0 %v8270_v20  ;;  %v8366_v39 = vcombine.high %v635_v16, %v639_v34  ;;  %v499_v40 = vld [vmem:[#allocation5 + $0xc50] sm:$0xff]  ;;  %v8237_v43 = vcombine.low %v507_v29, %v511_v33  ;;  %v8365_v20 = vcombine.low %v635_v16, %v639_v34  ;;  %v9744_v33 = vpop.f32.mrf.mxu1  ;;  %v212_v34 = vld [vmem:[#allocation5 + $0x358] sm:$0xff] }
 0x265   :  { %4408 = vmatprep.subr.bf16.mxu1 %v8398_v46  ;;  %v503_v41 = vld [vmem:[#allocation5 + $0xc70] sm:$0xff]  ;;  %v7952_v16 = vcombine.high %v220_v55, %v224_v23 }
 0x266   :  { %v627_v42 = vld [vmem:[#allocation5 + $0x1050] sm:$0xff]  ;;  %v8230_v46 = vcombine.high %v499_v40, %v503_v41 }
 0x267   :  { %4366 = vmatpush2.bf16.msra.mxu0 %v8269_v2  ;;  %v631_v47 = vld [vmem:[#allocation5 + $0x1070] sm:$0xff] }
 0x268   :  { %4409 = vmatpush2.bf16.msra.mxu1 %v8397_v3  ;;  %4367 = vmatprep.subr.bf16.mxu0 %v8262_v53  ;;  %v8358_v51 = vcombine.high %v627_v42, %v631_v47  ;;  %v491_v56 = vld [vmem:[#allocation5 + $0xc10] sm:$0xff]  ;;  %v8229_v3 = vcombine.low %v499_v40, %v503_v41  ;;  %v8357_v53 = vcombine.low %v627_v42, %v631_v47 }
 0x269   :  { %4410 = vmatprep.subr.bf16.mxu1 %v8390_v4  ;;  %v495_v62 = vld [vmem:[#allocation5 + $0xc30] sm:$0xff]  ;;  %v7951_v42 = vcombine.low %v220_v55, %v224_v23 }
 0x26a   :  { %v619_v1 = vld [vmem:[#allocation5 + $0x1010] sm:$0xff]  ;;  %v8222_v4 = vcombine.high %v491_v56, %v495_v62 }
 0x26b   :  { %4368 = vmatpush2.bf16.msra.mxu0 %v8261_v14  ;;  %v623_v2 = vld [vmem:[#allocation5 + $0x1030] sm:$0xff]  ;;  %v360_v14 = vld [vmem:[#allocation5 + $0x7f8] sm:$0xff] }
 0x26c   :  { %4411 = vmatpush2.bf16.msra.mxu1 %v8389_v15  ;;  %4369 = vmatprep.subr.bf16.mxu0 %v8254_v48  ;;  %v8350_v11 = vcombine.high %v619_v1, %v623_v2  ;;  %v8221_v15 = vcombine.low %v491_v56, %v495_v62  ;;  %v8349_v48 = vcombine.low %v619_v1, %v623_v2  ;;  %v204_v62 = vld [vmem:[#allocation5 + $0x318] sm:$0xff] }
 0x26d   :  { %4412 = vmatprep.subr.bf16.mxu1 %v8382_v49  ;;  %v7960_v49 = vcombine.high %v228_v6, %v232_v7  ;;  %v8088_v44 = vcombine.high %v356_v8, %v360_v14  ;;  %v8087_v29 = vcombine.low %v356_v8, %v360_v14  ;;  %v208_v1 = vld [vmem:[#allocation5 + $0x338] sm:$0xff] }
 0x26e   :  { %v196_v14 = vld [vmem:[#allocation5 + $0x2d8] sm:$0xff] }
 0x26f   :  { %4370 = vmatpush2.bf16.msra.mxu0 %v8253_v25  ;;  %v7959_v25 = vcombine.low %v228_v6, %v232_v7  ;;  %v7936_v7 = vcombine.high %v204_v62, %v208_v1 }
 0x270   :  { %4413 = vmatpush2.bf16.msra.mxu1 %v8381_v26  ;;  %4371 = vmatprep.subr.bf16.mxu0 %v8246_v27  ;;  %v348_v26 = vld [vmem:[#allocation5 + $0x798] sm:$0xff] }
 0x271   :  { %4414 = vmatprep.subr.bf16.mxu1 %v8374_v28  ;;  %v352_v27 = vld [vmem:[#allocation5 + $0x7b8] sm:$0xff]  ;;  %v9742_v28 = vpop.f32.mrf.mxu0 }
 0x273   :  { %4372 = vmatpush2.bf16.msra.mxu0 %v8245_v36  ;;  %v216_v36 = vld [vmem:[#allocation5 + $0x378] sm:$0xff] }
 0x274   :  { %4415 = vmatpush2.bf16.msra.mxu1 %v8373_v37  ;;  %4373 = vmatprep.subr.bf16.mxu0 %v8238_v38  ;;  %v8080_v38 = vcombine.high %v348_v26, %v352_v27 }
 0x275   :  { %4416 = vmatprep.subr.bf16.mxu1 %v8366_v39  ;;  %v340_v39 = vld [vmem:[#allocation5 + $0x758] sm:$0xff] }
 0x276   :  { %v8072_v56 = vcombine.high %v340_v39, %v344_v30  ;;  %v8071_v6 = vcombine.low %v340_v39, %v344_v30  ;;  %v184_v39 = vld [vmem:[#allocation5 + $0x278] sm:$0xff] }
 0x277   :  { %4374 = vmatpush2.bf16.msra.mxu0 %v8237_v43  ;;  %v8079_v43 = vcombine.low %v348_v26, %v352_v27  ;;  %v192_v26 = vld [vmem:[#allocation5 + $0x2b8] sm:$0xff] }
 0x278   :  { %4417 = vmatpush2.bf16.msra.mxu1 %v8365_v20  ;;  %4375 = vmatprep.subr.bf16.mxu0 %v8230_v46  ;;  %v7944_v20 = vcombine.high %v212_v34, %v216_v36  ;;  %v316_v27 = vld [vmem:[#allocation5 + $0x698] sm:$0xff] }
 0x279   :  { %4418 = vmatprep.subr.bf16.mxu1 %v8358_v51  ;;  %v308_v30 = vld [vmem:[#allocation5 + $0x658] sm:$0xff] }
 0x27b   :  { %4376 = vmatpush2.bf16.msra.mxu0 %v8229_v3  ;;  %v332_v3 = vld [vmem:[#allocation5 + $0x718] sm:$0xff] }
 0x27c   :  { %4419 = vmatpush2.bf16.msra.mxu1 %v8357_v53  ;;  %4377 = vmatprep.subr.bf16.mxu0 %v8222_v4  ;;  %v336_v53 = vld [vmem:[#allocation5 + $0x738] sm:$0xff]  ;;  %v7943_v4 = vcombine.low %v212_v34, %v216_v36 }
 0x27d   :  { %4420 = vmatprep.subr.bf16.mxu1 %v8350_v11  ;;  %v8063_v55 = vcombine.low %v332_v3, %v336_v53 }
 0x27f   :  { %4378 = vmatpush2.bf16.msra.mxu0 %v8221_v15  ;;  %v200_v15 = vld [vmem:[#allocation5 + $0x2f8] sm:$0xff] }
 0x280   :  { %4421 = vmatpush2.bf16.msra.mxu1 %v8349_v48  ;;  %4433 = vmatprep.subr.bf16.mxu0 %v7960_v49  ;;  %v324_v48 = vld [vmem:[#allocation5 + $0x6d8] sm:$0xff]  ;;  %v7928_v23 = vcombine.high %v196_v14, %v200_v15 }
 0x281   :  { %4476 = vmatprep.subr.bf16.mxu1 %v8088_v44  ;;  %v328_v49 = vld [vmem:[#allocation5 + $0x6f8] sm:$0xff]  ;;  %v7935_v44 = vcombine.low %v204_v62, %v208_v1 }
 0x282   :  { %v4123_v37 = vpop.f32.mrf.mxu0  ;;  %4380 = vmatmul.mubr.bf16.vlgmr.msra.gmra.mxu0 %v9696_v9  ;;  %v8055_v34 = vcombine.low %v324_v48, %v328_v49  ;;  %v176_v62 = vld [vmem:[#allocation5 + $0x238] sm:$0xff] }
 0x283   :  { %v4124_v40 = vadd.f32 %v4123_v37, %v1328_v24  ;;  %v4166_v41 = vpop.f32.mrf.mxu1  ;;  %4423 = vmatmul.mubr.bf16.vlgmr.msra.gmra.mxu1 %v9698_v13  ;;  %4434 = vmatpush1.bf16.msra.mxu0 %v7959_v25  ;;  %v188_v25 = vld [vmem:[#allocation5 + $0x298] sm:$0xff] }
 0x284   :  { %4465 = vmatprep.mubr.bf16.mxu0 %v9640_v59  ;;  %4477 = vmatpush1.bf16.msra.mxu1 %v8087_v29  ;;  %v9749_v47 = vpop.f32.mrf.mxu0  ;;  %v320_v29 = vld [vmem:[#allocation5 + $0x6b8] sm:$0xff]  ;;  %v7920_v36 = vcombine.high %v188_v25, %v192_v26 }
 0x285   :  { %v9751_v46 = vadd.f32 %v4166_v41, %v4124_v40  ;;  %4508 = vmatprep.mubr.bf16.mxu1 %v9644_v61  ;;  %v9754_v51 = vpop.f32.mrf.mxu1  ;;  %4435 = vmatprep.subr.bf16.mxu0 %v7952_v16  ;;  %v8064_v61 = vcombine.high %v332_v3, %v336_v53  ;;  %v7927_v16 = vcombine.low %v196_v14, %v200_v15  ;;  %v312_v40 = vld [vmem:[#allocation5 + $0x678] sm:$0xff] }
 0x286   :  { %v4127_v2 = vpop.f32.mrf.mxu0  ;;  %4478 = vmatprep.subr.bf16.mxu1 %v8080_v38  ;;  %v8048_v37 = vcombine.high %v316_v27, %v320_v29  ;;  %v180_v38 = vld [vmem:[#allocation5 + $0x258] sm:$0xff]  ;;  %v7919_v41 = vcombine.low %v188_v25, %v192_v26  ;;  %v8039_v53 = vcombine.low %v308_v30, %v312_v40 }
 0x287   :  { %v4128_v59 = vadd.f32 %v4127_v2, %v1328_v24  ;;  %4436 = vmatpush1.bf16.msra.mxu0 %v7951_v42  ;;  %v4170_v11 = vpop.f32.mrf.mxu1  ;;  %v8056_v24 = vcombine.high %v324_v48, %v328_v49  ;;  %v8047_v42 = vcombine.low %v316_v27, %v320_v29  ;;  %v300_v1 = vld [vmem:[#allocation5 + $0x618] sm:$0xff]  ;;  %v7911_v3 = vcombine.low %v180_v38, %v184_v39 }
 0x288   :  { %4479 = vmatpush1.bf16.msra.mxu1 %v8079_v43  ;;  %4437 = vmatprep.subr.bf16.mxu0 %v7944_v20  ;;  %v7912_v43 = vcombine.high %v180_v38, %v184_v39  ;;  %v8040_v20 = vcombine.high %v308_v30, %v312_v40  ;;  %v304_v2 = vld [vmem:[#allocation5 + $0x638] sm:$0xff] }
 0x289   :  { %v9756_v8 = vadd.f32 %v4170_v11, %v4128_v59  ;;  %4480 = vmatprep.subr.bf16.mxu1 %v8072_v56  ;;  %v172_v56 = vld [vmem:[#allocation5 + $0x218] sm:$0xff]  ;;  %v8031_v15 = vcombine.low %v300_v1, %v304_v2 }
 0x28a   :  { %v7904_v59 = vcombine.high %v172_v56, %v176_v62  ;;  %v292_v11 = vld [vmem:[#allocation5 + $0x5d8] sm:$0xff]  ;;  %v7903_v14 = vcombine.low %v172_v56, %v176_v62 }
 0x28b   :  { %4438 = vmatpush1.bf16.msra.mxu0 %v7943_v4  ;;  %v8032_v4 = vcombine.high %v300_v1, %v304_v2 }
 0x28c   :  { %4481 = vmatpush1.bf16.msra.mxu1 %v8071_v6  ;;  %4439 = vmatprep.subr.bf16.mxu0 %v7936_v7  ;;  %v296_v6 = vld [vmem:[#allocation5 + $0x5f8] sm:$0xff] }
 0x28d   :  { %4482 = vmatprep.subr.bf16.mxu1 %v8064_v61  ;;  %v420_v7 = vld [vmem:[#allocation5 + $0x9d8] sm:$0xff]  ;;  %v8024_v48 = vcombine.high %v292_v11, %v296_v6  ;;  %v8023_v25 = vcombine.low %v292_v11, %v296_v6 }
 0x28e   :  { %v424_v61 = vld [vmem:[#allocation5 + $0x9f8] sm:$0xff] }
 0x28f   :  { %4440 = vmatpush1.bf16.msra.mxu0 %v7935_v44  ;;  %v8152_v49 = vcombine.high %v420_v7, %v424_v61  ;;  %v284_v44 = vld [vmem:[#allocation5 + $0x598] sm:$0xff]  ;;  %v8151_v26 = vcombine.low %v420_v7, %v424_v61 }
 0x290   :  { %4483 = vmatpush1.bf16.msra.mxu1 %v8063_v55  ;;  %4441 = vmatprep.subr.bf16.mxu0 %v7928_v23  ;;  %v288_v55 = vld [vmem:[#allocation5 + $0x5b8] sm:$0xff] }
 0x291   :  { %4484 = vmatprep.subr.bf16.mxu1 %v8056_v24  ;;  %v412_v23 = vld [vmem:[#allocation5 + $0x998] sm:$0xff]  ;;  %v8016_v27 = vcombine.high %v284_v44, %v288_v55  ;;  %v8015_v38 = vcombine.low %v284_v44, %v288_v55 }
 0x292   :  { %v416_v24 = vld [vmem:[#allocation5 + $0x9b8] sm:$0xff] }
 0x293   :  { %4442 = vmatpush1.bf16.msra.mxu0 %v7927_v16  ;;  %v8144_v29 = vcombine.high %v412_v23, %v416_v24  ;;  %v276_v16 = vld [vmem:[#allocation5 + $0x558] sm:$0xff]  ;;  %v8143_v39 = vcombine.low %v412_v23, %v416_v24 }
 0x294   :  { %4485 = vmatpush1.bf16.msra.mxu1 %v8055_v34  ;;  %4443 = vmatprep.subr.bf16.mxu0 %v7920_v36  ;;  %v280_v34 = vld [vmem:[#allocation5 + $0x578] sm:$0xff] }
 0x295   :  { %4486 = vmatprep.subr.bf16.mxu1 %v8048_v37  ;;  %v404_v36 = vld [vmem:[#allocation5 + $0x958] sm:$0xff]  ;;  %v8008_v30 = vcombine.high %v276_v16, %v280_v34  ;;  %v8007_v56 = vcombine.low %v276_v16, %v280_v34 }
 0x296   :  { %v408_v37 = vld [vmem:[#allocation5 + $0x978] sm:$0xff] }
 0x297   :  { %4444 = vmatpush1.bf16.msra.mxu0 %v7919_v41  ;;  %v8136_v40 = vcombine.high %v404_v36, %v408_v37  ;;  %v268_v41 = vld [vmem:[#allocation5 + $0x518] sm:$0xff]  ;;  %v8135_v62 = vcombine.low %v404_v36, %v408_v37 }
 0x298   :  { %4487 = vmatpush1.bf16.msra.mxu1 %v8047_v42  ;;  %4445 = vmatprep.subr.bf16.mxu0 %v7912_v43  ;;  %v272_v42 = vld [vmem:[#allocation5 + $0x538] sm:$0xff] }
 0x299   :  { %4488 = vmatprep.subr.bf16.mxu1 %v8040_v20  ;;  %v396_v43 = vld [vmem:[#allocation5 + $0x918] sm:$0xff]  ;;  %v8000_v1 = vcombine.high %v268_v41, %v272_v42  ;;  %v7999_v11 = vcombine.low %v268_v41, %v272_v42 }
 0x29a   :  { %v400_v20 = vld [vmem:[#allocation5 + $0x938] sm:$0xff] }
 0x29b   :  { %4446 = vmatpush1.bf16.msra.mxu0 %v7911_v3  ;;  %v8128_v2 = vcombine.high %v396_v43, %v400_v20  ;;  %v260_v3 = vld [vmem:[#allocation5 + $0x4d8] sm:$0xff]  ;;  %v8127_v6 = vcombine.low %v396_v43, %v400_v20 }
 0x29c   :  { %4489 = vmatpush1.bf16.msra.mxu1 %v8039_v53  ;;  %4447 = vmatprep.subr.bf16.mxu0 %v7904_v59  ;;  %v264_v53 = vld [vmem:[#allocation5 + $0x4f8] sm:$0xff] }
 0x29d   :  { %4490 = vmatprep.subr.bf16.mxu1 %v8032_v4  ;;  %v388_v59 = vld [vmem:[#allocation5 + $0x8d8] sm:$0xff]  ;;  %v7992_v7 = vcombine.high %v260_v3, %v264_v53  ;;  %v7991_v44 = vcombine.low %v260_v3, %v264_v53 }
 0x29e   :  { %v392_v4 = vld [vmem:[#allocation5 + $0x8f8] sm:$0xff] }
 0x29f   :  { %4448 = vmatpush1.bf16.msra.mxu0 %v7903_v14  ;;  %v8120_v61 = vcombine.high %v388_v59, %v392_v4  ;;  %v252_v14 = vld [vmem:[#allocation5 + $0x498] sm:$0xff]  ;;  %v8119_v55 = vcombine.low %v388_v59, %v392_v4 }
 0x2a0   :  { %4491 = vmatpush1.bf16.msra.mxu1 %v8031_v15  ;;  %4449 = vmatprep.subr.bf16.mxu0 %v8024_v48  ;;  %v256_v15 = vld [vmem:[#allocation5 + $0x4b8] sm:$0xff] }
 0x2a1   :  { %4492 = vmatprep.subr.bf16.mxu1 %v8152_v49  ;;  %v380_v48 = vld [vmem:[#allocation5 + $0x898] sm:$0xff]  ;;  %v7984_v23 = vcombine.high %v252_v14, %v256_v15  ;;  %v7983_v16 = vcombine.low %v252_v14, %v256_v15  ;;  %v9758_v15 = vpop.f32.mrf.mxu0 }
 0x2a2   :  { %v384_v49 = vld [vmem:[#allocation5 + $0x8b8] sm:$0xff] }
 0x2a3   :  { %4450 = vmatpush2.bf16.msra.mxu0 %v8023_v25  ;;  %v8112_v24 = vcombine.high %v380_v48, %v384_v49  ;;  %v244_v25 = vld [vmem:[#allocation5 + $0x458] sm:$0xff]  ;;  %v8111_v34 = vcombine.low %v380_v48, %v384_v49  ;;  %v9760_v49 = vpop.f32.mrf.mxu1 }
 0x2a4   :  { %4493 = vmatpush2.bf16.msra.mxu1 %v8151_v26  ;;  %4451 = vmatprep.subr.bf16.mxu0 %v8016_v27  ;;  %v248_v26 = vld [vmem:[#allocation5 + $0x478] sm:$0xff] }
 0x2a5   :  { %4494 = vmatprep.subr.bf16.mxu1 %v8144_v29  ;;  %v372_v27 = vld [vmem:[#allocation5 + $0x858] sm:$0xff]  ;;  %v7976_v36 = vcombine.high %v244_v25, %v248_v26  ;;  %v7975_v41 = vcombine.low %v244_v25, %v248_v26 }
 0x2a6   :  { %v376_v29 = vld [vmem:[#allocation5 + $0x878] sm:$0xff] }
 0x2a7   :  { %4452 = vmatpush2.bf16.msra.mxu0 %v8015_v38  ;;  %v8104_v37 = vcombine.high %v372_v27, %v376_v29  ;;  %v236_v38 = vld [vmem:[#allocation5 + $0x418] sm:$0xff]  ;;  %v8103_v42 = vcombine.low %v372_v27, %v376_v29 }
 0x2a8   :  { %4495 = vmatpush2.bf16.msra.mxu1 %v8143_v39  ;;  %4453 = vmatprep.subr.bf16.mxu0 %v8008_v30  ;;  %v240_v39 = vld [vmem:[#allocation5 + $0x438] sm:$0xff] }
 0x2a9   :  { %4496 = vmatprep.subr.bf16.mxu1 %v8136_v40  ;;  %v364_v30 = vld [vmem:[#allocation5 + $0x818] sm:$0xff]  ;;  %v7968_v43 = vcombine.high %v236_v38, %v240_v39  ;;  %v7967_v3 = vcombine.low %v236_v38, %v240_v39 }
 0x2aa   :  { %v368_v40 = vld [vmem:[#allocation5 + $0x838] sm:$0xff] }
 0x2ab   :  { %4454 = vmatpush2.bf16.msra.mxu0 %v8007_v56  ;;  %v8096_v20 = vcombine.high %v364_v30, %v368_v40  ;;  %v484_v56 = vld [vmem:[#allocation5 + $0xbd8] sm:$0xff]  ;;  %v8095_v53 = vcombine.low %v364_v30, %v368_v40 }
 0x2ac   :  { %4497 = vmatpush2.bf16.msra.mxu1 %v8135_v62  ;;  %4455 = vmatprep.subr.bf16.mxu0 %v8000_v1  ;;  %v488_v62 = vld [vmem:[#allocation5 + $0xbf8] sm:$0xff] }
 0x2ad   :  { %4498 = vmatprep.subr.bf16.mxu1 %v8128_v2  ;;  %v612_v1 = vld [vmem:[#allocation5 + $0xfd8] sm:$0xff]  ;;  %v8216_v59 = vcombine.high %v484_v56, %v488_v62 }
 0x2ae   :  { %v616_v2 = vld [vmem:[#allocation5 + $0xff8] sm:$0xff] }
 0x2af   :  { %4456 = vmatpush2.bf16.msra.mxu0 %v7999_v11  ;;  %v8344_v4 = vcombine.high %v612_v1, %v616_v2  ;;  %v476_v11 = vld [vmem:[#allocation5 + $0xb98] sm:$0xff]  ;;  %v8343_v48 = vcombine.low %v612_v1, %v616_v2 }
 0x2b0   :  { %4499 = vmatpush2.bf16.msra.mxu1 %v8127_v6  ;;  %4457 = vmatprep.subr.bf16.mxu0 %v7992_v7  ;;  %v480_v6 = vld [vmem:[#allocation5 + $0xbb8] sm:$0xff]  ;;  %v8215_v7 = vcombine.low %v484_v56, %v488_v62 }
 0x2b1   :  { %4500 = vmatprep.subr.bf16.mxu1 %v8120_v61  ;;  %v604_v61 = vld [vmem:[#allocation5 + $0xf98] sm:$0xff] }
 0x2b2   :  { %v608_v14 = vld [vmem:[#allocation5 + $0xfb8] sm:$0xff] }
 0x2b3   :  { %4458 = vmatpush2.bf16.msra.mxu0 %v7991_v44  ;;  %v8208_v44 = vcombine.high %v476_v11, %v480_v6  ;;  %v8336_v25 = vcombine.high %v604_v61, %v608_v14  ;;  %v596_v26 = vld [vmem:[#allocation5 + $0xf58] sm:$0xff] }
 0x2b4   :  { %4501 = vmatpush2.bf16.msra.mxu1 %v8119_v55  ;;  %4459 = vmatprep.subr.bf16.mxu0 %v7984_v23  ;;  %v468_v55 = vld [vmem:[#allocation5 + $0xb58] sm:$0xff] }
 0x2b5   :  { %4502 = vmatprep.subr.bf16.mxu1 %v8112_v24  ;;  %v472_v23 = vld [vmem:[#allocation5 + $0xb78] sm:$0xff] }
 0x2b6   :  { %v600_v27 = vld [vmem:[#allocation5 + $0xf78] sm:$0xff]  ;;  %v8200_v38 = vcombine.high %v468_v55, %v472_v23 }
 0x2b7   :  { %4460 = vmatpush2.bf16.msra.mxu0 %v7983_v16  ;;  %v8328_v30 = vcombine.high %v596_v26, %v600_v27  ;;  %v464_v40 = vld [vmem:[#allocation5 + $0xb38] sm:$0xff]  ;;  %v8327_v56 = vcombine.low %v596_v26, %v600_v27 }
 0x2b8   :  { %4503 = vmatpush2.bf16.msra.mxu1 %v8111_v34  ;;  %4461 = vmatprep.subr.bf16.mxu0 %v7976_v36  ;;  %v8207_v34 = vcombine.low %v476_v11, %v480_v6  ;;  %v452_v2 = vld [vmem:[#allocation5 + $0xad8] sm:$0xff] }
 0x2b9   :  { %4504 = vmatprep.subr.bf16.mxu1 %v8104_v37  ;;  %v8335_v37 = vcombine.low %v604_v61, %v608_v14 }
 0x2bb   :  { %4462 = vmatpush2.bf16.msra.mxu0 %v7975_v41 }
 0x2bc   :  { %4505 = vmatpush2.bf16.msra.mxu1 %v8103_v42  ;;  %4463 = vmatprep.subr.bf16.mxu0 %v7968_v43  ;;  %v592_v42 = vld [vmem:[#allocation5 + $0xf38] sm:$0xff]  ;;  %v8199_v43 = vcombine.low %v468_v55, %v472_v23 }
 0x2bd   :  { %4506 = vmatprep.subr.bf16.mxu1 %v8096_v20  ;;  %v572_v55 = vld [vmem:[#allocation5 + $0xe98] sm:$0xff] }
 0x2be   :  { %v576_v23 = vld [vmem:[#allocation5 + $0xeb8] sm:$0xff] }
 0x2bf   :  { %4464 = vmatpush2.bf16.msra.mxu0 %v7967_v3  ;;  %v456_v3 = vld [vmem:[#allocation5 + $0xaf8] sm:$0xff]  ;;  %v8304_v27 = vcombine.high %v572_v55, %v576_v23 }
 0x2c0   :  { %4507 = vmatpush2.bf16.msra.mxu1 %v8095_v53  ;;  %4519 = vmatprep.subr.bf16.mxu0 %v8216_v59  ;;  %v580_v53 = vld [vmem:[#allocation5 + $0xed8] sm:$0xff] }
 0x2c1   :  { %4562 = vmatprep.subr.bf16.mxu1 %v8344_v4  ;;  %v584_v59 = vld [vmem:[#allocation5 + $0xef8] sm:$0xff] }
 0x2c2   :  { %v4209_v24 = vpop.f32.mrf.mxu0  ;;  %4466 = vmatmul.mubr.bf16.vlgmr.msra.gmra.mxu0 %v9642_v60  ;;  %v8312_v14 = vcombine.high %v580_v53, %v584_v59 }
 0x2c3   :  { %v4210_v29 = vadd.f32 %v4209_v24, %v9751_v46  ;;  %v4252_v16 = vpop.f32.mrf.mxu1  ;;  %4509 = vmatmul.mubr.bf16.vlgmr.msra.gmra.mxu1 %v9646_v63  ;;  %4520 = vmatpush1.bf16.msra.mxu0 %v8215_v7  ;;  %v460_v46 = vld [vmem:[#allocation5 + $0xb18] sm:$0xff]  ;;  %v8184_v7 = vcombine.high %v452_v2, %v456_v3  ;;  %v8183_v24 = vcombine.low %v452_v2, %v456_v3 }
 0x2c4   :  { %4551 = vmatprep.mubr.bf16.mxu0 %v9676_v31  ;;  %4563 = vmatpush1.bf16.msra.mxu1 %v8343_v48  ;;  %v9766_v36 = vpop.f32.mrf.mxu0  ;;  %v588_v63 = vld [vmem:[#allocation5 + $0xf18] sm:$0xff]  ;;  %v8192_v62 = vcombine.high %v460_v46, %v464_v40  ;;  %v8191_v6 = vcombine.low %v460_v46, %v464_v40 }
 0x2c5   :  { %v4253_v39 = vadd.f32 %v4252_v16, %v4210_v29  ;;  %4594 = vmatprep.mubr.bf16.mxu1 %v9678_v35  ;;  %v9769_v60 = vpop.f32.mrf.mxu1  ;;  %4521 = vmatprep.subr.bf16.mxu0 %v8208_v44  ;;  %v8320_v1 = vcombine.high %v588_v63, %v592_v42  ;;  %v444_v48 = vld [vmem:[#allocation5 + $0xa98] sm:$0xff] }
 0x2c6   :  { %v4213_v41 = vpop.f32.mrf.mxu0  ;;  %4564 = vmatprep.subr.bf16.mxu1 %v8336_v25  ;;  %v448_v44 = vld [vmem:[#allocation5 + $0xab8] sm:$0xff]  ;;  %v8311_v25 = vcombine.low %v580_v53, %v584_v59 }
 0x2c7   :  { %v4214_v31 = vadd.f32 %v4213_v41, %v9756_v8  ;;  %4522 = vmatpush1.bf16.msra.mxu0 %v8207_v34  ;;  %v4256_v20 = vpop.f32.mrf.mxu1  ;;  %v4607_v4 = vmax.f32 %v4253_v39, 0.0  ;;  %v8319_v8 = vcombine.low %v588_v63, %v592_v42  ;;  %v8176_v26 = vcombine.high %v444_v48, %v448_v44  ;;  %v436_v29 = vld [vmem:[#allocation5 + $0xa58] sm:$0xff] }
 0x2c8   :  { %4565 = vmatpush1.bf16.msra.mxu1 %v8335_v37  ;;  %4523 = vmatprep.subr.bf16.mxu0 %v8200_v38  ;;  %v440_v16 = vld [vmem:[#allocation5 + $0xa78] sm:$0xff]  ;;  %v8175_v38 = vcombine.low %v444_v48, %v448_v44  ;;  %v8303_v39 = vcombine.low %v572_v55, %v576_v23 }
 0x2c9   :  { %v4257_v35 = vadd.f32 %v4256_v20, %v4214_v31  ;;  %4566 = vmatprep.subr.bf16.mxu1 %v8328_v30  ;;  %v564_v34 = vld [vmem:[#allocation5 + $0xe58] sm:$0xff]  ;;  %v8168_v30 = vcombine.high %v436_v29, %v440_v16  ;;  %v8167_v31 = vcombine.low %v436_v29, %v440_v16 }
 0x2ca   :  { %v568_v37 = vld [vmem:[#allocation5 + $0xe78] sm:$0xff] }
 0x2cb   :  { %v4615_v11 = vmax.f32 %v4257_v35, 0.0  ;;  %4524 = vmatpush1.bf16.msra.mxu0 %v8199_v43  ;;  %v8296_v46 = vcombine.high %v564_v34, %v568_v37  ;;  %v428_v40 = vld [vmem:[#allocation5 + $0xa18] sm:$0xff]  ;;  %v8295_v43 = vcombine.low %v564_v34, %v568_v37 }
 0x2cc   :  { %4567 = vmatpush1.bf16.msra.mxu1 %v8327_v56  ;;  %4525 = vmatprep.subr.bf16.mxu0 %v8192_v62  ;;  %v432_v41 = vld [vmem:[#allocation5 + $0xa38] sm:$0xff] }
 0x2cd   :  { %v9772_v61 = vpack.c.bf16 %v4615_v11, %v4607_v4  ;;  %4568 = vmatprep.subr.bf16.mxu1 %v8320_v1  ;;  %v556_v63 = vld [vmem:[#allocation5 + $0xe18] sm:$0xff]  ;;  %v8160_v20 = vcombine.high %v428_v40, %v432_v41  ;;  %v8159_v3 = vcombine.low %v428_v40, %v432_v41 }
 0x2ce   :  { %v560_v42 = vld [vmem:[#allocation5 + $0xe38] sm:$0xff] }
 0x2cf   :  { %4526 = vmatpush1.bf16.msra.mxu0 %v8191_v6  ;;  %v8288_v56 = vcombine.high %v556_v63, %v560_v42  ;;  %v548_v62 = vld [vmem:[#allocation5 + $0xdd8] sm:$0xff]  ;;  %v8287_v53 = vcombine.low %v556_v63, %v560_v42 }
 0x2d0   :  { %4569 = vmatpush1.bf16.msra.mxu1 %v8319_v8  ;;  %4527 = vmatprep.subr.bf16.mxu0 %v8184_v7  ;;  %v552_v35 = vld [vmem:[#allocation5 + $0xdf8] sm:$0xff] }
 0x2d1   :  { %4570 = vmatprep.subr.bf16.mxu1 %v8312_v14  ;;  %v676_v1 = vld [vmem:[#allocation5 + $0x11d8] sm:$0xff]  ;;  %v8280_v59 = vcombine.high %v548_v62, %v552_v35  ;;  %v8279_v14 = vcombine.low %v548_v62, %v552_v35 }
 0x2d2   :  { %v680_v2 = vld [vmem:[#allocation5 + $0x11f8] sm:$0xff] }
 0x2d3   :  { %4528 = vmatpush1.bf16.msra.mxu0 %v8183_v24  ;;  %v8408_v4 = vcombine.high %v676_v1, %v680_v2  ;;  %v540_v11 = vld [vmem:[#allocation5 + $0xd98] sm:$0xff]  ;;  %v8407_v48 = vcombine.low %v676_v1, %v680_v2 }
 0x2d4   :  { %4571 = vmatpush1.bf16.msra.mxu1 %v8311_v25  ;;  %4529 = vmatprep.subr.bf16.mxu0 %v8176_v26  ;;  %v544_v6 = vld [vmem:[#allocation5 + $0xdb8] sm:$0xff] }
 0x2d5   :  { %4572 = vmatprep.subr.bf16.mxu1 %v8304_v27  ;;  %v668_v8 = vld [vmem:[#allocation5 + $0x1198] sm:$0xff]  ;;  %v8272_v44 = vcombine.high %v540_v11, %v544_v6  ;;  %v8271_v27 = vcombine.low %v540_v11, %v544_v6 }
 0x2d6   :  { %v672_v7 = vld [vmem:[#allocation5 + $0x11b8] sm:$0xff] }
 0x2d7   :  { %4530 = vmatpush1.bf16.msra.mxu0 %v8175_v38  ;;  %v8400_v55 = vcombine.high %v668_v8, %v672_v7  ;;  %v532_v23 = vld [vmem:[#allocation5 + $0xd58] sm:$0xff]  ;;  %v8399_v29 = vcombine.low %v668_v8, %v672_v7 }
 0x2d8   :  { %4573 = vmatpush1.bf16.msra.mxu1 %v8303_v39  ;;  %4531 = vmatprep.subr.bf16.mxu0 %v8168_v30  ;;  %v536_v24 = vld [vmem:[#allocation5 + $0xd78] sm:$0xff] }
 0x2d9   :  { %4574 = vmatprep.subr.bf16.mxu1 %v8296_v46  ;;  %v660_v25 = vld [vmem:[#allocation5 + $0x1158] sm:$0xff]  ;;  %v8264_v16 = vcombine.high %v532_v23, %v536_v24  ;;  %v8263_v46 = vcombine.low %v532_v23, %v536_v24 }
 0x2da   :  { %v664_v26 = vld [vmem:[#allocation5 + $0x1178] sm:$0xff] }
 0x2db   :  { %4532 = vmatpush1.bf16.msra.mxu0 %v8167_v31  ;;  %v8392_v34 = vcombine.high %v660_v25, %v664_v26  ;;  %v524_v37 = vld [vmem:[#allocation5 + $0xd18] sm:$0xff]  ;;  %v8391_v40 = vcombine.low %v660_v25, %v664_v26 }
 0x2dc   :  { %4575 = vmatpush1.bf16.msra.mxu1 %v8295_v43  ;;  %4533 = vmatprep.subr.bf16.mxu0 %v8160_v20  ;;  %v528_v38 = vld [vmem:[#allocation5 + $0xd38] sm:$0xff] }
 0x2dd   :  { %4576 = vmatprep.subr.bf16.mxu1 %v8288_v56  ;;  %v652_v39 = vld [vmem:[#allocation5 + $0x1118] sm:$0xff]  ;;  %v8256_v41 = vcombine.high %v524_v37, %v528_v38  ;;  %v8255_v56 = vcombine.low %v524_v37, %v528_v38 }
 0x2de   :  { %v656_v30 = vld [vmem:[#allocation5 + $0x1138] sm:$0xff] }
 0x2df   :  { %4534 = vmatpush1.bf16.msra.mxu0 %v8159_v3  ;;  %v8384_v63 = vcombine.high %v652_v39, %v656_v30  ;;  %v516_v42 = vld [vmem:[#allocation5 + $0xcd8] sm:$0xff]  ;;  %v8383_v62 = vcombine.low %v652_v39, %v656_v30 }
 0x2e0   :  { %4577 = vmatpush1.bf16.msra.mxu1 %v8287_v53  ;;  %4535 = vmatprep.subr.bf16.mxu0 %v8280_v59  ;;  %v520_v31 = vld [vmem:[#allocation5 + $0xcf8] sm:$0xff]  ;;  %v9774_v53 = vld [vmem:[#allocation11 + $0x8] sm:$0xff] }
 0x2e1   :  { %4578 = vmatprep.subr.bf16.mxu1 %v8408_v4  ;;  %v644_v43 = vld [vmem:[#allocation5 + $0x10d8] sm:$0xff]  ;;  %v8248_v35 = vcombine.high %v516_v42, %v520_v31  ;;  %v1324_v59 = vrot.slane %v9774_v53, %v9619_v17  ;;  %v1332_v6 = vrot.slane %v9774_v53, %v9625_v19  ;;  %v8247_v8 = vcombine.low %v516_v42, %v520_v31 }
 0x2e2   :  { %v648_v20 = vld [vmem:[#allocation5 + $0x10f8] sm:$0xff] }
 0x2e3   :  { %4536 = vmatpush2.bf16.msra.mxu0 %v8279_v14  ;;  %v8376_v1 = vcombine.high %v644_v43, %v648_v20  ;;  %v508_v2 = vld [vmem:[#allocation5 + $0xc98] sm:$0xff]  ;;  %v3958_v7 = vadd.f32 %v9724_v52, %v1324_v59  ;;  %v8375_v14 = vcombine.low %v644_v43, %v648_v20  ;;  %v3954_v25 = vadd.f32 %v9715_v58, %v1324_v59 }
 0x2e4   :  { %4579 = vmatpush2.bf16.msra.mxu1 %v8407_v48  ;;  %4537 = vmatprep.subr.bf16.mxu0 %v8272_v44  ;;  %v512_v3 = vld [vmem:[#allocation5 + $0xcb8] sm:$0xff]  ;;  %v4130_v44 = vadd.f32 %v9758_v15, %v1332_v6 }
 0x2e5   :  { %4580 = vmatprep.subr.bf16.mxu1 %v8400_v55  ;;  %v636_v4 = vld [vmem:[#allocation5 + $0x1098] sm:$0xff]  ;;  %v8240_v48 = vcombine.high %v508_v2, %v512_v3  ;;  %v4001_v52 = vadd.f32 %v9726_v57, %v3958_v7  ;;  %v3997_v58 = vadd.f32 %v9720_v5, %v3954_v25  ;;  %v8876_v7 = vld [vmem:[#allocation7 + $0x2c4] ss:$16 sps:$4 sm:$0xff]   ;;  %v8883_v25 = vld [vmem:[#allocation7 + $0x80] ss:$16 sps:$4 sm:$0xff]  }
 0x2e6   :  { %v640_v11 = vld [vmem:[#allocation5 + $0x10b8] sm:$0xff]  ;;  %v4173_v15 = vadd.f32 %v9760_v49, %v4130_v44  ;;  %v8879_v44 = vld [vmem:[#allocation7 + $0xa4] ss:$16 sps:$4 sm:$0xff]  }
 0x2e7   :  { %4538 = vmatpush2.bf16.msra.mxu0 %v8271_v27  ;;  %v8368_v55 = vcombine.high %v636_v4, %v640_v11  ;;  %v500_v23 = vld [vmem:[#allocation5 + $0xc58] sm:$0xff]  ;;  %v8367_v37 = vcombine.low %v636_v4, %v640_v11  ;;  %v4040_v31 = vadd.f32 %v9732_v12, %v3997_v58  ;;  %v8867_v12 = vld [vmem:[#allocation7 + $0xe4] ss:$16 sps:$4 sm:$0xff]   ;;  %v8865_v4 = vld [vmem:[#allocation7 + $0xe0] ss:$16 sps:$4 sm:$0xff]  }
 0x2e8   :  { %4581 = vmatpush2.bf16.msra.mxu1 %v8399_v29  ;;  %4539 = vmatprep.subr.bf16.mxu0 %v8264_v16  ;;  %v504_v24 = vld [vmem:[#allocation5 + $0xc78] sm:$0xff]  ;;  %v4126_v29 = vadd.f32 %v9749_v47, %v1332_v6  ;;  %v8239_v16 = vcombine.low %v508_v2, %v512_v3  ;;  %v8870_v3 = vld [vmem:[#allocation7 + $0x2e4] ss:$16 sps:$4 sm:$0xff]   ;;  %v8904_v58 = vld [vmem:[#allocation7 + $0x220] ss:$16 sps:$4 sm:$0xff]  }
 0x2e9   :  { %4582 = vmatprep.subr.bf16.mxu1 %v8392_v34  ;;  %v628_v26 = vld [vmem:[#allocation5 + $0x1058] sm:$0xff]  ;;  %v4215_v34 = vpop.f32.mrf.mxu0  ;;  %v8232_v38 = vcombine.high %v500_v23, %v504_v24  ;;  %v8231_v42 = vcombine.low %v500_v23, %v504_v24  ;;  %v8877_v23 = vld [vmem:[#allocation7 + $0xa0] ss:$16 sps:$4 sm:$0xff]   ;;  %v8885_v24 = vld [vmem:[#allocation7 + $0x84] ss:$16 sps:$4 sm:$0xff]  }
 0x2ea   :  { %v632_v27 = vld [vmem:[#allocation5 + $0x1078] sm:$0xff]  ;;  %v4216_v57 = vadd.f32 %v4215_v34, %v4173_v15  ;;  %v8897_v34 = vld [vmem:[#allocation7 + $0x44] ss:$16 sps:$4 sm:$0xff]   ;;  %v8898_v15 = vld [vmem:[#allocation7 + $0x240] ss:$16 sps:$4 sm:$0xff]  }
 0x2eb   :  { %4540 = vmatpush2.bf16.msra.mxu0 %v8263_v46  ;;  %v8360_v39 = vcombine.high %v628_v26, %v632_v27  ;;  %v492_v30 = vld [vmem:[#allocation5 + $0xc18] sm:$0xff]  ;;  %v8359_v49 = vcombine.low %v628_v26, %v632_v27  ;;  %v8886_v26 = vld [vmem:[#allocation7 + $0x280] ss:$16 sps:$4 sm:$0xff]   ;;  %v8891_v27 = vld [vmem:[#allocation7 + $0x64] ss:$16 sps:$4 sm:$0xff]  }
 0x2ec   :  { %4583 = vmatpush2.bf16.msra.mxu1 %v8391_v40  ;;  %4541 = vmatprep.subr.bf16.mxu0 %v8256_v41  ;;  %v496_v46 = vld [vmem:[#allocation5 + $0xc38] sm:$0xff]  ;;  %v4044_v40 = vadd.f32 %v9742_v28, %v4001_v52  ;;  %v4258_v28 = vpop.f32.mrf.mxu1  ;;  %v8892_v52 = vld [vmem:[#allocation7 + $0x260] ss:$16 sps:$4 sm:$0xff]  }
 0x2ed   :  { %4584 = vmatprep.subr.bf16.mxu1 %v8384_v63  ;;  %v620_v47 = vld [vmem:[#allocation5 + $0x1018] sm:$0xff]  ;;  %v4169_v63 = vadd.f32 %v9754_v51, %v4126_v29  ;;  %v8224_v43 = vcombine.high %v492_v30, %v496_v46  ;;  %v4083_v51 = vadd.f32 %v9735_v22, %v4040_v31  ;;  %v8894_v29 = vld [vmem:[#allocation7 + $0x264] ss:$16 sps:$4 sm:$0xff]   ;;  %v8913_v31 = vld [vmem:[#allocation7 + $0x1e0] ss:$16 sps:$4 sm:$0xff]  }
 0x2ee   :  { %v624_v41 = vld [vmem:[#allocation5 + $0x1038] sm:$0xff]  ;;  %v4087_v5 = vadd.f32 %v9744_v33, %v4044_v40  ;;  %v8868_v33 = vld [vmem:[#allocation7 + $0x2e0] ss:$16 sps:$4 sm:$0xff]   ;;  %v8909_v40 = vld [vmem:[#allocation7 + $0x4] ss:$16 sps:$4 sm:$0xff]  }
 0x2ef   :  { %4542 = vmatpush2.bf16.msra.mxu0 %v8255_v56  ;;  %v4212_v20 = vadd.f32 %v9766_v36, %v4169_v63  ;;  %v8352_v56 = vcombine.high %v620_v47, %v624_v41  ;;  %v4606_v11 = vmax.f32 %v4083_v51, 0.0  ;;  %v8910_v63 = vld [vmem:[#allocation7 + $0x200] ss:$16 sps:$4 sm:$0xff]  }
 0x2f0   :  { %4585 = vmatpush2.bf16.msra.mxu1 %v8383_v62  ;;  %4543 = vmatprep.subr.bf16.mxu0 %v8248_v35  ;;  %v4259_v62 = vadd.f32 %v4258_v28, %v4216_v57  ;;  %v8223_v35 = vcombine.low %v492_v30, %v496_v46  ;;  %v4614_v59 = vmax.f32 %v4087_v5, 0.0  ;;  %v8906_v30 = vld [vmem:[#allocation7 + $0x224] ss:$16 sps:$4 sm:$0xff]   ;;  %v8901_v46 = vld [vmem:[#allocation7 + $0x20] ss:$16 sps:$4 sm:$0xff]  }
 0x2f1   :  { %4586 = vmatprep.subr.bf16.mxu1 %v8376_v1  ;;  %v8351_v1 = vcombine.low %v620_v47, %v624_v41  ;;  %v4255_v2 = vadd.f32 %v9769_v60, %v4212_v20  ;;  %v8871_v60 = vld [vmem:[#allocation7 + $0xc0] ss:$16 sps:$4 sm:$0xff]   ;;  %v8912_v47 = vld [vmem:[#allocation7 + $0x204] ss:$16 sps:$4 sm:$0xff]  }
 0x2f2   :  { %v4616_v36 = vmax.f32 %v4259_v62, 0.0  ;;  %v9794_v22 = vpack.c.bf16 %v4614_v59, %v4606_v11  ;;  %v8907_v41 = vld [vmem:[#allocation7] ss:$16 sps:$4 sm:$0xff]   ;;  %v8915_v57 = vld [vmem:[#allocation7 + $0x1e4] ss:$16 sps:$4 sm:$0xff]  }
 0x2f3   :  { %4544 = vmatpush2.bf16.msra.mxu0 %v8247_v8  ;;  %v4608_v6 = vmax.f32 %v4255_v2, 0.0  ;;  %v8873_v8 = vld [vmem:[#allocation7 + $0xc4] ss:$16 sps:$4 sm:$0xff]   ;;  %v8922_v5 = vld [vmem:[#allocation7 + $0x3c0] ss:$16 sps:$4 sm:$0xff]  }
 0x2f4   :  { %4587 = vmatpush2.bf16.msra.mxu1 %v8375_v14  ;;  %4545 = vmatprep.subr.bf16.mxu0 %v8240_v48  ;;  %v8874_v48 = vld [vmem:[#allocation7 + $0x2c0] ss:$16 sps:$4 sm:$0xff]   ;;  %v8924_v20 = vld [vmem:[#allocation7 + $0x3c4] ss:$16 sps:$4 sm:$0xff]  }
 0x2f5   :  { %4588 = vmatprep.subr.bf16.mxu1 %v8368_v55  ;;  %v9797_v14 = vpack.c.bf16 %v4616_v36, %v4608_v6  ;;  %v8882_v55 = vld [vmem:[#allocation7 + $0x2a4] ss:$16 sps:$4 sm:$0xff]   ;;  %v8928_v51 = vld [vmem:[#allocation7 + $0x3a0] ss:$16 sps:$4 sm:$0xff]  }
 0x2f6   :  { %v8927_v28 = vld [vmem:[#allocation7 + $0x1a4] ss:$16 sps:$4 sm:$0xff]   ;;  %v8931_v2 = vld [vmem:[#allocation7 + $0x180] ss:$16 sps:$4 sm:$0xff]  }
 0x2f7   :  { %4546 = vmatpush2.bf16.msra.mxu0 %v8239_v16  ;;  %v8889_v16 = vld [vmem:[#allocation7 + $0x60] ss:$16 sps:$4 sm:$0xff]   ;;  %v8930_v62 = vld [vmem:[#allocation7 + $0x3a4] ss:$16 sps:$4 sm:$0xff]  }
 0x2f8   :  { %4589 = vmatpush2.bf16.msra.mxu1 %v8367_v37  ;;  %4547 = vmatprep.subr.bf16.mxu0 %v8232_v38  ;;  %v8900_v37 = vld [vmem:[#allocation7 + $0x244] ss:$16 sps:$4 sm:$0xff]   ;;  %v8895_v38 = vld [vmem:[#allocation7 + $0x40] ss:$16 sps:$4 sm:$0xff]  }
 0x2f9   :  { %4590 = vmatprep.subr.bf16.mxu1 %v8360_v39  ;;  %v8903_v39 = vld [vmem:[#allocation7 + $0x24] ss:$16 sps:$4 sm:$0xff]   ;;  %v8940_v11 = vld [vmem:[#allocation7 + $0x360] ss:$16 sps:$4 sm:$0xff]  }
 0x2fa   :  { %v8939_v59 = vld [vmem:[#allocation7 + $0x164] ss:$16 sps:$4 sm:$0xff]  }
 0x2fb   :  { %4548 = vmatpush2.bf16.msra.mxu0 %v8231_v42  ;;  %v8918_v42 = vld [vmem:[#allocation7 + $0x3e4] ss:$16 sps:$4 sm:$0xff]  }
 0x2fc   :  { %4591 = vmatpush2.bf16.msra.mxu1 %v8359_v49  ;;  %4549 = vmatprep.subr.bf16.mxu0 %v8224_v43  ;;  %v8916_v49 = vld [vmem:[#allocation7 + $0x3e0] ss:$16 sps:$4 sm:$0xff]   ;;  %v8921_v43 = vld [vmem:[#allocation7 + $0x1c4] ss:$16 sps:$4 sm:$0xff]  }
 0x2fd   :  { %4592 = vmatprep.subr.bf16.mxu1 %v8352_v56  ;;  %v8919_v56 = vld [vmem:[#allocation7 + $0x1c0] ss:$16 sps:$4 sm:$0xff]   ;;  %v8942_v36 = vld [vmem:[#allocation7 + $0x364] ss:$16 sps:$4 sm:$0xff]  }
 0x2fe   :  { %v8948_v6 = vld [vmem:[#allocation7 + $0x344] ss:$16 sps:$4 sm:$0xff]  }
 0x2ff   :  { %4550 = vmatpush2.bf16.msra.mxu0 %v8223_v35  ;;  %v8925_v35 = vld [vmem:[#allocation7 + $0x1a0] ss:$16 sps:$4 sm:$0xff]  }
 0x300   :  { %4593 = vmatpush2.bf16.msra.mxu1 %v8351_v1  ;;  %6186 = vmatprep.subr.bf16.mxu0 %v8867_v12  ;;  %v8933_v1 = vld [vmem:[#allocation7 + $0x184] ss:$16 sps:$4 sm:$0xff]  }
 0x301   :  { %6229 = vmatprep.subr.bf16.mxu1 %v8870_v3  ;;  %v8936_v12 = vld [vmem:[#allocation7 + $0x384] ss:$16 sps:$4 sm:$0xff]   ;;  %v8934_v3 = vld [vmem:[#allocation7 + $0x380] ss:$16 sps:$4 sm:$0xff]  }
 0x302   :  { %4552 = vmatmul.mubr.bf16.vlgmr.msra.gmra.mxu0 %v9696_v9  ;;  %v8880_v9 = vld [vmem:[#allocation7 + $0x2a0] ss:$16 sps:$4 sm:$0xff]  }
 0x303   :  { %4595 = vmatmul.mubr.bf16.vlgmr.msra.gmra.mxu1 %v9698_v13  ;;  %6187 = vmatpush1.bf16.msra.mxu0 %v8865_v4  ;;  %v8888_v13 = vld [vmem:[#allocation7 + $0x284] ss:$16 sps:$4 sm:$0xff]   ;;  %v8937_v4 = vld [vmem:[#allocation7 + $0x160] ss:$16 sps:$4 sm:$0xff]  }
 0x304   :  { %6218 = vmatprep.mubr.bf16.mxu0 %v9794_v22  ;;  %6230 = vmatpush1.bf16.msra.mxu1 %v8868_v33  ;;  %v8945_v33 = vld [vmem:[#allocation7 + $0x144] ss:$16 sps:$4 sm:$0xff]  }
 0x305   :  { %6261 = vmatprep.mubr.bf16.mxu1 %v9797_v14  ;;  %6188 = vmatprep.subr.bf16.mxu0 %v8873_v8  ;;  %v8943_v8 = vld [vmem:[#allocation7 + $0x140] ss:$16 sps:$4 sm:$0xff]  }
 0x306   :  { %6231 = vmatprep.subr.bf16.mxu1 %v8876_v7  ;;  %v9802_v7 = vpop.f32.mrf.mxu0 }
 0x307   :  { %6189 = vmatpush1.bf16.msra.mxu0 %v8871_v60  ;;  %v8946_v60 = vld [vmem:[#allocation7 + $0x340] ss:$16 sps:$4 sm:$0xff]  }
 0x308   :  { %6232 = vmatpush1.bf16.msra.mxu1 %v8874_v48  ;;  %6190 = vmatprep.subr.bf16.mxu0 %v8879_v44  ;;  %v8951_v48 = vld [vmem:[#allocation7 + $0x124] ss:$16 sps:$4 sm:$0xff]   ;;  %v9804_v44 = vpop.f32.mrf.mxu1 }
 0x309   :  { %6233 = vmatprep.subr.bf16.mxu1 %v8882_v55  ;;  %v8954_v55 = vld [vmem:[#allocation7 + $0x324] ss:$16 sps:$4 sm:$0xff]  }
 0x30b   :  { %6191 = vmatpush1.bf16.msra.mxu0 %v8877_v23  ;;  %v8949_v23 = vld [vmem:[#allocation7 + $0x120] ss:$16 sps:$4 sm:$0xff]  }
 0x30c   :  { %6234 = vmatpush1.bf16.msra.mxu1 %v8880_v9  ;;  %6192 = vmatprep.subr.bf16.mxu0 %v8885_v24  ;;  %v4297_v9 = vpop.f32.mrf.mxu0  ;;  %v8952_v24 = vld [vmem:[#allocation7 + $0x320] ss:$16 sps:$4 sm:$0xff]  }
 0x30d   :  { %6235 = vmatprep.subr.bf16.mxu1 %v8888_v13  ;;  %v8957_v13 = vld [vmem:[#allocation7 + $0x104] ss:$16 sps:$4 sm:$0xff]  }
 0x30f   :  { %6193 = vmatpush1.bf16.msra.mxu0 %v8883_v25  ;;  %v4340_v25 = vpop.f32.mrf.mxu1 }
 0x310   :  { %6236 = vmatpush1.bf16.msra.mxu1 %v8886_v26  ;;  %6194 = vmatprep.subr.bf16.mxu0 %v8891_v27  ;;  %v8960_v26 = vld [vmem:[#allocation7 + $0x304] ss:$16 sps:$4 sm:$0xff]   ;;  %v1340_v27 = vrot.slane %v9774_v53, %v9659_v32 }
 0x311   :  { %6237 = vmatprep.subr.bf16.mxu1 %v8894_v29  ;;  %v8955_v29 = vld [vmem:[#allocation7 + $0x100] ss:$16 sps:$4 sm:$0xff]  }
 0x313   :  { %6195 = vmatpush1.bf16.msra.mxu0 %v8889_v16  ;;  %v9808_v16 = vpop.f32.mrf.mxu0 }
 0x314   :  { %6238 = vmatpush1.bf16.msra.mxu1 %v8892_v52  ;;  %6196 = vmatprep.subr.bf16.mxu0 %v8897_v34  ;;  %v8958_v52 = vld [vmem:[#allocation7 + $0x300] ss:$16 sps:$4 sm:$0xff]   ;;  %v8963_v34 = vld [vmem:[#allocation7 + $0x4e4] ss:$16 sps:$4 sm:$0xff]  }
 0x315   :  { %6239 = vmatprep.subr.bf16.mxu1 %v8900_v37  ;;  %v9810_v37 = vpop.f32.mrf.mxu1 }
 0x317   :  { %6197 = vmatpush1.bf16.msra.mxu0 %v8895_v38  ;;  %v9023_v38 = vld [vmem:[#allocation7 + $0x6e4] ss:$16 sps:$4 sm:$0xff]  }
 0x318   :  { %6240 = vmatpush1.bf16.msra.mxu1 %v8898_v15  ;;  %6198 = vmatprep.subr.bf16.mxu0 %v8903_v39  ;;  %v4298_v15 = vadd.f32 %v4297_v9, %v1340_v27  ;;  %v8961_v39 = vld [vmem:[#allocation7 + $0x4e0] ss:$16 sps:$4 sm:$0xff]  }
 0x319   :  { %6241 = vmatprep.subr.bf16.mxu1 %v8906_v30  ;;  %v4301_v30 = vpop.f32.mrf.mxu0 }
 0x31b   :  { %6199 = vmatpush1.bf16.msra.mxu0 %v8901_v46  ;;  %v8966_v46 = vld [vmem:[#allocation7 + $0x4c4] ss:$16 sps:$4 sm:$0xff]  }
 0x31c   :  { %6242 = vmatpush1.bf16.msra.mxu1 %v8904_v58  ;;  %6200 = vmatprep.subr.bf16.mxu0 %v8909_v40  ;;  %v9021_v58 = vld [vmem:[#allocation7 + $0x6e0] ss:$16 sps:$4 sm:$0xff]   ;;  %v4344_v40 = vpop.f32.mrf.mxu1 }
 0x31d   :  { %6243 = vmatprep.subr.bf16.mxu1 %v8912_v47  ;;  %v9029_v47 = vld [vmem:[#allocation7 + $0x6c4] ss:$16 sps:$4 sm:$0xff]  }
 0x31f   :  { %6201 = vmatpush1.bf16.msra.mxu0 %v8907_v41 }
 0x320   :  { %6244 = vmatpush1.bf16.msra.mxu1 %v8910_v63  ;;  %6202 = vmatprep.subr.bf16.mxu0 %v8915_v57  ;;  %v4341_v63 = vadd.f32 %v4340_v25, %v4298_v15  ;;  %v4302_v57 = vadd.f32 %v4301_v30, %v1340_v27  ;;  %v9045_v25 = vld [vmem:[#allocation7 + $0x660] ss:$16 sps:$4 sm:$0xff]   ;;  %v8984_v15 = vld [vmem:[#allocation7 + $0x404] ss:$16 sps:$4 sm:$0xff]  }
 0x321   :  { %6245 = vmatprep.subr.bf16.mxu1 %v8918_v42  ;;  %v8976_v27 = vld [vmem:[#allocation7 + $0x440] ss:$16 sps:$4 sm:$0xff]   ;;  %v9065_v30 = vld [vmem:[#allocation7 + $0x604] ss:$16 sps:$4 sm:$0xff]  }
 0x323   :  { %6203 = vmatpush2.bf16.msra.mxu0 %v8913_v31  ;;  %v8964_v31 = vld [vmem:[#allocation7 + $0x4c0] ss:$16 sps:$4 sm:$0xff]  }
 0x324   :  { %6246 = vmatpush2.bf16.msra.mxu1 %v8916_v49  ;;  %6204 = vmatprep.subr.bf16.mxu0 %v8921_v43  ;;  %v8969_v43 = vld [vmem:[#allocation7 + $0x4a4] ss:$16 sps:$4 sm:$0xff]  }
 0x325   :  { %6247 = vmatprep.subr.bf16.mxu1 %v8924_v20  ;;  %v9027_v20 = vld [vmem:[#allocation7 + $0x6c0] ss:$16 sps:$4 sm:$0xff]  }
 0x327   :  { %6205 = vmatpush2.bf16.msra.mxu0 %v8919_v56 }
 0x328   :  { %6248 = vmatpush2.bf16.msra.mxu1 %v8922_v5  ;;  %6206 = vmatprep.subr.bf16.mxu0 %v8927_v28  ;;  %v9035_v28 = vld [vmem:[#allocation7 + $0x6a4] ss:$16 sps:$4 sm:$0xff]  }
 0x329   :  { %6249 = vmatprep.subr.bf16.mxu1 %v8930_v62 }
 0x32b   :  { %6207 = vmatpush2.bf16.msra.mxu0 %v8925_v35  ;;  %v4345_v35 = vadd.f32 %v4344_v40, %v4302_v57  ;;  %v9063_v40 = vld [vmem:[#allocation7 + $0x600] ss:$16 sps:$4 sm:$0xff]   ;;  %v8990_v57 = vld [vmem:[#allocation7 + $0x5c4] ss:$16 sps:$4 sm:$0xff]  }
 0x32c   :  { %6250 = vmatpush2.bf16.msra.mxu1 %v8928_v51  ;;  %6208 = vmatprep.subr.bf16.mxu0 %v8933_v1  ;;  %v8967_v1 = vld [vmem:[#allocation7 + $0x4a0] ss:$16 sps:$4 sm:$0xff]  }
 0x32d   :  { %6251 = vmatprep.subr.bf16.mxu1 %v8936_v12 }
 0x32f   :  { %6209 = vmatpush2.bf16.msra.mxu0 %v8931_v2  ;;  %v8972_v2 = vld [vmem:[#allocation7 + $0x484] ss:$16 sps:$4 sm:$0xff]  }
 0x330   :  { %6252 = vmatpush2.bf16.msra.mxu1 %v8934_v3  ;;  %6210 = vmatprep.subr.bf16.mxu0 %v8939_v59  ;;  %v9033_v3 = vld [vmem:[#allocation7 + $0x6a0] ss:$16 sps:$4 sm:$0xff]  }
 0x331   :  { %6253 = vmatprep.subr.bf16.mxu1 %v8942_v36 }
 0x333   :  { %6211 = vmatpush2.bf16.msra.mxu0 %v8937_v4  ;;  %v9041_v4 = vld [vmem:[#allocation7 + $0x684] ss:$16 sps:$4 sm:$0xff]  }
 0x334   :  { %6254 = vmatpush2.bf16.msra.mxu1 %v8940_v11  ;;  %6212 = vmatprep.subr.bf16.mxu0 %v8945_v33 }
 0x335   :  { %6255 = vmatprep.subr.bf16.mxu1 %v8948_v6  ;;  %v8970_v6 = vld [vmem:[#allocation7 + $0x480] ss:$16 sps:$4 sm:$0xff]  }
 0x337   :  { %6213 = vmatpush2.bf16.msra.mxu0 %v8943_v8  ;;  %v8975_v8 = vld [vmem:[#allocation7 + $0x464] ss:$16 sps:$4 sm:$0xff]  }
 0x338   :  { %6256 = vmatpush2.bf16.msra.mxu1 %v8946_v60  ;;  %6214 = vmatprep.subr.bf16.mxu0 %v8951_v48  ;;  %v9039_v60 = vld [vmem:[#allocation7 + $0x680] ss:$16 sps:$4 sm:$0xff]  }
 0x339   :  { %6257 = vmatprep.subr.bf16.mxu1 %v8954_v55 }
 0x33b   :  { %6215 = vmatpush2.bf16.msra.mxu0 %v8949_v23  ;;  %v9047_v23 = vld [vmem:[#allocation7 + $0x664] ss:$16 sps:$4 sm:$0xff]  }
 0x33c   :  { %6258 = vmatpush2.bf16.msra.mxu1 %v8952_v24  ;;  %6216 = vmatprep.subr.bf16.mxu0 %v8957_v13  ;;  %v8973_v24 = vld [vmem:[#allocation7 + $0x460] ss:$16 sps:$4 sm:$0xff]   ;;  %v8978_v13 = vld [vmem:[#allocation7 + $0x444] ss:$16 sps:$4 sm:$0xff]  }
 0x33d   :  { %6259 = vmatprep.subr.bf16.mxu1 %v8960_v26  ;;  %v9053_v26 = vld [vmem:[#allocation7 + $0x644] ss:$16 sps:$4 sm:$0xff]  }
 0x33f   :  { %6217 = vmatpush2.bf16.msra.mxu0 %v8955_v29  ;;  %v8981_v29 = vld [vmem:[#allocation7 + $0x424] ss:$16 sps:$4 sm:$0xff]  }
 0x340   :  { %6260 = vmatpush2.bf16.msra.mxu1 %v8958_v52  ;;  %6272 = vmatprep.subr.bf16.mxu0 %v8963_v34  ;;  %v9051_v52 = vld [vmem:[#allocation7 + $0x640] ss:$16 sps:$4 sm:$0xff]   ;;  %v9059_v34 = vld [vmem:[#allocation7 + $0x624] ss:$16 sps:$4 sm:$0xff]  }
 0x341   :  { %6315 = vmatprep.subr.bf16.mxu1 %v9023_v38  ;;  %v8979_v38 = vld [vmem:[#allocation7 + $0x420] ss:$16 sps:$4 sm:$0xff]  }
 0x342   :  { %v9812_v41 = vpop.f32.mrf.mxu0  ;;  %6219 = vmatmul.mubr.bf16.vlgmr.msra.gmra.mxu0 %v9738_v45 }
 0x343   :  { %v9815_v42 = vpop.f32.mrf.mxu1  ;;  %6262 = vmatmul.mubr.bf16.vlgmr.msra.gmra.mxu1 %v9772_v61  ;;  %6273 = vmatpush1.bf16.msra.mxu0 %v8961_v39  ;;  %v9057_v39 = vld [vmem:[#allocation7 + $0x620] ss:$16 sps:$4 sm:$0xff]  }
 0x344   :  { %v4383_v49 = vpop.f32.mrf.mxu0  ;;  %6274 = vmatprep.subr.bf16.mxu0 %v8966_v46  ;;  %6316 = vmatpush1.bf16.msra.mxu1 %v9021_v58  ;;  %v8982_v46 = vld [vmem:[#allocation7 + $0x400] ss:$16 sps:$4 sm:$0xff]   ;;  %v8987_v58 = vld [vmem:[#allocation7 + $0x5e4] ss:$16 sps:$4 sm:$0xff]  }
 0x345   :  { %v4384_v56 = vadd.f32 %v4383_v49, %v4341_v63  ;;  %v4426_v5 = vpop.f32.mrf.mxu1  ;;  %6317 = vmatprep.subr.bf16.mxu1 %v9029_v47  ;;  %v9071_v47 = vld [vmem:[#allocation7 + $0x7e4] ss:$16 sps:$4 sm:$0xff]   ;;  %v8985_v63 = vld [vmem:[#allocation7 + $0x5e0] ss:$16 sps:$4 sm:$0xff]  }
 0x346   :  { %v9818_v62 = vpop.f32.mrf.mxu0  ;;  %v9077_v49 = vld [vmem:[#allocation7 + $0x7c4] ss:$16 sps:$4 sm:$0xff]  }
 0x347   :  { %v9820_v51 = vpop.f32.mrf.mxu1  ;;  %6275 = vmatpush1.bf16.msra.mxu0 %v8964_v31  ;;  %v4427_v59 = vadd.f32 %v4426_v5, %v4384_v56  ;;  %v9069_v31 = vld [vmem:[#allocation7 + $0x7e0] ss:$16 sps:$4 sm:$0xff]   ;;  %v9083_v5 = vld [vmem:[#allocation7 + $0x7a4] ss:$16 sps:$4 sm:$0xff]  }
 0x348   :  { %v4387_v12 = vpop.f32.mrf.mxu0  ;;  %6276 = vmatprep.subr.bf16.mxu0 %v8969_v43  ;;  %6318 = vmatpush1.bf16.msra.mxu1 %v9027_v20  ;;  %v8988_v43 = vld [vmem:[#allocation7 + $0x5c0] ss:$16 sps:$4 sm:$0xff]   ;;  %v8993_v20 = vld [vmem:[#allocation7 + $0x5a4] ss:$16 sps:$4 sm:$0xff]  }
 0x349   :  { %v4388_v36 = vadd.f32 %v4387_v12, %v4345_v35  ;;  %6319 = vmatprep.subr.bf16.mxu1 %v9035_v28  ;;  %v4430_v11 = vpop.f32.mrf.mxu1  ;;  %v4610_v48 = vmax.f32 %v4427_v59, 0.0  ;;  %v9075_v56 = vld [vmem:[#allocation7 + $0x7c0] ss:$16 sps:$4 sm:$0xff]   ;;  %v8996_v35 = vld [vmem:[#allocation7 + $0x584] ss:$16 sps:$4 sm:$0xff]  }
 0x34a   :  { %v8991_v28 = vld [vmem:[#allocation7 + $0x5a0] ss:$16 sps:$4 sm:$0xff]   ;;  %v9089_v12 = vld [vmem:[#allocation7 + $0x784] ss:$16 sps:$4 sm:$0xff]  }
 0x34b   :  { %v4431_v33 = vadd.f32 %v4430_v11, %v4388_v36  ;;  %6277 = vmatpush1.bf16.msra.mxu0 %v8967_v1  ;;  %v9081_v1 = vld [vmem:[#allocation7 + $0x7a0] ss:$16 sps:$4 sm:$0xff]   ;;  %v8999_v59 = vld [vmem:[#allocation7 + $0x564] ss:$16 sps:$4 sm:$0xff]  }
 0x34c   :  { %6278 = vmatprep.subr.bf16.mxu0 %v8972_v2  ;;  %6320 = vmatpush1.bf16.msra.mxu1 %v9033_v3  ;;  %v8994_v2 = vld [vmem:[#allocation7 + $0x580] ss:$16 sps:$4 sm:$0xff]   ;;  %v1336_v3 = vrot.slane %v9774_v53, %v9683_v54 }
 0x34d   :  { %v4618_v55 = vmax.f32 %v4431_v33, 0.0  ;;  %6321 = vmatprep.subr.bf16.mxu1 %v9041_v4  ;;  %v9087_v36 = vld [vmem:[#allocation7 + $0x780] ss:$16 sps:$4 sm:$0xff]   ;;  %v9095_v4 = vld [vmem:[#allocation7 + $0x764] ss:$16 sps:$4 sm:$0xff]  }
 0x34e   :  { %v4300_v11 = vadd.f32 %v9808_v16, %v1336_v3  ;;  %v8997_v33 = vld [vmem:[#allocation7 + $0x560] ss:$16 sps:$4 sm:$0xff]   ;;  %v9005_v16 = vld [vmem:[#allocation7 + $0x524] ss:$16 sps:$4 sm:$0xff]  }
 0x34f   :  { %v9822_v9 = vpack.c.bf16 %v4618_v55, %v4610_v48  ;;  %6279 = vmatpush1.bf16.msra.mxu0 %v8970_v6  ;;  %v4296_v6 = vadd.f32 %v9802_v7, %v1336_v3  ;;  %v9101_v48 = vld [vmem:[#allocation7 + $0x744] ss:$16 sps:$4 sm:$0xff]   ;;  %v9062_v3 = vld [vmem:[#allocation7 + $0x1ac] ss:$16 sps:$4 sm:$0xff]  }
 0x350   :  { %6280 = vmatprep.subr.bf16.mxu0 %v8975_v8  ;;  %6322 = vmatpush1.bf16.msra.mxu1 %v9039_v60  ;;  %v9002_v8 = vld [vmem:[#allocation7 + $0x544] ss:$16 sps:$4 sm:$0xff]   ;;  %v9093_v60 = vld [vmem:[#allocation7 + $0x760] ss:$16 sps:$4 sm:$0xff]   ;;  %v4343_v55 = vadd.f32 %v9810_v37, %v4300_v11  ;;  %v9074_v11 = vld [vmem:[#allocation7 + $0x16c] ss:$16 sps:$4 sm:$0xff]  }
 0x351   :  { %6304 = vmatprep.mubr.bf16.mxu0 %v9822_v9  ;;  %6323 = vmatprep.subr.bf16.mxu1 %v9047_v23  ;;  %v9000_v23 = vld [vmem:[#allocation7 + $0x540] ss:$16 sps:$4 sm:$0xff]   ;;  %v9107_v7 = vld [vmem:[#allocation7 + $0x724] ss:$16 sps:$4 sm:$0xff]  }
 0x352   :  { %v9008_v37 = vld [vmem:[#allocation7 + $0x504] ss:$16 sps:$4 sm:$0xff]  }
 0x353   :  { %6281 = vmatpush1.bf16.msra.mxu0 %v8973_v24  ;;  %v4339_v24 = vadd.f32 %v9804_v44, %v4296_v6  ;;  %v9113_v44 = vld [vmem:[#allocation7 + $0x704] ss:$16 sps:$4 sm:$0xff]   ;;  %v9080_v6 = vld [vmem:[#allocation7 + $0x14c] ss:$16 sps:$4 sm:$0xff]  }
 0x354   :  { %6282 = vmatprep.subr.bf16.mxu0 %v8978_v13  ;;  %6324 = vmatpush1.bf16.msra.mxu1 %v9045_v25  ;;  %v4386_v13 = vadd.f32 %v9818_v62, %v4343_v55  ;;  %v9099_v25 = vld [vmem:[#allocation7 + $0x740] ss:$16 sps:$4 sm:$0xff]  }
 0x355   :  { %6325 = vmatprep.subr.bf16.mxu1 %v9053_v26  ;;  %v4382_v26 = vadd.f32 %v9812_v41, %v4339_v24  ;;  %v9119_v41 = vld [vmem:[#allocation7 + $0x2ec] ss:$16 sps:$4 sm:$0xff]  }
 0x357   :  { %6283 = vmatpush1.bf16.msra.mxu0 %v8976_v27  ;;  %v9003_v27 = vld [vmem:[#allocation7 + $0x520] ss:$16 sps:$4 sm:$0xff]   ;;  %v4425_v62 = vadd.f32 %v9815_v42, %v4382_v26  ;;  %v9012_v42 = vld [vmem:[#allocation7 + $0xc8] ss:$16 sps:$4 sm:$0xff]   ;;  %v1344_v26 = vrot.slane %v9774_v53, %v9686_v50 }
 0x358   :  { %6284 = vmatprep.subr.bf16.mxu0 %v8981_v29  ;;  %6326 = vmatpush1.bf16.msra.mxu1 %v9051_v52  ;;  %v4429_v29 = vadd.f32 %v9820_v51, %v4386_v13  ;;  %v9105_v52 = vld [vmem:[#allocation7 + $0x720] ss:$16 sps:$4 sm:$0xff]   ;;  %v9009_v51 = vld [vmem:[#allocation7 + $0xe8] ss:$16 sps:$4 sm:$0xff]   ;;  %v9092_v13 = vld [vmem:[#allocation7 + $0x10c] ss:$16 sps:$4 sm:$0xff]  }
 0x359   :  { %6327 = vmatprep.subr.bf16.mxu1 %v9059_v34  ;;  %v9006_v34 = vld [vmem:[#allocation7 + $0x500] ss:$16 sps:$4 sm:$0xff]  }
 0x35b   :  { %6285 = vmatpush1.bf16.msra.mxu0 %v8979_v38  ;;  %v4617_v38 = vmax.f32 %v4429_v29, 0.0  ;;  %v9098_v29 = vld [vmem:[#allocation7 + $0x4ec] ss:$16 sps:$4 sm:$0xff]  }
 0x35c   :  { %6286 = vmatprep.subr.bf16.mxu0 %v8984_v15  ;;  %6328 = vmatpush1.bf16.msra.mxu1 %v9057_v39  ;;  %v9011_v15 = vld [vmem:[#allocation7 + $0xec] ss:$16 sps:$4 sm:$0xff]   ;;  %v9111_v39 = vld [vmem:[#allocation7 + $0x700] ss:$16 sps:$4 sm:$0xff]  }
 0x35d   :  { %6329 = vmatprep.subr.bf16.mxu1 %v9065_v30  ;;  %v4609_v30 = vmax.f32 %v4425_v62, 0.0 }
 0x35f   :  { %6287 = vmatpush1.bf16.msra.mxu0 %v8982_v46  ;;  %v9835_v46 = vpack.c.bf16 %v4617_v38, %v4609_v30  ;;  %v9104_v38 = vld [vmem:[#allocation7 + $0x4cc] ss:$16 sps:$4 sm:$0xff]  }
 0x360   :  { %6288 = vmatprep.subr.bf16.mxu0 %v8987_v58  ;;  %6330 = vmatpush1.bf16.msra.mxu1 %v9063_v40  ;;  %v9014_v58 = vld [vmem:[#allocation7 + $0xcc] ss:$16 sps:$4 sm:$0xff]  }
 0x361   :  { %6331 = vmatprep.subr.bf16.mxu1 %v9071_v47  ;;  %v9017_v40 = vld [vmem:[#allocation7 + $0xac] ss:$16 sps:$4 sm:$0xff]   ;;  %v9015_v47 = vld [vmem:[#allocation7 + $0xa8] ss:$16 sps:$4 sm:$0xff]  }
 0x363   :  { %6289 = vmatpush2.bf16.msra.mxu0 %v8985_v63  ;;  %v9020_v63 = vld [vmem:[#allocation7 + $0x8c] ss:$16 sps:$4 sm:$0xff]  }
 0x364   :  { %6290 = vmatprep.subr.bf16.mxu0 %v8990_v57  ;;  %6332 = vmatpush2.bf16.msra.mxu1 %v9069_v31  ;;  %v9018_v57 = vld [vmem:[#allocation7 + $0x88] ss:$16 sps:$4 sm:$0xff]   ;;  %v9026_v31 = vld [vmem:[#allocation7 + $0x6c] ss:$16 sps:$4 sm:$0xff]  }
 0x365   :  { %6333 = vmatprep.subr.bf16.mxu1 %v9077_v49  ;;  %v9024_v49 = vld [vmem:[#allocation7 + $0x68] ss:$16 sps:$4 sm:$0xff]  }
 0x367   :  { %6291 = vmatpush2.bf16.msra.mxu0 %v8988_v43  ;;  %v9032_v43 = vld [vmem:[#allocation7 + $0x4c] ss:$16 sps:$4 sm:$0xff]  }
 0x368   :  { %6292 = vmatprep.subr.bf16.mxu0 %v8993_v20  ;;  %6334 = vmatpush2.bf16.msra.mxu1 %v9075_v56  ;;  %v9030_v20 = vld [vmem:[#allocation7 + $0x48] ss:$16 sps:$4 sm:$0xff]   ;;  %v9038_v56 = vld [vmem:[#allocation7 + $0x2c] ss:$16 sps:$4 sm:$0xff]  }
 0x369   :  { %6335 = vmatprep.subr.bf16.mxu1 %v9083_v5  ;;  %v9044_v5 = vld [vmem:[#allocation7 + $0xc] ss:$16 sps:$4 sm:$0xff]  }
 0x36b   :  { %6293 = vmatpush2.bf16.msra.mxu0 %v8991_v28  ;;  %v9042_v28 = vld [vmem:[#allocation7 + $0x8] ss:$16 sps:$4 sm:$0xff]  }
 0x36c   :  { %6294 = vmatprep.subr.bf16.mxu0 %v8996_v35  ;;  %6336 = vmatpush2.bf16.msra.mxu1 %v9081_v1  ;;  %v9050_v35 = vld [vmem:[#allocation7 + $0x1ec] ss:$16 sps:$4 sm:$0xff]   ;;  %v9048_v1 = vld [vmem:[#allocation7 + $0x1e8] ss:$16 sps:$4 sm:$0xff]  }
 0x36d   :  { %6337 = vmatprep.subr.bf16.mxu1 %v9089_v12  ;;  %v9056_v12 = vld [vmem:[#allocation7 + $0x1cc] ss:$16 sps:$4 sm:$0xff]  }
 0x36f   :  { %6295 = vmatpush2.bf16.msra.mxu0 %v8994_v2  ;;  %v9054_v2 = vld [vmem:[#allocation7 + $0x1c8] ss:$16 sps:$4 sm:$0xff]  }
 0x370   :  { %6296 = vmatprep.subr.bf16.mxu0 %v8999_v59  ;;  %6338 = vmatpush2.bf16.msra.mxu1 %v9087_v36  ;;  %v9060_v59 = vld [vmem:[#allocation7 + $0x1a8] ss:$16 sps:$4 sm:$0xff]   ;;  %v9068_v36 = vld [vmem:[#allocation7 + $0x18c] ss:$16 sps:$4 sm:$0xff]  }
 0x371   :  { %6339 = vmatprep.subr.bf16.mxu1 %v9095_v4  ;;  %v9066_v4 = vld [vmem:[#allocation7 + $0x188] ss:$16 sps:$4 sm:$0xff]  }
 0x373   :  { %6297 = vmatpush2.bf16.msra.mxu0 %v8997_v33  ;;  %v9072_v33 = vld [vmem:[#allocation7 + $0x168] ss:$16 sps:$4 sm:$0xff]  }
 0x374   :  { %6298 = vmatprep.subr.bf16.mxu0 %v9002_v8  ;;  %6340 = vmatpush2.bf16.msra.mxu1 %v9093_v60  ;;  %v9078_v8 = vld [vmem:[#allocation7 + $0x148] ss:$16 sps:$4 sm:$0xff]  }
 0x375   :  { %6341 = vmatprep.subr.bf16.mxu1 %v9101_v48  ;;  %v9086_v48 = vld [vmem:[#allocation7 + $0x12c] ss:$16 sps:$4 sm:$0xff]  }
 0x377   :  { %6299 = vmatpush2.bf16.msra.mxu0 %v9000_v23  ;;  %v9084_v23 = vld [vmem:[#allocation7 + $0x128] ss:$16 sps:$4 sm:$0xff]  }
 0x378   :  { %6300 = vmatprep.subr.bf16.mxu0 %v9005_v16  ;;  %6342 = vmatpush2.bf16.msra.mxu1 %v9099_v25  ;;  %v1348_v25 = vrot.slane %v9774_v53, %v9662_v10  ;;  %v9102_v53 = vld [vmem:[#allocation7 + $0x4c8] ss:$16 sps:$4 sm:$0xff]  }
 0x379   :  { %6343 = vmatprep.subr.bf16.mxu1 %v9107_v7  ;;  %v9090_v7 = vld [vmem:[#allocation7 + $0x108] ss:$16 sps:$4 sm:$0xff]  }
 0x37b   :  { %6301 = vmatpush2.bf16.msra.mxu0 %v9003_v27 }
 0x37c   :  { %6302 = vmatprep.subr.bf16.mxu0 %v9008_v37  ;;  %6344 = vmatpush2.bf16.msra.mxu1 %v9105_v52 }
 0x37d   :  { %6345 = vmatprep.subr.bf16.mxu1 %v9113_v44  ;;  %v9096_v44 = vld [vmem:[#allocation7 + $0x4e8] ss:$16 sps:$4 sm:$0xff]  }
 0x37f   :  { %6303 = vmatpush2.bf16.msra.mxu0 %v9006_v34 }
 0x380   :  { %6358 = vmatprep.subr.bf16.mxu0 %v9011_v15  ;;  %6346 = vmatpush2.bf16.msra.mxu1 %v9111_v39 }
 0x381   :  { %6401 = vmatprep.subr.bf16.mxu1 %v9119_v41 }
 0x382   :  { %6305 = vmatmul.mubr.bf16.vlgmr.msra.gmra.mxu0 %v9835_v46  ;;  %v4467_v60 = vpop.f32.mrf.mxu0 }
 0x383   :  { %6359 = vmatpush1.bf16.msra.mxu0 %v9009_v51  ;;  %6390 = vmatprep.mubr.bf16.mxu0 %v9794_v22  ;;  %v9036_v22 = vld [vmem:[#allocation7 + $0x28] ss:$16 sps:$4 sm:$0xff]   ;;  %v4510_v55 = vpop.f32.mrf.mxu1  ;;  %v4468_v62 = vadd.f32 %v4467_v60, %v1344_v26 }
 0x384   :  { %6360 = vmatprep.subr.bf16.mxu0 %v9014_v58  ;;  %v4469_v24 = vpop.f32.mrf.mxu0  ;;  %v9117_v60 = vld [vmem:[#allocation7 + $0x2e8] ss:$16 sps:$4 sm:$0xff]  }
 0x385   :  { %v4512_v16 = vpop.f32.mrf.mxu1  ;;  %v4470_v52 = vadd.f32 %v4469_v24, %v1348_v25  ;;  %v9128_v24 = vld [vmem:[#allocation7 + $0x44c] ss:$16 sps:$4 sm:$0xff]  }
 0x386   :  { %v4471_v27 = vpop.f32.mrf.mxu0 }
 0x387   :  { %6361 = vmatpush1.bf16.msra.mxu0 %v9012_v42  ;;  %v4514_v37 = vpop.f32.mrf.mxu1  ;;  %v4472_v15 = vadd.f32 %v4471_v27, %v1344_v26  ;;  %v4513_v30 = vadd.f32 %v4512_v16, %v4470_v52  ;;  %v4511_v42 = vadd.f32 %v4510_v55, %v4468_v62  ;;  %v9120_v55 = vld [vmem:[#allocation7 + $0x468] ss:$16 sps:$4 sm:$0xff]   ;;  %v9146_v62 = vld [vmem:[#allocation7 + $0x5ec] ss:$16 sps:$4 sm:$0xff]  }
 0x388   :  { %6362 = vmatprep.subr.bf16.mxu0 %v9017_v40  ;;  %v4473_v34 = vpop.f32.mrf.mxu0  ;;  %v9126_v16 = vld [vmem:[#allocation7 + $0x448] ss:$16 sps:$4 sm:$0xff]  }
 0x389   :  { %v4516_v39 = vpop.f32.mrf.mxu1  ;;  %v4474_v51 = vadd.f32 %v4473_v34, %v1348_v25  ;;  %v9131_v25 = vld [vmem:[#allocation7 + $0x2ac] ss:$16 sps:$4 sm:$0xff]   ;;  %v9129_v26 = vld [vmem:[#allocation7 + $0x2a8] ss:$16 sps:$4 sm:$0xff]  }
 0x38a   :  { %v9132_v27 = vld [vmem:[#allocation7 + $0x428] ss:$16 sps:$4 sm:$0xff]  }
 0x38b   :  { %6363 = vmatpush1.bf16.msra.mxu0 %v9015_v47  ;;  %v9110_v47 = vld [vmem:[#allocation7 + $0x4ac] ss:$16 sps:$4 sm:$0xff]   ;;  %v9135_v52 = vld [vmem:[#allocation7 + $0x288] ss:$16 sps:$4 sm:$0xff]  }
 0x38c   :  { %6364 = vmatprep.subr.bf16.mxu0 %v9020_v63  ;;  %v4515_v63 = vadd.f32 %v4514_v37, %v4472_v15  ;;  %v9140_v37 = vld [vmem:[#allocation7 + $0x40c] ss:$16 sps:$4 sm:$0xff]   ;;  %v9141_v34 = vld [vmem:[#allocation7 + $0x268] ss:$16 sps:$4 sm:$0xff]  }
 0x38d   :  { %v9149_v15 = vld [vmem:[#allocation7 + $0x24c] ss:$16 sps:$4 sm:$0xff]  }
 0x38f   :  { %6365 = vmatpush1.bf16.msra.mxu0 %v9018_v57 }
 0x390   :  { %6366 = vmatprep.subr.bf16.mxu0 %v9026_v31 }
 0x393   :  { %6367 = vmatpush1.bf16.msra.mxu0 %v9024_v49 }
 0x394   :  { %6368 = vmatprep.subr.bf16.mxu0 %v9032_v43 }
 0x397   :  { %6369 = vmatpush1.bf16.msra.mxu0 %v9030_v20  ;;  %v4517_v20 = vadd.f32 %v4516_v39, %v4474_v51  ;;  %v9152_v39 = vld [vmem:[#allocation7 + $0x5cc] ss:$16 sps:$4 sm:$0xff]  }
 0x398   :  { %6370 = vmatprep.subr.bf16.mxu0 %v9038_v56  ;;  %v9155_v51 = vld [vmem:[#allocation7 + $0x22c] ss:$16 sps:$4 sm:$0xff]  }
 0x39b   :  { %6371 = vmatpush1.bf16.msra.mxu0 %v9036_v22 }
 0x39c   :  { %6372 = vmatprep.subr.bf16.mxu0 %v9044_v5 }
 0x39f   :  { %6373 = vmatpush1.bf16.msra.mxu0 %v9042_v28  ;;  %v9116_v28 = vld [vmem:[#allocation7 + $0x48c] ss:$16 sps:$4 sm:$0xff]  }
 0x3a0   :  { %6374 = vmatprep.subr.bf16.mxu0 %v9050_v35 }
 0x3a3   :  { %6375 = vmatpush2.bf16.msra.mxu0 %v9048_v1 }
 0x3a4   :  { %6376 = vmatprep.subr.bf16.mxu0 %v9056_v12 }
 0x3a7   :  { %6377 = vmatpush2.bf16.msra.mxu0 %v9054_v2 }
 0x3a8   :  { %6378 = vmatprep.subr.bf16.mxu0 %v9062_v3 }
 0x3ab   :  { %6379 = vmatpush2.bf16.msra.mxu0 %v9060_v59  ;;  %v9114_v59 = vld [vmem:[#allocation7 + $0x488] ss:$16 sps:$4 sm:$0xff]  }
 0x3ac   :  { %6380 = vmatprep.subr.bf16.mxu0 %v9068_v36 }
 0x3af   :  { %6381 = vmatpush2.bf16.msra.mxu0 %v9066_v4  ;;  %v9122_v4 = vld [vmem:[#allocation7 + $0x46c] ss:$16 sps:$4 sm:$0xff]  }
 0x3b0   :  { %6382 = vmatprep.subr.bf16.mxu0 %v9074_v11 }
 0x3b3   :  { %6383 = vmatpush2.bf16.msra.mxu0 %v9072_v33 }
 0x3b4   :  { %6384 = vmatprep.subr.bf16.mxu0 %v9080_v6 }
 0x3b7   :  { %6385 = vmatpush2.bf16.msra.mxu0 %v9078_v8 }
 0x3b8   :  { %6386 = vmatprep.subr.bf16.mxu0 %v9086_v48 }
 0x3bb   :  { %6387 = vmatpush2.bf16.msra.mxu0 %v9084_v23  ;;  %v9125_v23 = vld [vmem:[#allocation7 + $0x2cc] ss:$16 sps:$4 sm:$0xff]  }
 0x3bc   :  { %6388 = vmatprep.subr.bf16.mxu0 %v9092_v13  ;;  %v9123_v13 = vld [vmem:[#allocation7 + $0x2c8] ss:$16 sps:$4 sm:$0xff]  }
 0x3bf   :  { %6389 = vmatpush2.bf16.msra.mxu0 %v9090_v7  ;;  %v9134_v7 = vld [vmem:[#allocation7 + $0x42c] ss:$16 sps:$4 sm:$0xff]  }
 0x3c0   :  { %6444 = vmatprep.subr.bf16.mxu0 %v9098_v29  ;;  %v9137_v29 = vld [vmem:[#allocation7 + $0x28c] ss:$16 sps:$4 sm:$0xff]  }
 0x3c2   :  { %v4553_v41 = vpop.f32.mrf.mxu0  ;;  %6391 = vmatmul.mubr.bf16.vlgmr.msra.gmra.mxu0 %v9738_v45  ;;  %v9108_v45 = vld [vmem:[#allocation7 + $0x4a8] ss:$16 sps:$4 sm:$0xff]  }
 0x3c3   :  { %v4596_v58 = vpop.f32.mrf.mxu1  ;;  %6445 = vmatpush1.bf16.msra.mxu0 %v9096_v44  ;;  %6476 = vmatprep.mubr.bf16.mxu0 %v9822_v9  ;;  %v4554_v49 = vadd.f32 %v4553_v41, %v4511_v42  ;;  %v9143_v44 = vld [vmem:[#allocation7 + $0x26c] ss:$16 sps:$4 sm:$0xff]   ;;  %v9147_v41 = vld [vmem:[#allocation7 + $0x248] ss:$16 sps:$4 sm:$0xff]  }
 0x3c4   :  { %v4555_v40 = vpop.f32.mrf.mxu0  ;;  %6446 = vmatprep.subr.bf16.mxu0 %v9104_v38  ;;  %v9144_v38 = vld [vmem:[#allocation7 + $0x5e8] ss:$16 sps:$4 sm:$0xff]  }
 0x3c5   :  { %v4556_v57 = vadd.f32 %v4555_v40, %v4513_v30  ;;  %v4598_v31 = vpop.f32.mrf.mxu1  ;;  %v4597_v12 = vadd.f32 %v4596_v58, %v4554_v49  ;;  %v9150_v30 = vld [vmem:[#allocation7 + $0x5c8] ss:$16 sps:$4 sm:$0xff]   ;;  %v9158_v58 = vld [vmem:[#allocation7 + $0x5ac] ss:$16 sps:$4 sm:$0xff]  }
 0x3c6   :  { %v4557_v43 = vpop.f32.mrf.mxu0  ;;  %v9156_v42 = vld [vmem:[#allocation7 + $0x5a8] ss:$16 sps:$4 sm:$0xff]   ;;  %v9161_v40 = vld [vmem:[#allocation7 + $0x20c] ss:$16 sps:$4 sm:$0xff]  }
 0x3c7   :  { %v4558_v56 = vadd.f32 %v4557_v43, %v4515_v63  ;;  %v4600_v22 = vpop.f32.mrf.mxu1  ;;  %6447 = vmatpush1.bf16.msra.mxu0 %v9102_v53  ;;  %v4599_v35 = vadd.f32 %v4598_v31, %v4556_v57  ;;  %v4611_v6 = vmax.f32 %v4597_v12, 0.0  ;;  %v9153_v53 = vld [vmem:[#allocation7 + $0x228] ss:$16 sps:$4 sm:$0xff]   ;;  %v9167_v31 = vld [vmem:[#allocation7 + $0x3ec] ss:$16 sps:$4 sm:$0xff]  }
 0x3c8   :  { %v4559_v5 = vpop.f32.mrf.mxu0  ;;  %6448 = vmatprep.subr.bf16.mxu0 %v9110_v47  ;;  %v9164_v47 = vld [vmem:[#allocation7 + $0x58c] ss:$16 sps:$4 sm:$0xff]   ;;  %v9159_v63 = vld [vmem:[#allocation7 + $0x208] ss:$16 sps:$4 sm:$0xff]  }
 0x3c9   :  { %v4601_v9 = vadd.f32 %v4600_v22, %v4558_v56  ;;  %v4560_v1 = vadd.f32 %v4559_v5, %v4517_v20  ;;  %v4602_v2 = vpop.f32.mrf.mxu1  ;;  %v4612_v11 = vmax.f32 %v4599_v35, 0.0  ;;  %v9162_v57 = vld [vmem:[#allocation7 + $0x588] ss:$16 sps:$4 sm:$0xff]   ;;  %v9170_v49 = vld [vmem:[#allocation7 + $0x56c] ss:$16 sps:$4 sm:$0xff]  }
 0x3ca   :  { %v9165_v43 = vld [vmem:[#allocation7 + $0x3e8] ss:$16 sps:$4 sm:$0xff]   ;;  %v9173_v56 = vld [vmem:[#allocation7 + $0x3cc] ss:$16 sps:$4 sm:$0xff]  }
 0x3cb   :  { %v4603_v3 = vadd.f32 %v4602_v2, %v4560_v1  ;;  %6449 = vmatpush1.bf16.msra.mxu0 %v9108_v45  ;;  %v4619_v36 = vmax.f32 %v4601_v9, 0.0  ;;  %v9168_v20 = vld [vmem:[#allocation7 + $0x568] ss:$16 sps:$4 sm:$0xff]   ;;  %v9176_v22 = vld [vmem:[#allocation7 + $0x54c] ss:$16 sps:$4 sm:$0xff]  }
 0x3cc   :  { %6450 = vmatprep.subr.bf16.mxu0 %v9116_v28  ;;  %v9171_v45 = vld [vmem:[#allocation7 + $0x3c8] ss:$16 sps:$4 sm:$0xff]   ;;  %v9179_v28 = vld [vmem:[#allocation7 + $0x3ac] ss:$16 sps:$4 sm:$0xff]  }
 0x3cd   :  { %v4620_v33 = vmax.f32 %v4603_v3, 0.0  ;;  %v9847_v48 = vpack.c.bf16 %v4619_v36, %v4611_v6  ;;  %v9174_v5 = vld [vmem:[#allocation7 + $0x548] ss:$16 sps:$4 sm:$0xff]   ;;  %v9182_v35 = vld [vmem:[#allocation7 + $0x52c] ss:$16 sps:$4 sm:$0xff]  }
 0x3ce   :  { %v9177_v9 = vld [vmem:[#allocation7 + $0x3a8] ss:$16 sps:$4 sm:$0xff]   ;;  %v9185_v12 = vld [vmem:[#allocation7 + $0x38c] ss:$16 sps:$4 sm:$0xff]  }
 0x3cf   :  { %v9845_v8 = vpack.c.bf16 %v4620_v33, %v4612_v11  ;;  %6451 = vmatpush1.bf16.msra.mxu0 %v9114_v59  ;;  %v9180_v1 = vld [vmem:[#allocation7 + $0x528] ss:$16 sps:$4 sm:$0xff]   ;;  %v9188_v2 = vld [vmem:[#allocation7 + $0x50c] ss:$16 sps:$4 sm:$0xff]  }
 0x3d0   :  { %6452 = vmatprep.subr.bf16.mxu0 %v9122_v4  ;;  %v9183_v3 = vld [vmem:[#allocation7 + $0x388] ss:$16 sps:$4 sm:$0xff]   ;;  %v9191_v36 = vld [vmem:[#allocation7 + $0x36c] ss:$16 sps:$4 sm:$0xff]  }
 0x3d1   :  { %6347 = vmatprep.mubr.bf16.mxu1 %v9845_v8  ;;  %v9186_v59 = vld [vmem:[#allocation7 + $0x508] ss:$16 sps:$4 sm:$0xff]   ;;  %v9251_v4 = vld [vmem:[#allocation8 + $0x74] ss:$8 sps:$4 sm:$0xff]  }
 0x3d2   :  { %6348 = vmatmul.mubr.bf16.vlgmr.msra.gmra.mxu1 %v9847_v48  ;;  %v9189_v11 = vld [vmem:[#allocation7 + $0x368] ss:$16 sps:$4 sm:$0xff]   ;;  %v9194_v33 = vld [vmem:[#allocation7 + $0x34c] ss:$16 sps:$4 sm:$0xff]  }
 0x3d3   :  { %6402 = vmatpush1.bf16.msra.mxu1 %v9117_v60  ;;  %6433 = vmatprep.mubr.bf16.mxu1 %v9797_v14  ;;  %v9138_v14 = vld [vmem:[#allocation7 + $0x408] ss:$16 sps:$4 sm:$0xff]   ;;  %v9254_v60 = vld [vmem:[#allocation8 + $0x64] ss:$8 sps:$4 sm:$0xff]  }
 0x3d4   :  { %6453 = vmatpush1.bf16.msra.mxu0 %v9120_v55  ;;  %6403 = vmatprep.subr.bf16.mxu1 %v9125_v23  ;;  %v9249_v6 = vld [vmem:[#allocation8 + $0x70] ss:$8 sps:$4 sm:$0xff]   ;;  %v9197_v23 = vld [vmem:[#allocation7 + $0x32c] ss:$16 sps:$4 sm:$0xff]  }
 0x3d5   :  { %6454 = vmatprep.subr.bf16.mxu0 %v9128_v24  ;;  %v9192_v55 = vld [vmem:[#allocation7 + $0x348] ss:$16 sps:$4 sm:$0xff]  }
 0x3d6   :  { %v9252_v24 = vld [vmem:[#allocation8 + $0x60] ss:$8 sps:$4 sm:$0xff]  }
 0x3d7   :  { %6404 = vmatpush1.bf16.msra.mxu1 %v9123_v13  ;;  %v9257_v13 = vld [vmem:[#allocation8 + $0x54] ss:$8 sps:$4 sm:$0xff]  }
 0x3d8   :  { %6455 = vmatpush1.bf16.msra.mxu0 %v9126_v16  ;;  %6405 = vmatprep.subr.bf16.mxu1 %v9131_v25  ;;  %v9195_v16 = vld [vmem:[#allocation7 + $0x328] ss:$16 sps:$4 sm:$0xff]   ;;  %v9200_v25 = vld [vmem:[#allocation7 + $0x30c] ss:$16 sps:$4 sm:$0xff]  }
 0x3d9   :  { %6456 = vmatprep.subr.bf16.mxu0 %v9134_v7  ;;  %v9255_v7 = vld [vmem:[#allocation8 + $0x50] ss:$8 sps:$4 sm:$0xff]  }
 0x3db   :  { %6406 = vmatpush1.bf16.msra.mxu1 %v9129_v26  ;;  %v9260_v26 = vld [vmem:[#allocation8 + $0x44] ss:$8 sps:$4 sm:$0xff]  }
 0x3dc   :  { %6457 = vmatpush1.bf16.msra.mxu0 %v9132_v27  ;;  %6407 = vmatprep.subr.bf16.mxu1 %v9137_v29  ;;  %v9198_v27 = vld [vmem:[#allocation7 + $0x308] ss:$16 sps:$4 sm:$0xff]   ;;  %v9203_v29 = vld [vmem:[#allocation7 + $0x6ec] ss:$16 sps:$4 sm:$0xff]  }
 0x3dd   :  { %6458 = vmatprep.subr.bf16.mxu0 %v9140_v37  ;;  %v9263_v37 = vld [vmem:[#allocation8 + $0x34] ss:$8 sps:$4 sm:$0xff]  }
 0x3df   :  { %6408 = vmatpush1.bf16.msra.mxu1 %v9135_v52  ;;  %v9201_v52 = vld [vmem:[#allocation7 + $0x6e8] ss:$16 sps:$4 sm:$0xff]  }
 0x3e0   :  { %6459 = vmatpush1.bf16.msra.mxu0 %v9138_v14  ;;  %6409 = vmatprep.subr.bf16.mxu1 %v9143_v44  ;;  %v9206_v14 = vld [vmem:[#allocation7 + $0x6cc] ss:$16 sps:$4 sm:$0xff]   ;;  %v9261_v44 = vld [vmem:[#allocation8 + $0x30] ss:$8 sps:$4 sm:$0xff]  }
 0x3e1   :  { %6460 = vmatprep.subr.bf16.mxu0 %v9146_v62  ;;  %v9266_v62 = vld [vmem:[#allocation8 + $0x24] ss:$8 sps:$4 sm:$0xff]  }
 0x3e3   :  { %6410 = vmatpush1.bf16.msra.mxu1 %v9141_v34  ;;  %v9204_v34 = vld [vmem:[#allocation7 + $0x6c8] ss:$16 sps:$4 sm:$0xff]  }
 0x3e4   :  { %6461 = vmatpush2.bf16.msra.mxu0 %v9144_v38  ;;  %6411 = vmatprep.subr.bf16.mxu1 %v9149_v15  ;;  %v9209_v38 = vld [vmem:[#allocation7 + $0x6ac] ss:$16 sps:$4 sm:$0xff]   ;;  %v9264_v15 = vld [vmem:[#allocation8 + $0x20] ss:$8 sps:$4 sm:$0xff]  }
 0x3e5   :  { %6462 = vmatprep.subr.bf16.mxu0 %v9152_v39  ;;  %v9269_v39 = vld [vmem:[#allocation8 + $0x14] ss:$8 sps:$4 sm:$0xff]  }
 0x3e7   :  { %6412 = vmatpush1.bf16.msra.mxu1 %v9147_v41  ;;  %v9207_v41 = vld [vmem:[#allocation7 + $0x6a8] ss:$16 sps:$4 sm:$0xff]  }
 0x3e8   :  { %6463 = vmatpush2.bf16.msra.mxu0 %v9150_v30  ;;  %6413 = vmatprep.subr.bf16.mxu1 %v9155_v51  ;;  %v9212_v30 = vld [vmem:[#allocation7 + $0x68c] ss:$16 sps:$4 sm:$0xff]   ;;  %v9267_v51 = vld [vmem:[#allocation8 + $0x10] ss:$8 sps:$4 sm:$0xff]  }
 0x3e9   :  { %6464 = vmatprep.subr.bf16.mxu0 %v9158_v58  ;;  %v9272_v58 = vld [vmem:[#allocation8 + $0x4] ss:$8 sps:$4 sm:$0xff]  }
 0x3eb   :  { %6414 = vmatpush1.bf16.msra.mxu1 %v9153_v53  ;;  %v9215_v53 = vld [vmem:[#allocation7 + $0x66c] ss:$16 sps:$4 sm:$0xff]  }
 0x3ec   :  { %6465 = vmatpush2.bf16.msra.mxu0 %v9156_v42  ;;  %6415 = vmatprep.subr.bf16.mxu1 %v9161_v40  ;;  %v9275_v42 = vld [vmem:[#allocation8 + $0xf4] ss:$8 sps:$4 sm:$0xff]   ;;  %v9213_v40 = vld [vmem:[#allocation7 + $0x668] ss:$16 sps:$4 sm:$0xff]  }
 0x3ed   :  { %6466 = vmatprep.subr.bf16.mxu0 %v9164_v47  ;;  %v9218_v47 = vld [vmem:[#allocation7 + $0x64c] ss:$16 sps:$4 sm:$0xff]  }
 0x3ef   :  { %6416 = vmatpush1.bf16.msra.mxu1 %v9159_v63  ;;  %v9273_v63 = vld [vmem:[#allocation8 + $0xf0] ss:$8 sps:$4 sm:$0xff]  }
 0x3f0   :  { %6467 = vmatpush2.bf16.msra.mxu0 %v9162_v57  ;;  %6417 = vmatprep.subr.bf16.mxu1 %v9167_v31  ;;  %v9278_v57 = vld [vmem:[#allocation8 + $0xe4] ss:$8 sps:$4 sm:$0xff]   ;;  %v9216_v31 = vld [vmem:[#allocation7 + $0x648] ss:$16 sps:$4 sm:$0xff]  }
 0x3f1   :  { %6468 = vmatprep.subr.bf16.mxu0 %v9170_v49  ;;  %v9221_v49 = vld [vmem:[#allocation7 + $0x62c] ss:$16 sps:$4 sm:$0xff]  }
 0x3f3   :  { %6418 = vmatpush2.bf16.msra.mxu1 %v9165_v43  ;;  %v9276_v43 = vld [vmem:[#allocation8 + $0xe0] ss:$8 sps:$4 sm:$0xff]  }
 0x3f4   :  { %6469 = vmatpush2.bf16.msra.mxu0 %v9168_v20  ;;  %6419 = vmatprep.subr.bf16.mxu1 %v9173_v56  ;;  %v9281_v20 = vld [vmem:[#allocation8 + $0xd4] ss:$8 sps:$4 sm:$0xff]   ;;  %v9219_v56 = vld [vmem:[#allocation7 + $0x628] ss:$16 sps:$4 sm:$0xff]  }
 0x3f5   :  { %6470 = vmatprep.subr.bf16.mxu0 %v9176_v22  ;;  %v9224_v22 = vld [vmem:[#allocation7 + $0x60c] ss:$16 sps:$4 sm:$0xff]  }
 0x3f7   :  { %6420 = vmatpush2.bf16.msra.mxu1 %v9171_v45  ;;  %v9279_v45 = vld [vmem:[#allocation8 + $0xd0] ss:$8 sps:$4 sm:$0xff]  }
 0x3f8   :  { %6471 = vmatpush2.bf16.msra.mxu0 %v9174_v5  ;;  %6421 = vmatprep.subr.bf16.mxu1 %v9179_v28  ;;  %v9284_v5 = vld [vmem:[#allocation8 + $0xc4] ss:$8 sps:$4 sm:$0xff]   ;;  %v9222_v28 = vld [vmem:[#allocation7 + $0x608] ss:$16 sps:$4 sm:$0xff]  }
 0x3f9   :  { %6472 = vmatprep.subr.bf16.mxu0 %v9182_v35  ;;  %v9227_v35 = vld [vmem:[#allocation7 + $0x7ec] ss:$16 sps:$4 sm:$0xff]  }
 0x3fb   :  { %6422 = vmatpush2.bf16.msra.mxu1 %v9177_v9  ;;  %v9282_v9 = vld [vmem:[#allocation8 + $0xc0] ss:$8 sps:$4 sm:$0xff]  }
 0x3fc   :  { %6473 = vmatpush2.bf16.msra.mxu0 %v9180_v1  ;;  %6423 = vmatprep.subr.bf16.mxu1 %v9185_v12  ;;  %v9287_v1 = vld [vmem:[#allocation8 + $0xb4] ss:$8 sps:$4 sm:$0xff]   ;;  %v9225_v12 = vld [vmem:[#allocation7 + $0x7e8] ss:$16 sps:$4 sm:$0xff]  }
 0x3fd   :  { %6474 = vmatprep.subr.bf16.mxu0 %v9188_v2  ;;  %v9230_v2 = vld [vmem:[#allocation7 + $0x7cc] ss:$16 sps:$4 sm:$0xff]  }
 0x3ff   :  { %6424 = vmatpush2.bf16.msra.mxu1 %v9183_v3  ;;  %v9285_v3 = vld [vmem:[#allocation8 + $0xb0] ss:$8 sps:$4 sm:$0xff]  }
 0x400   :  { %6475 = vmatpush2.bf16.msra.mxu0 %v9186_v59  ;;  %6425 = vmatprep.subr.bf16.mxu1 %v9191_v36  ;;  %v9290_v59 = vld [vmem:[#allocation8 + $0xa4] ss:$8 sps:$4 sm:$0xff]   ;;  %v9228_v36 = vld [vmem:[#allocation7 + $0x7c8] ss:$16 sps:$4 sm:$0xff]  }
 0x401   :  { %6937 = vmatprep.subr.bf16.mxu0 %v9251_v4  ;;  %v9233_v4 = vld [vmem:[#allocation7 + $0x7ac] ss:$16 sps:$4 sm:$0xff]  }
 0x403   :  { %6426 = vmatpush2.bf16.msra.mxu1 %v9189_v11  ;;  %6477 = vmatmul.mubr.bf16.vlgmr.msra.gmra.mxu0 %v9835_v46  ;;  %v9258_v46 = vld [vmem:[#allocation8 + $0x40] ss:$8 sps:$4 sm:$0xff]  }
 0x404   :  { %6427 = vmatprep.subr.bf16.mxu1 %v9194_v33  ;;  %6938 = vmatpush1.bf16.msra.mxu0 %v9249_v6  ;;  %v9288_v11 = vld [vmem:[#allocation8 + $0xa0] ss:$8 sps:$4 sm:$0xff]   ;;  %v9293_v33 = vld [vmem:[#allocation8 + $0x94] ss:$8 sps:$4 sm:$0xff]  }
 0x405   :  { %6939 = vmatprep.subr.bf16.mxu0 %v9254_v60  ;;  %v9231_v6 = vld [vmem:[#allocation7 + $0x7a8] ss:$16 sps:$4 sm:$0xff]   ;;  %v9236_v60 = vld [vmem:[#allocation7 + $0x78c] ss:$16 sps:$4 sm:$0xff]  }
 0x407   :  { %6428 = vmatpush2.bf16.msra.mxu1 %v9192_v55  ;;  %v9291_v55 = vld [vmem:[#allocation8 + $0x90] ss:$8 sps:$4 sm:$0xff]  }
 0x408   :  { %6429 = vmatprep.subr.bf16.mxu1 %v9197_v23  ;;  %6940 = vmatpush1.bf16.msra.mxu0 %v9252_v24  ;;  %v9296_v23 = vld [vmem:[#allocation8 + $0x84] ss:$8 sps:$4 sm:$0xff]   ;;  %v9234_v24 = vld [vmem:[#allocation7 + $0x788] ss:$16 sps:$4 sm:$0xff]  }
 0x409   :  { %6941 = vmatprep.subr.bf16.mxu0 %v9257_v13  ;;  %v9239_v13 = vld [vmem:[#allocation7 + $0x76c] ss:$16 sps:$4 sm:$0xff]  }
 0x40b   :  { %6430 = vmatpush2.bf16.msra.mxu1 %v9195_v16  ;;  %v9294_v16 = vld [vmem:[#allocation8 + $0x80] ss:$8 sps:$4 sm:$0xff]  }
 0x40c   :  { %6431 = vmatprep.subr.bf16.mxu1 %v9200_v25  ;;  %6942 = vmatpush1.bf16.msra.mxu0 %v9255_v7  ;;  %v9237_v25 = vld [vmem:[#allocation7 + $0x768] ss:$16 sps:$4 sm:$0xff]   ;;  %v9242_v7 = vld [vmem:[#allocation7 + $0x74c] ss:$16 sps:$4 sm:$0xff]  }
 0x40d   :  { %6943 = vmatprep.subr.bf16.mxu0 %v9260_v26  ;;  %v9240_v26 = vld [vmem:[#allocation7 + $0x748] ss:$16 sps:$4 sm:$0xff]  }
 0x40f   :  { %6432 = vmatpush2.bf16.msra.mxu1 %v9198_v27  ;;  %v9245_v27 = vld [vmem:[#allocation7 + $0x72c] ss:$16 sps:$4 sm:$0xff]  }
 0x410   :  { %6487 = vmatprep.subr.bf16.mxu1 %v9203_v29  ;;  %6944 = vmatpush1.bf16.msra.mxu0 %v9258_v46  ;;  %v9243_v29 = vld [vmem:[#allocation7 + $0x728] ss:$16 sps:$4 sm:$0xff]   ;;  %v9248_v46 = vld [vmem:[#allocation7 + $0x70c] ss:$16 sps:$4 sm:$0xff]  }
 0x411   :  { %6945 = vmatprep.subr.bf16.mxu0 %v9263_v37  ;;  %v9246_v37 = vld [vmem:[#allocation7 + $0x708] ss:$16 sps:$4 sm:$0xff]  }
 0x412   :  { %6434 = vmatmul.mubr.bf16.vlgmr.msra.gmra.mxu1 %v9772_v61  ;;  %v9210_v61 = vld [vmem:[#allocation7 + $0x688] ss:$16 sps:$4 sm:$0xff]  }
 0x413   :  { %6488 = vmatpush1.bf16.msra.mxu1 %v9201_v52  ;;  %6519 = vmatprep.mubr.bf16.mxu1 %v9845_v8  ;;  %v9270_v8 = vld [vmem:[#allocation8] ss:$8 sps:$4 sm:$0xff]   ;;  %v9297_v52 = vld [vmem:[#allocation8 + $0x170] ss:$8 sps:$4 sm:$0xff]  }
 0x414   :  { %6489 = vmatprep.subr.bf16.mxu1 %v9206_v14  ;;  %6946 = vmatpush1.bf16.msra.mxu0 %v9261_v44  ;;  %v9299_v14 = vld [vmem:[#allocation8 + $0x174] ss:$8 sps:$4 sm:$0xff]   ;;  %v9302_v44 = vld [vmem:[#allocation8 + $0x164] ss:$8 sps:$4 sm:$0xff]  }
 0x415   :  { %6947 = vmatprep.subr.bf16.mxu0 %v9266_v62  ;;  %v9300_v62 = vld [vmem:[#allocation8 + $0x160] ss:$8 sps:$4 sm:$0xff]  }
 0x417   :  { %6490 = vmatpush1.bf16.msra.mxu1 %v9204_v34  ;;  %v9305_v34 = vld [vmem:[#allocation8 + $0x154] ss:$8 sps:$4 sm:$0xff]  }
 0x418   :  { %6491 = vmatprep.subr.bf16.mxu1 %v9209_v38  ;;  %6948 = vmatpush1.bf16.msra.mxu0 %v9264_v15  ;;  %v9303_v38 = vld [vmem:[#allocation8 + $0x150] ss:$8 sps:$4 sm:$0xff]   ;;  %v9308_v15 = vld [vmem:[#allocation8 + $0x144] ss:$8 sps:$4 sm:$0xff]  }
 0x419   :  { %6949 = vmatprep.subr.bf16.mxu0 %v9269_v39  ;;  %v9306_v39 = vld [vmem:[#allocation8 + $0x140] ss:$8 sps:$4 sm:$0xff]  }
 0x41b   :  { %6492 = vmatpush1.bf16.msra.mxu1 %v9207_v41  ;;  %v9311_v41 = vld [vmem:[#allocation8 + $0x134] ss:$8 sps:$4 sm:$0xff]  }
 0x41c   :  { %6493 = vmatprep.subr.bf16.mxu1 %v9212_v30  ;;  %6950 = vmatpush1.bf16.msra.mxu0 %v9267_v51  ;;  %v9309_v30 = vld [vmem:[#allocation8 + $0x130] ss:$8 sps:$4 sm:$0xff]   ;;  %v9312_v51 = vld [vmem:[#allocation8 + $0x120] ss:$8 sps:$4 sm:$0xff]  }
 0x41d   :  { %6951 = vmatprep.subr.bf16.mxu0 %v9272_v58  ;;  %v9317_v58 = vld [vmem:[#allocation8 + $0x114] ss:$8 sps:$4 sm:$0xff]  }
 0x41f   :  { %6494 = vmatpush1.bf16.msra.mxu1 %v9210_v61  ;;  %v9315_v61 = vld [vmem:[#allocation8 + $0x110] ss:$8 sps:$4 sm:$0xff]  }
 0x420   :  { %6495 = vmatprep.subr.bf16.mxu1 %v9215_v53  ;;  %6952 = vmatpush1.bf16.msra.mxu0 %v9270_v8  ;;  %v9320_v53 = vld [vmem:[#allocation8 + $0x104] ss:$8 sps:$4 sm:$0xff]   ;;  %v9318_v8 = vld [vmem:[#allocation8 + $0x100] ss:$8 sps:$4 sm:$0xff]  }
 0x421   :  { %6953 = vmatprep.subr.bf16.mxu0 %v9275_v42  ;;  %v9323_v42 = vld [vmem:[#allocation8 + $0x1f4] ss:$8 sps:$4 sm:$0xff]  }
 0x423   :  { %6496 = vmatpush1.bf16.msra.mxu1 %v9213_v40  ;;  %v9321_v40 = vld [vmem:[#allocation8 + $0x1f0] ss:$8 sps:$4 sm:$0xff]  }
 0x424   :  { %6497 = vmatprep.subr.bf16.mxu1 %v9218_v47  ;;  %6954 = vmatpush2.bf16.msra.mxu0 %v9273_v63  ;;  %v9326_v47 = vld [vmem:[#allocation8 + $0x1e4] ss:$8 sps:$4 sm:$0xff]   ;;  %v6220_v63 = vpop.f32.mrf.mxu0 }
 0x425   :  { %6955 = vmatprep.subr.bf16.mxu0 %v9278_v57  ;;  %v9324_v57 = vld [vmem:[#allocation8 + $0x1e0] ss:$8 sps:$4 sm:$0xff]  }
 0x427   :  { %6498 = vmatpush1.bf16.msra.mxu1 %v9216_v31  ;;  %v9329_v31 = vld [vmem:[#allocation8 + $0x1d4] ss:$8 sps:$4 sm:$0xff]  }
 0x428   :  { %6499 = vmatprep.subr.bf16.mxu1 %v9221_v49  ;;  %6956 = vmatpush2.bf16.msra.mxu0 %v9276_v43  ;;  %v6222_v49 = vpop.f32.mrf.mxu0  ;;  %v9327_v43 = vld [vmem:[#allocation8 + $0x1d0] ss:$8 sps:$4 sm:$0xff]  }
 0x429   :  { %6957 = vmatprep.subr.bf16.mxu0 %v9281_v20  ;;  %v9332_v20 = vld [vmem:[#allocation8 + $0x1c4] ss:$8 sps:$4 sm:$0xff]  }
 0x42b   :  { %6500 = vmatpush1.bf16.msra.mxu1 %v9219_v56  ;;  %v6224_v56 = vpop.f32.mrf.mxu0 }
 0x42c   :  { %6501 = vmatprep.subr.bf16.mxu1 %v9224_v22  ;;  %6958 = vmatpush2.bf16.msra.mxu0 %v9279_v45  ;;  %v6263_v22 = vpop.f32.mrf.mxu1  ;;  %v9330_v45 = vld [vmem:[#allocation8 + $0x1c0] ss:$8 sps:$4 sm:$0xff]  }
 0x42d   :  { %6959 = vmatprep.subr.bf16.mxu0 %v9284_v5  ;;  %v9335_v5 = vld [vmem:[#allocation8 + $0x1b4] ss:$8 sps:$4 sm:$0xff]  }
 0x42f   :  { %6502 = vmatpush1.bf16.msra.mxu1 %v9222_v28  ;;  %v6226_v28 = vpop.f32.mrf.mxu0 }
 0x430   :  { %6503 = vmatprep.subr.bf16.mxu1 %v9227_v35  ;;  %6960 = vmatpush2.bf16.msra.mxu0 %v9282_v9  ;;  %v6265_v35 = vpop.f32.mrf.mxu1 }
 0x431   :  { %6961 = vmatprep.subr.bf16.mxu0 %v9287_v1  ;;  %v9333_v1 = vld [vmem:[#allocation8 + $0x1b0] ss:$8 sps:$4 sm:$0xff]  }
 0x433   :  { %6504 = vmatpush2.bf16.msra.mxu1 %v9225_v12  ;;  %v9856_v12 = vld [vmem:[#allocation11 + $0x10] sm:$0xf] }
 0x434   :  { %6505 = vmatprep.subr.bf16.mxu1 %v9230_v2  ;;  %6962 = vmatpush2.bf16.msra.mxu0 %v9285_v3  ;;  %v4893_v2 = vrot.slane %v9856_v12, %v9619_v17  ;;  %v4889_v3 = vrot.slane %v9856_v12, %v9622_v18 }
 0x435   :  { %6963 = vmatprep.subr.bf16.mxu0 %v9290_v59  ;;  %v6267_v59 = vpop.f32.mrf.mxu1 }
 0x437   :  { %6506 = vmatpush2.bf16.msra.mxu1 %v9228_v36 }
 0x438   :  { %6507 = vmatprep.subr.bf16.mxu1 %v9233_v4  ;;  %6964 = vmatpush2.bf16.msra.mxu0 %v9288_v11  ;;  %v6223_v4 = vadd.f32 %v6222_v49, %v4893_v2  ;;  %v6225_v11 = vadd.f32 %v6224_v56, %v4889_v3  ;;  %v9349_v49 = vld [vmem:[#allocation10 + $0x68] sm:$0xff]   ;;  %v9352_v56 = vld [vmem:[#allocation10 + $0x20] sm:$0xff]  }
 0x439   :  { %6965 = vmatprep.subr.bf16.mxu0 %v9293_v33  ;;  %v6221_v33 = vadd.f32 %v6220_v63, %v4889_v3  ;;  %v9346_v63 = vld [vmem:[#allocation10 + $0x38] sm:$0xff]  }
 0x43b   :  { %6508 = vmatpush2.bf16.msra.mxu1 %v9231_v6  ;;  %v6269_v6 = vpop.f32.mrf.mxu1 }
 0x43c   :  { %6509 = vmatprep.subr.bf16.mxu1 %v9236_v60  ;;  %6966 = vmatpush2.bf16.msra.mxu0 %v9291_v55  ;;  %v6227_v55 = vadd.f32 %v6226_v28, %v4893_v2 }
 0x43d   :  { %6967 = vmatprep.subr.bf16.mxu0 %v9296_v23 }
 0x43f   :  { %6510 = vmatpush2.bf16.msra.mxu1 %v9234_v24  ;;  %v6266_v24 = vadd.f32 %v6265_v35, %v6223_v4 }
 0x440   :  { %6511 = vmatprep.subr.bf16.mxu1 %v9239_v13  ;;  %6968 = vmatpush2.bf16.msra.mxu0 %v9294_v16  ;;  %v6268_v13 = vadd.f32 %v6267_v59, %v6225_v11  ;;  %v9338_v16 = vld [vmem:[#allocation8 + $0x1a4] ss:$8 sps:$4 sm:$0xff]   ;;  %v4901_v59 = vrot.slane %v9856_v12, %v9625_v19 }
 0x442   :  { %v6306_v9 = vpop.f32.mrf.mxu0 }
 0x443   :  { %6512 = vmatpush2.bf16.msra.mxu1 %v9237_v25  ;;  %v6264_v25 = vadd.f32 %v6263_v22, %v6221_v33  ;;  %v9353_v22 = vld [vmem:[#allocation10 + $0x58] sm:$0xff]  }
 0x444   :  { %6513 = vmatprep.subr.bf16.mxu1 %v9242_v7  ;;  %v6308_v36 = vpop.f32.mrf.mxu0 }
 0x446   :  { %v6310_v60 = vpop.f32.mrf.mxu0 }
 0x447   :  { %6514 = vmatpush2.bf16.msra.mxu1 %v9240_v26 }
 0x448   :  { %6515 = vmatprep.subr.bf16.mxu1 %v9245_v27  ;;  %v6312_v7 = vpop.f32.mrf.mxu0  ;;  %v9336_v27 = vld [vmem:[#allocation8 + $0x1a0] ss:$8 sps:$4 sm:$0xff]  }
 0x44b   :  { %6516 = vmatpush2.bf16.msra.mxu1 %v9243_v29  ;;  %v6270_v29 = vadd.f32 %v6269_v6, %v6227_v55 }
 0x44c   :  { %6517 = vmatprep.subr.bf16.mxu1 %v9248_v46  ;;  %v6309_v46 = vadd.f32 %v6308_v36, %v6266_v24  ;;  %v4897_v36 = vrot.slane %v9856_v12, %v9630_v21 }
 0x44f   :  { %6518 = vmatpush2.bf16.msra.mxu1 %v9246_v37  ;;  %v6311_v37 = vadd.f32 %v6310_v60, %v6268_v13 }
 0x450   :  { %6980 = vmatprep.subr.bf16.mxu1 %v9299_v14 }
 0x452   :  { %6520 = vmatmul.mubr.bf16.vlgmr.msra.gmra.mxu1 %v9847_v48  ;;  %v9314_v48 = vld [vmem:[#allocation8 + $0x124] ss:$8 sps:$4 sm:$0xff]  }
 0x453   :  { %6981 = vmatpush1.bf16.msra.mxu1 %v9297_v52  ;;  %v6307_v52 = vadd.f32 %v6306_v9, %v6264_v25 }
 0x454   :  { %6982 = vmatprep.subr.bf16.mxu1 %v9302_v44  ;;  %v6313_v44 = vadd.f32 %v6312_v7, %v6270_v29 }
 0x457   :  { %6983 = vmatpush1.bf16.msra.mxu1 %v9300_v62 }
 0x458   :  { %6984 = vmatprep.subr.bf16.mxu1 %v9305_v34 }
 0x45b   :  { %6985 = vmatpush1.bf16.msra.mxu1 %v9303_v38  ;;  %v9341_v38 = vld [vmem:[#allocation8 + $0x194] ss:$8 sps:$4 sm:$0xff]  }
 0x45c   :  { %6986 = vmatprep.subr.bf16.mxu1 %v9308_v15 }
 0x45f   :  { %6987 = vmatpush1.bf16.msra.mxu1 %v9306_v39 }
 0x460   :  { %6988 = vmatprep.subr.bf16.mxu1 %v9311_v41  ;;  %v9339_v41 = vld [vmem:[#allocation8 + $0x190] ss:$8 sps:$4 sm:$0xff]  }
 0x463   :  { %6989 = vmatpush1.bf16.msra.mxu1 %v9309_v30 }
 0x464   :  { %6990 = vmatprep.subr.bf16.mxu1 %v9314_v48 }
 0x467   :  { %6991 = vmatpush1.bf16.msra.mxu1 %v9312_v51 }
 0x468   :  { %6992 = vmatprep.subr.bf16.mxu1 %v9317_v58 }
 0x46b   :  { %6993 = vmatpush1.bf16.msra.mxu1 %v9315_v61  ;;  %v9344_v61 = vld [vmem:[#allocation8 + $0x184] ss:$8 sps:$4 sm:$0xff]  }
 0x46c   :  { %6994 = vmatprep.subr.bf16.mxu1 %v9320_v53 }
 0x46f   :  { %6995 = vmatpush1.bf16.msra.mxu1 %v9318_v8  ;;  %v9342_v8 = vld [vmem:[#allocation8 + $0x180] ss:$8 sps:$4 sm:$0xff]  }
 0x470   :  { %6996 = vmatprep.subr.bf16.mxu1 %v9323_v42 }
 0x473   :  { %6997 = vmatpush2.bf16.msra.mxu1 %v9321_v40 }
 0x474   :  { %6998 = vmatprep.subr.bf16.mxu1 %v9326_v47  ;;  %v9345_v47 = vld [vmem:[#allocation10 + $0x78] sm:$0xff]  }
 0x475   :  { %8826 = vmatprep.subr.bf16.mxu0 %v9345_v47  ;;  %v9360_v47 = vld [vmem:[#allocation10] sm:$0xff]  }
 0x477   :  { %6999 = vmatpush2.bf16.msra.mxu1 %v9324_v57  ;;  %v9347_v57 = vld [vmem:[#allocation10 + $0x70] sm:$0xff]  }
 0x478   :  { %7000 = vmatprep.subr.bf16.mxu1 %v9329_v31  ;;  %v9348_v31 = vld [vmem:[#allocation10 + $0x30] sm:$0xff]  }
 0x47b   :  { %7001 = vmatpush2.bf16.msra.mxu1 %v9327_v43  ;;  %v9350_v43 = vld [vmem:[#allocation10 + $0x28] sm:$0xff]  }
 0x47c   :  { %7002 = vmatprep.subr.bf16.mxu1 %v9332_v20  ;;  %v9351_v20 = vld [vmem:[#allocation10 + $0x60] sm:$0xff]  }
 0x47f   :  { %7003 = vmatpush2.bf16.msra.mxu1 %v9330_v45  ;;  %v9354_v45 = vld [vmem:[#allocation10 + $0x18] sm:$0xff]  }
 0x480   :  { %7004 = vmatprep.subr.bf16.mxu1 %v9335_v5 }
 0x482   :  { %v6392_v5 = vpop.f32.mrf.mxu0 }
 0x483   :  { %7005 = vmatpush2.bf16.msra.mxu1 %v9333_v1  ;;  %v6393_v60 = vadd.f32 %v6392_v5, %v4897_v36 }
 0x484   :  { %7006 = vmatprep.subr.bf16.mxu1 %v9338_v16  ;;  %v6394_v28 = vpop.f32.mrf.mxu0 }
 0x485   :  { %v6395_v33 = vadd.f32 %v6394_v28, %v4901_v59 }
 0x486   :  { %v6396_v35 = vpop.f32.mrf.mxu0 }
 0x487   :  { %7007 = vmatpush2.bf16.msra.mxu1 %v9336_v27  ;;  %v6397_v6 = vadd.f32 %v6396_v35, %v4897_v36  ;;  %v717_v36 = vld [vmem:[#allocation5 + $0x1320] sm:$0xff] }
 0x488   :  { %7008 = vmatprep.subr.bf16.mxu1 %v9341_v38  ;;  %v6398_v1 = vpop.f32.mrf.mxu0 }
 0x48b   :  { %7009 = vmatpush2.bf16.msra.mxu1 %v9339_v41 }
 0x48c   :  { %7010 = vmatprep.subr.bf16.mxu1 %v9344_v61  ;;  %v9355_v61 = vld [vmem:[#allocation10 + $0x50] sm:$0xff]  }
 0x48f   :  { %7011 = vmatpush2.bf16.msra.mxu1 %v9342_v8  ;;  %v9357_v8 = vld [vmem:[#allocation10 + $0x48] sm:$0xff]  }
 0x492   :  { %v6349_v23 = vpop.f32.mrf.mxu1 }
 0x493   :  { %v6350_v15 = vadd.f32 %v6349_v23, %v6307_v52  ;;  %v6399_v23 = vadd.f32 %v6398_v1, %v4901_v59  ;;  %v725_v1 = vld [vmem:[#allocation5 + $0x1360] sm:$0xff] }
 0x494   :  { %v6351_v26 = vpop.f32.mrf.mxu1  ;;  %v713_v59 = vld [vmem:[#allocation5 + $0x1300] sm:$0xff] }
 0x495   :  { %v6352_v62 = vadd.f32 %v6351_v26, %v6309_v46  ;;  %v6530_v53 = vmax.f32 %v6350_v15, 0.0 }
 0x496   :  { %v6353_v14 = vpop.f32.mrf.mxu1 }
 0x497   :  { %v6354_v34 = vadd.f32 %v6353_v14, %v6311_v37  ;;  %v6531_v51 = vmax.f32 %v6352_v62, 0.0 }
 0x498   :  { %v6355_v39 = vpop.f32.mrf.mxu1 }
 0x499   :  { %v6356_v30 = vadd.f32 %v6355_v39, %v6313_v44  ;;  %v6534_v48 = vmax.f32 %v6354_v34, 0.0 }
 0x49b   :  { %v6535_v58 = vmax.f32 %v6356_v30, 0.0  ;;  %v6538_v40 = vpack.c.bf16 %v6534_v48, %v6530_v53  ;;  %v9356_v53 = vld [vmem:[#allocation10 + $0x10] sm:$0xff]  }
 0x49d   :  { %v6539_v42 = vpack.c.bf16 %v6535_v58, %v6531_v51 }
 0x49f   :  { %6969 = vmatprep.mubr.bf16.mxu0 %v6539_v42  ;;  %v9358_v42 = vld [vmem:[#allocation10 + $0x8] sm:$0xff]  }
 0x4a0   :  { %6970 = vmatmul.mubr.bf16.vlgmr.msra.gmra.mxu0 %v6538_v40  ;;  %v9359_v40 = vld [vmem:[#allocation10 + $0x40] sm:$0xff]  }
 0x4a1   :  { %8827 = vmatpush3.bf16.msra.mxu0 %v9346_v63  ;;  %v737_v63 = vld [vmem:[#allocation5 + $0x13c0] sm:$0xff] }
 0x4a2   :  { %8828 = vmatprep.subr.bf16.mxu0 %v9347_v57  ;;  %v741_v57 = vld [vmem:[#allocation5 + $0x13e0] sm:$0xff] }
 0x4a5   :  { %8829 = vmatpush3.bf16.msra.mxu0 %v9348_v31  ;;  %v9867_v31 = vld [vmem:[#allocation5 + $0x13c8] sm:$0xff] }
 0x4a6   :  { %8830 = vmatprep.subr.bf16.mxu0 %v9349_v49  ;;  %v8802_v49 = vcombine.low %v737_v63, %v741_v57 }
 0x4a9   :  { %8831 = vmatpush3.bf16.msra.mxu0 %v9350_v43  ;;  %v8803_v43 = vcombine.high %v737_v63, %v741_v57  ;;  %v714_v57 = vld [vmem:[#allocation5 + $0x1308] sm:$0xff] }
 0x4aa   :  { %8832 = vmatprep.subr.bf16.mxu0 %v9351_v20  ;;  %v742_v20 = vld [vmem:[#allocation5 + $0x13e8] sm:$0xff] }
 0x4ab   :  { %v8805_v5 = vcombine.high %v9867_v31, %v742_v20  ;;  %7568 = vmatprep.subr.bf16.mxu1 %v8803_v43 }
 0x4ad   :  { %8833 = vmatpush3.bf16.msra.mxu0 %v9352_v56  ;;  %v729_v56 = vld [vmem:[#allocation5 + $0x1380] sm:$0xff] }
 0x4ae   :  { %8834 = vmatprep.subr.bf16.mxu0 %v9353_v22  ;;  %v733_v22 = vld [vmem:[#allocation5 + $0x13a0] sm:$0xff] }
 0x4af   :  { %v8795_v28 = vcombine.high %v729_v56, %v733_v22  ;;  %v8794_v35 = vcombine.low %v729_v56, %v733_v22  ;;  %v710_v56 = vld [vmem:[#allocation5 + $0x12e8] sm:$0xff] }
 0x4b1   :  { %8835 = vmatpush3.bf16.msra.mxu0 %v9354_v45  ;;  %v8804_v45 = vcombine.low %v9867_v31, %v742_v20  ;;  %v718_v31 = vld [vmem:[#allocation5 + $0x1328] sm:$0xff] }
 0x4b2   :  { %8836 = vmatprep.subr.bf16.mxu0 %v9355_v61  ;;  %v8781_v43 = vcombine.high %v714_v57, %v718_v31  ;;  %v706_v20 = vld [vmem:[#allocation5 + $0x12c8] sm:$0xff]  ;;  %v8780_v22 = vcombine.low %v714_v57, %v718_v31 }
 0x4b5   :  { %8837 = vmatpush3.bf16.msra.mxu0 %v9356_v53 }
 0x4b6   :  { %8838 = vmatprep.subr.bf16.mxu0 %v9357_v8 }
 0x4b9   :  { %8839 = vmatpush3.bf16.msra.mxu0 %v9358_v42  ;;  %v722_v42 = vld [vmem:[#allocation5 + $0x1348] sm:$0xff] }
 0x4ba   :  { %8840 = vmatprep.subr.bf16.mxu0 %v9359_v40  ;;  %v726_v40 = vld [vmem:[#allocation5 + $0x1368] sm:$0xff] }
 0x4bb   :  { %v8789_v63 = vcombine.high %v722_v42, %v726_v40 }
 0x4bd   :  { %8841 = vmatpush3.bf16.msra.mxu0 %v9360_v47 }
 0x4be   :  { %7611 = vmatprep.subr.bf16.mxu0 %v8805_v5  ;;  %v8773_v5 = vcombine.high %v706_v20, %v710_v56 }
 0x4c3   :  { %v6478_v3 = vpop.f32.mrf.mxu0 }
 0x4c5   :  { %v6480_v11 = vpop.f32.mrf.mxu0 }
 0x4c7   :  { %v6482_v16 = vpop.f32.mrf.mxu0 }
 0x4c9   :  { %v6484_v37 = vpop.f32.mrf.mxu0 }
 0x4d2   :  { %v6435_v9 = vpop.f32.mrf.mxu1 }
 0x4d3   :  { %v6436_v25 = vadd.f32 %v6435_v9, %v6393_v60  ;;  %v721_v9 = vld [vmem:[#allocation5 + $0x1340] sm:$0xff] }
 0x4d4   :  { %v6437_v2 = vpop.f32.mrf.mxu1 }
 0x4d5   :  { %v6438_v24 = vadd.f32 %v6437_v2, %v6395_v33  ;;  %v6479_v52 = vadd.f32 %v6478_v3, %v6436_v25  ;;  %v8787_v2 = vcombine.high %v721_v9, %v725_v1  ;;  %v8786_v3 = vcombine.low %v721_v9, %v725_v1  ;;  %v705_v33 = vld [vmem:[#allocation5 + $0x12c0] sm:$0xff]  ;;  %v698_v1 = vld [vmem:[#allocation5 + $0x1288] sm:$0xff] }
 0x4d6   :  { %v6439_v4 = vpop.f32.mrf.mxu1 }
 0x4d7   :  { %v6440_v13 = vadd.f32 %v6439_v4, %v6397_v6  ;;  %v6481_v29 = vadd.f32 %v6480_v11, %v6438_v24  ;;  %v8779_v4 = vcombine.high %v713_v59, %v717_v36  ;;  %v8778_v11 = vcombine.low %v713_v59, %v717_v36  ;;  %v709_v6 = vld [vmem:[#allocation5 + $0x12e0] sm:$0xff] }
 0x4d8   :  { %v6441_v55 = vpop.f32.mrf.mxu1  ;;  %v8771_v60 = vcombine.high %v705_v33, %v709_v6 }
 0x4d9   :  { %v6442_v26 = vadd.f32 %v6441_v55, %v6399_v23  ;;  %v6483_v46 = vadd.f32 %v6482_v16, %v6440_v13  ;;  %v8770_v55 = vcombine.low %v705_v33, %v709_v6  ;;  %v748_v13 = vld [vmem:[#allocation11 + $0x14] sm:$0x3]  ;;  %v690_v33 = vld [vmem:[#allocation5 + $0x1248] sm:$0xff] }
 0x4da   :  { %v6614_v25 = vrot.slane %v748_v13, %v9619_v17 }
 0x4db   :  { %v6485_v62 = vadd.f32 %v6484_v37, %v6442_v26 }
 0x512   :  { %v6521_v7 = vpop.f32.mrf.mxu1 }
 0x513   :  { %v6522_v34 = vadd.f32 %v6521_v7, %v6479_v52  ;;  %v6610_v7 = vrot.slane %v748_v13, %v9622_v18  ;;  %v681_v13 = vld [vmem:[#allocation5 + $0x1200] sm:$0xff] }
 0x514   :  { %v6523_v27 = vpop.f32.mrf.mxu1 }
 0x515   :  { %v6524_v12 = vadd.f32 %v6523_v27, %v6481_v29  ;;  %v6532_v48 = vmax.f32 %v6522_v34, 0.0 }
 0x516   :  { %v6525_v14 = vpop.f32.mrf.mxu1 }
 0x517   :  { %v6526_v44 = vadd.f32 %v6525_v14, %v6483_v46  ;;  %v6533_v41 = vmax.f32 %v6524_v12, 0.0 }
 0x518   :  { %v6527_v38 = vpop.f32.mrf.mxu1 }
 0x519   :  { %v6528_v15 = vadd.f32 %v6527_v38, %v6485_v62  ;;  %v6536_v39 = vmax.f32 %v6526_v44, 0.0 }
 0x51b   :  { %v6537_v30 = vmax.f32 %v6528_v15, 0.0  ;;  %v6540_v58 = vpack.c.bf16 %v6536_v39, %v6532_v48  ;;  %v730_v48 = vld [vmem:[#allocation5 + $0x1388] sm:$0xff] }
 0x51d   :  { %v6541_v51 = vpack.c.bf16 %v6537_v30, %v6533_v41 }
 0x51f   :  { %7012 = vmatprep.mubr.bf16.mxu1 %v6541_v51  ;;  %v734_v51 = vld [vmem:[#allocation5 + $0x13a8] sm:$0xff] }
 0x520   :  { %7013 = vmatmul.mubr.bf16.vlgmr.msra.gmra.mxu1 %v6540_v58  ;;  %v8797_v8 = vcombine.high %v730_v48, %v734_v51  ;;  %v8796_v47 = vcombine.low %v730_v48, %v734_v51 }
 0x521   :  { %7600 = vmatprep.mubr.bf16.mxu1 %v9526_v0  ;;  %7569 = vmatpush1.bf16.msra.mxu1 %v8802_v49  ;;  %v8788_v49 = vcombine.low %v722_v42, %v726_v40  ;;  %v735_v42 = vld [vmem:[#allocation5 + $0x13b0] sm:$0xff]  ;;  %v732_v40 = vld [vmem:[#allocation5 + $0x1398] sm:$0xff] }
 0x522   :  { %7570 = vmatprep.subr.bf16.mxu1 %v8795_v28  ;;  %v8772_v28 = vcombine.low %v706_v20, %v710_v56  ;;  %v723_v20 = vld [vmem:[#allocation5 + $0x1350] sm:$0xff] }
 0x523   :  { %v727_v56 = vld [vmem:[#allocation5 + $0x1370] sm:$0xff] }
 0x525   :  { %7571 = vmatpush1.bf16.msra.mxu1 %v8794_v35  ;;  %v701_v35 = vld [vmem:[#allocation5 + $0x12a0] sm:$0xff] }
 0x526   :  { %7572 = vmatprep.subr.bf16.mxu1 %v8787_v2  ;;  %v702_v2 = vld [vmem:[#allocation5 + $0x12a8] sm:$0xff] }
 0x527   :  { %v8764_v59 = vcombine.low %v698_v1, %v702_v2  ;;  %v8765_v36 = vcombine.high %v698_v1, %v702_v2  ;;  %v715_v1 = vld [vmem:[#allocation5 + $0x1310] sm:$0xff] }
 0x528   :  { %v719_v2 = vld [vmem:[#allocation5 + $0x1330] sm:$0xff] }
 0x529   :  { %7573 = vmatpush1.bf16.msra.mxu1 %v8786_v3 }
 0x52a   :  { %7574 = vmatprep.subr.bf16.mxu1 %v8779_v4  ;;  %v689_v4 = vld [vmem:[#allocation5 + $0x1240] sm:$0xff] }
 0x52d   :  { %7575 = vmatpush1.bf16.msra.mxu1 %v8778_v11  ;;  %v693_v11 = vld [vmem:[#allocation5 + $0x1260] sm:$0xff] }
 0x52e   :  { %7576 = vmatprep.subr.bf16.mxu1 %v8771_v60  ;;  %v8755_v6 = vcombine.high %v689_v4, %v693_v11  ;;  %v694_v60 = vld [vmem:[#allocation5 + $0x1268] sm:$0xff] }
 0x531   :  { %7577 = vmatpush1.bf16.msra.mxu1 %v8770_v55  ;;  %v8754_v55 = vcombine.low %v689_v4, %v693_v11  ;;  %v8783_v11 = vcombine.high %v715_v1, %v719_v2 }
 0x560   :  { %v6971_v23 = vpop.f32.mrf.mxu0 }
 0x561   :  { %v6972_v52 = vadd.f32 %v6971_v23, %v6610_v7  ;;  %v8756_v23 = vcombine.low %v690_v33, %v694_v60 }
 0x562   :  { %v6973_v24 = vpop.f32.mrf.mxu0 }
 0x563   :  { %v6974_v46 = vadd.f32 %v6973_v24, %v6614_v25  ;;  %v8757_v24 = vcombine.high %v690_v33, %v694_v60  ;;  %v711_v60 = vld [vmem:[#allocation5 + $0x12f0] sm:$0xff] }
 0x564   :  { %v6975_v16 = vpop.f32.mrf.mxu0 }
 0x565   :  { %v6976_v37 = vadd.f32 %v6975_v16, %v6610_v7  ;;  %v685_v16 = vld [vmem:[#allocation5 + $0x1220] sm:$0xff] }
 0x566   :  { %v6977_v27 = vpop.f32.mrf.mxu0  ;;  %v8747_v7 = vcombine.high %v681_v13, %v685_v16 }
 0x567   :  { %v6978_v12 = vadd.f32 %v6977_v27, %v6614_v25  ;;  %v682_v25 = vld [vmem:[#allocation5 + $0x1208] sm:$0xff]  ;;  %v8746_v27 = vcombine.low %v681_v13, %v685_v16 }
 0x5e0   :  { %v7014_v26 = vpop.f32.mrf.mxu1 }
 0x5e1   :  { %v7015_v34 = vadd.f32 %v7014_v26, %v6972_v52  ;;  %v686_v26 = vld [vmem:[#allocation5 + $0x1228] sm:$0xff]  ;;  %v743_v52 = vld [vmem:[#allocation5 + $0x13f0] sm:$0xff] }
 0x5e2   :  { %v7016_v29 = vpop.f32.mrf.mxu1 }
 0x5e3   :  { %v7017_v44 = vadd.f32 %v7016_v29, %v6974_v46  ;;  %v7023_v58 = vmax.f32 %v7015_v34, 0.0  ;;  %v8748_v29 = vcombine.low %v682_v25, %v686_v26  ;;  %v8749_v46 = vcombine.high %v682_v25, %v686_v26  ;;  %v699_v25 = vld [vmem:[#allocation5 + $0x1290] sm:$0xff]  ;;  %v700_v26 = vld [vmem:[#allocation5 + $0x1298] sm:$0xff] }
 0x5e4   :  { %v7018_v14 = vpop.f32.mrf.mxu1 }
 0x5e5   :  { %v7019_v62 = vadd.f32 %v7018_v14, %v6976_v37  ;;  %v7024_v41 = vmax.f32 %v7017_v44, 0.0  ;;  %v739_v37 = vld [vmem:[#allocation5 + $0x13d0] sm:$0xff]  ;;  %v740_v14 = vld [vmem:[#allocation5 + $0x13d8] sm:$0xff] }
 0x5e6   :  { %v7020_v38 = vpop.f32.mrf.mxu1  ;;  %v8807_v44 = vcombine.high %v739_v37, %v743_v52 }
 0x5e7   :  { %v7021_v15 = vadd.f32 %v7020_v38, %v6978_v12  ;;  %v7025_v39 = vmax.f32 %v7019_v62, 0.0  ;;  %v8806_v12 = vcombine.low %v739_v37, %v743_v52  ;;  %v744_v62 = vld [vmem:[#allocation5 + $0x13f8] sm:$0xff] }
 0x5e8   :  { %v8808_v34 = vcombine.low %v740_v14, %v744_v62  ;;  %v8809_v38 = vcombine.high %v740_v14, %v744_v62  ;;  %v691_v14 = vld [vmem:[#allocation5 + $0x1250] sm:$0xff]  ;;  %v696_v62 = vld [vmem:[#allocation5 + $0x1278] sm:$0xff] }
 0x5e9   :  { %v7026_v30 = vmax.f32 %v7021_v15, 0.0  ;;  %v7027_v53 = vpack.c.bf16 %v7025_v39, %v7023_v58 }
 0x5eb   :  { %v7028_v61 = vpack.c.bf16 %v7026_v30, %v7024_v41  ;;  %v8729_v30 = vld [vmem:[#allocation11 + $0x16] ss:$0 sm:$0xff] }
 0x5ed   :  { %7195 = vmatprep.mubr.bf16.mxu0 %v7028_v61 }
 0x5ee   :  { %7196 = vmatmul.mubr.bf16.vlgmr.msra.gmra.mxu0 %v7027_v53 }
 0x5ef   :  { %7612 = vmatpush1.bf16.msra.mxu0 %v8804_v45  ;;  %7643 = vmatprep.mubr.bf16.mxu0 %v9526_v0  ;;  %v697_v45 = vld [vmem:[#allocation5 + $0x1280] sm:$0xff] }
 0x5f0   :  { %7613 = vmatprep.subr.bf16.mxu0 %v8797_v8  ;;  %v8763_v9 = vcombine.high %v697_v45, %v701_v35  ;;  %v8762_v3 = vcombine.low %v697_v45, %v701_v35  ;;  %v731_v8 = vld [vmem:[#allocation5 + $0x1390] sm:$0xff]  ;;  %v8791_v35 = vcombine.high %v723_v20, %v727_v56 }
 0x5f2   :  { %7578 = vmatprep.subr.bf16.mxu1 %v8763_v9 }
 0x5f3   :  { %7614 = vmatpush1.bf16.msra.mxu0 %v8796_v47  ;;  %7579 = vmatpush1.bf16.msra.mxu1 %v8762_v3  ;;  %v736_v47 = vld [vmem:[#allocation5 + $0x13b8] sm:$0xff] }
 0x5f4   :  { %7615 = vmatprep.subr.bf16.mxu0 %v8789_v63  ;;  %7580 = vmatprep.subr.bf16.mxu1 %v8755_v6  ;;  %v8800_v45 = vcombine.low %v732_v40, %v736_v47  ;;  %v716_v3 = vld [vmem:[#allocation5 + $0x1318] sm:$0xff]  ;;  %v707_v6 = vld [vmem:[#allocation5 + $0x12d0] sm:$0xff] }
 0x5f5   :  { %v8775_v16 = vcombine.high %v707_v6, %v711_v60 }
 0x5f7   :  { %7616 = vmatpush1.bf16.msra.mxu0 %v8788_v49  ;;  %7581 = vmatpush1.bf16.msra.mxu1 %v8754_v55  ;;  %v8799_v49 = vcombine.high %v731_v8, %v735_v42  ;;  %v708_v55 = vld [vmem:[#allocation5 + $0x12d8] sm:$0xff] }
 0x5f8   :  { %7617 = vmatprep.subr.bf16.mxu0 %v8781_v43  ;;  %7582 = vmatprep.subr.bf16.mxu1 %v8747_v7  ;;  %v8801_v43 = vcombine.high %v732_v40, %v736_v47  ;;  %v703_v7 = vld [vmem:[#allocation5 + $0x12b0] sm:$0xff] }
 0x5f9   :  { %v8767_v37 = vcombine.high %v699_v25, %v703_v7  ;;  %v750_v47 = vld [vmem:[#allocation11 + $0x17] sm:$0xff] }
 0x5fb   :  { %7618 = vmatpush1.bf16.msra.mxu0 %v8780_v22  ;;  %7583 = vmatpush1.bf16.msra.mxu1 %v8746_v27  ;;  %v724_v22 = vld [vmem:[#allocation5 + $0x1358] sm:$0xff] }
 0x5fc   :  { %7619 = vmatprep.subr.bf16.mxu0 %v8773_v5  ;;  %7654 = vmatprep.subr.bf16.mxu1 %v8807_v44  ;;  %v728_v5 = vld [vmem:[#allocation5 + $0x1378] sm:$0xff] }
 0x5fd   :  { %v8793_v9 = vcombine.high %v724_v22, %v728_v5  ;;  %v8792_v4 = vcombine.low %v724_v22, %v728_v5  ;;  %v704_v27 = vld [vmem:[#allocation5 + $0x12b8] sm:$0xff] }
 0x5fe   :  { %v8769_v52 = vcombine.high %v700_v26, %v704_v27  ;;  %v692_v44 = vld [vmem:[#allocation5 + $0x1258] sm:$0xff] }
 0x5ff   :  { %7620 = vmatpush1.bf16.msra.mxu0 %v8772_v28  ;;  %v8798_v28 = vcombine.low %v731_v8, %v735_v42 }
 0x600   :  { %7621 = vmatprep.subr.bf16.mxu0 %v8765_v36  ;;  %v8790_v36 = vcombine.low %v723_v20, %v727_v56 }
 0x603   :  { %7622 = vmatpush1.bf16.msra.mxu0 %v8764_v59  ;;  %v720_v59 = vld [vmem:[#allocation5 + $0x1338] sm:$0xff] }
 0x604   :  { %7623 = vmatprep.subr.bf16.mxu0 %v8757_v24  ;;  %v8785_v33 = vcombine.high %v716_v3, %v720_v59  ;;  %v8782_v24 = vcombine.low %v715_v1, %v719_v2  ;;  %v8784_v13 = vcombine.low %v716_v3, %v720_v59 }
 0x607   :  { %7624 = vmatpush1.bf16.msra.mxu0 %v8756_v23  ;;  %v712_v23 = vld [vmem:[#allocation5 + $0x12f8] sm:$0xff] }
 0x608   :  { %7625 = vmatprep.subr.bf16.mxu0 %v8749_v46  ;;  %v8776_v46 = vcombine.low %v708_v55, %v712_v23 }
 0x60b   :  { %7626 = vmatpush1.bf16.msra.mxu0 %v8748_v29  ;;  %v8774_v29 = vcombine.low %v707_v6, %v711_v60 }
 0x60c   :  { %7697 = vmatprep.subr.bf16.mxu0 %v8809_v38  ;;  %v8768_v38 = vcombine.low %v700_v26, %v704_v27  ;;  %v7239_v26 = vrot.slane %v750_v47, %v9662_v10 }
 0x6ae   :  { %v8842_v15 = vpop.f32.mrf.mxu0 }
 0x6b0   :  { %v8843_v39 = vpop.f32.mrf.mxu0 }
 0x6b1   :  { %v8844_v41 = vadd.f32 %v8843_v39, %v8842_v15  ;;  %v8761_v39 = vcombine.high %v692_v44, %v696_v62 }
 0x6b2   :  { %v8845_v48 = vpop.f32.mrf.mxu0 }
 0x6b3   :  { %v7198_v58 = vadd.f32 %v8844_v41, %v8729_v30  ;;  %v683_v41 = vld [vmem:[#allocation5 + $0x1210] sm:$0xff] }
 0x6b4   :  { %v8846_v51 = vpop.f32.mrf.mxu0 }
 0x6b5   :  { %v8847_v61 = vadd.f32 %v8846_v51, %v8845_v48  ;;  %v7204_v63 = vmax.f32 %v7198_v58, 0.0  ;;  %v684_v48 = vld [vmem:[#allocation5 + $0x1218] sm:$0xff] }
 0x6b6   :  { %v688_v51 = vld [vmem:[#allocation5 + $0x1238] sm:$0xff] }
 0x6b7   :  { %v7201_v53 = vadd.f32 %v8847_v61, %v8729_v30  ;;  %v687_v30 = vld [vmem:[#allocation5 + $0x1230] sm:$0xff]  ;;  %v8760_v61 = vcombine.low %v692_v44, %v696_v62  ;;  %v8753_v8 = vcombine.high %v684_v48, %v688_v51  ;;  %v8752_v40 = vcombine.low %v684_v48, %v688_v51 }
 0x6b8   :  { %v8750_v42 = vcombine.low %v683_v41, %v687_v30 }
 0x6b9   :  { %v7205_v57 = vmax.f32 %v7201_v53, 0.0  ;;  %v8751_v53 = vcombine.high %v683_v41, %v687_v30 }
 0x6bb   :  { %v9874_v31 = vpack.c.bf16 %v7205_v57, %v7204_v63  ;;  %v7211_v63 = vrot.slane %v750_v47, %v9622_v18  ;;  %v7219_v57 = vrot.slane %v750_v47, %v9630_v21 }
 0x6bd   :  { %7601 = vmatmul.mubr.bf16.vlgmr.msra.gmra.mxu1 %v9874_v31  ;;  %7644 = vmatmul.mubr.bf16.vlgmr.msra.gmra.mxu0 %v9874_v31 }
 0x6be   :  { %7655 = vmatpush1.bf16.msra.mxu1 %v8806_v12  ;;  %7698 = vmatpush1.bf16.msra.mxu0 %v8808_v34  ;;  %v695_v12 = vld [vmem:[#allocation5 + $0x1270] sm:$0xff]  ;;  %v8766_v34 = vcombine.low %v699_v25, %v703_v7  ;;  %v7235_v25 = vrot.slane %v750_v47, %v9686_v50  ;;  %v7231_v7 = vrot.slane %v750_v47, %v9659_v32 }
 0x6bf   :  { %7656 = vmatprep.subr.bf16.mxu1 %v8799_v49  ;;  %7699 = vmatprep.subr.bf16.mxu0 %v8801_v43  ;;  %v8759_v15 = vcombine.high %v691_v14, %v695_v12  ;;  %v8758_v58 = vcombine.low %v691_v14, %v695_v12  ;;  %v7215_v49 = vrot.slane %v750_v47, %v9619_v17 }
 0x6c0   :  { %7686 = vmatprep.mubr.bf16.mxu1 %v9526_v0  ;;  %7729 = vmatprep.mubr.bf16.mxu0 %v9526_v0  ;;  %v8777_v0 = vcombine.high %v708_v55, %v712_v23  ;;  %v7223_v43 = vrot.slane %v750_v47, %v9625_v19 }
 0x6c2   :  { %7657 = vmatpush1.bf16.msra.mxu1 %v8798_v28  ;;  %7700 = vmatpush1.bf16.msra.mxu0 %v8800_v45 }
 0x6c3   :  { %7658 = vmatprep.subr.bf16.mxu1 %v8791_v35  ;;  %7701 = vmatprep.subr.bf16.mxu0 %v8793_v9 }
 0x6c6   :  { %7659 = vmatpush1.bf16.msra.mxu1 %v8790_v36  ;;  %7702 = vmatpush1.bf16.msra.mxu0 %v8792_v4 }
 0x6c7   :  { %7660 = vmatprep.subr.bf16.mxu1 %v8783_v11  ;;  %7703 = vmatprep.subr.bf16.mxu0 %v8785_v33 }
 0x6ca   :  { %7661 = vmatpush1.bf16.msra.mxu1 %v8782_v24  ;;  %7704 = vmatpush1.bf16.msra.mxu0 %v8784_v13 }
 0x6cb   :  { %7662 = vmatprep.subr.bf16.mxu1 %v8775_v16  ;;  %7705 = vmatprep.subr.bf16.mxu0 %v8777_v0  ;;  %v7227_v0 = vrot.slane %v750_v47, %v9683_v54 }
 0x6ce   :  { %7663 = vmatpush1.bf16.msra.mxu1 %v8774_v29  ;;  %7706 = vmatpush1.bf16.msra.mxu0 %v8776_v46 }
 0x6cf   :  { %7664 = vmatprep.subr.bf16.mxu1 %v8767_v37  ;;  %7707 = vmatprep.subr.bf16.mxu0 %v8769_v52 }
 0x6d2   :  { %7665 = vmatpush1.bf16.msra.mxu1 %v8766_v34  ;;  %7708 = vmatpush1.bf16.msra.mxu0 %v8768_v38 }
 0x6d3   :  { %7666 = vmatprep.subr.bf16.mxu1 %v8759_v15  ;;  %7709 = vmatprep.subr.bf16.mxu0 %v8761_v39 }
 0x6d6   :  { %7667 = vmatpush1.bf16.msra.mxu1 %v8758_v58  ;;  %7710 = vmatpush1.bf16.msra.mxu0 %v8760_v61 }
 0x6d7   :  { %7668 = vmatprep.subr.bf16.mxu1 %v8751_v53  ;;  %7711 = vmatprep.subr.bf16.mxu0 %v8753_v8 }
 0x6da   :  { %7669 = vmatpush1.bf16.msra.mxu1 %v8750_v42  ;;  %7712 = vmatpush1.bf16.msra.mxu0 %v8752_v40 }
 0x6dd   :  { %7687 = vmatmul.mubr.bf16.vlgmr.msra.gmra.mxu1 %v9874_v31  ;;  %7730 = vmatmul.mubr.bf16.vlgmr.msra.gmra.mxu0 %v9874_v31 }
 0x77d   :  { %v7602_v20 = vpop.f32.mrf.mxu1  ;;  %v7645_v56 = vpop.f32.mrf.mxu0 }
 0x77e   :  { %v7603_v22 = vadd.f32 %v7602_v20, %v7211_v63  ;;  %v7646_v5 = vadd.f32 %v7645_v56, %v7219_v57 }
 0x77f   :  { %v7604_v28 = vpop.f32.mrf.mxu1  ;;  %v7647_v45 = vpop.f32.mrf.mxu0 }
 0x780   :  { %v7605_v35 = vadd.f32 %v7604_v28, %v7215_v49  ;;  %v7648_v9 = vadd.f32 %v7647_v45, %v7223_v43  ;;  %v7740_v31 = vmax.f32 %v7603_v22, 0.0  ;;  %v7742_v3 = vmax.f32 %v7646_v5, 0.0 }
 0x781   :  { %v7606_v1 = vpop.f32.mrf.mxu1  ;;  %v7649_v2 = vpop.f32.mrf.mxu0 }
 0x782   :  { %v7741_v59 = vmax.f32 %v7605_v35, 0.0  ;;  %v7743_v18 = vmax.f32 %v7648_v9, 0.0  ;;  %v7607_v36 = vadd.f32 %v7606_v1, %v7211_v63  ;;  %v7650_v21 = vadd.f32 %v7649_v2, %v7219_v57 }
 0x783   :  { %v7608_v4 = vpop.f32.mrf.mxu1  ;;  %v7651_v17 = vpop.f32.mrf.mxu0 }
 0x784   :  { %v8818_v11 = vpack.c.bf16 %v7741_v59, %v7740_v31  ;;  %v8819_v19 = vpack.c.bf16 %v7743_v18, %v7742_v3  ;;  %v7609_v33 = vadd.f32 %v7608_v4, %v7215_v49  ;;  %v7652_v6 = vadd.f32 %v7651_v17, %v7223_v43 }
 0x785   :  { %v7748_v60 = vmax.f32 %v7607_v36, 0.0  ;;  %v7750_v55 = vmax.f32 %v7650_v21, 0.0 }
 0x786   :  { %7804 = vst [vmem:[#allocation13] sm:$0xff] %v8818_v11  ;;  %7805 = vst [vmem:[#allocation13 + $0x8] sm:$0xff] %v8819_v19  ;;  %v7749_v23 = vmax.f32 %v7609_v33, 0.0  ;;  %v7751_v24 = vmax.f32 %v7652_v6, 0.0 }
 0x788   :  { %v8822_v13 = vpack.c.bf16 %v7749_v23, %v7748_v60  ;;  %v8823_v16 = vpack.c.bf16 %v7751_v24, %v7750_v55 }
 0x78a   :  { %7808 = vst [vmem:[#allocation13 + $0x20] sm:$0xff] %v8822_v13  ;;  %7809 = vst [vmem:[#allocation13 + $0x28] sm:$0xff] %v8823_v16 }
 0x79d   :  { %v7688_v27 = vpop.f32.mrf.mxu1  ;;  %v7731_v29 = vpop.f32.mrf.mxu0 }
 0x79e   :  { %v7689_v46 = vadd.f32 %v7688_v27, %v7227_v0  ;;  %v7732_v37 = vadd.f32 %v7731_v29, %v7235_v25 }
 0x79f   :  { %v7690_v52 = vpop.f32.mrf.mxu1  ;;  %v7733_v14 = vpop.f32.mrf.mxu0 }
 0x7a0   :  { %v7691_v12 = vadd.f32 %v7690_v52, %v7231_v7  ;;  %v7734_v44 = vadd.f32 %v7733_v14, %v7239_v26  ;;  %v7744_v38 = vmax.f32 %v7689_v46, 0.0  ;;  %v7746_v15 = vmax.f32 %v7732_v37, 0.0 }
 0x7a1   :  { %v7692_v62 = vpop.f32.mrf.mxu1  ;;  %v7735_v34 = vpop.f32.mrf.mxu0 }
 0x7a2   :  { %v7745_v39 = vmax.f32 %v7691_v12, 0.0  ;;  %v7747_v54 = vmax.f32 %v7734_v44, 0.0  ;;  %v7693_v41 = vadd.f32 %v7692_v62, %v7227_v0  ;;  %v7736_v50 = vadd.f32 %v7735_v34, %v7235_v25 }
 0x7a3   :  { %v7694_v30 = vpop.f32.mrf.mxu1  ;;  %v7737_v32 = vpop.f32.mrf.mxu0 }
 0x7a4   :  { %v8820_v48 = vpack.c.bf16 %v7745_v39, %v7744_v38  ;;  %v8821_v10 = vpack.c.bf16 %v7747_v54, %v7746_v15  ;;  %v7695_v51 = vadd.f32 %v7694_v30, %v7231_v7  ;;  %v7738_v58 = vadd.f32 %v7737_v32, %v7239_v26 }
 0x7a5   :  { %v7752_v61 = vmax.f32 %v7693_v41, 0.0  ;;  %v7754_v53 = vmax.f32 %v7736_v50, 0.0 }
 0x7a6   :  { %7806 = vst [vmem:[#allocation13 + $0x10] sm:$0xff] %v8820_v48  ;;  %7807 = vst [vmem:[#allocation13 + $0x18] sm:$0xff] %v8821_v10  ;;  %v7753_v8 = vmax.f32 %v7695_v51, 0.0  ;;  %v7755_v42 = vmax.f32 %v7738_v58, 0.0 }
 0x7a8   :  { %v8824_v40 = vpack.c.bf16 %v7753_v8, %v7752_v61  ;;  %v8825_v47 = vpack.c.bf16 %v7755_v42, %v7754_v53 }
 0x7aa   :  { %7810 = vst [vmem:[#allocation13 + $0x30] sm:$0xff] %v8824_v40  ;;  %7811 = vst [vmem:[#allocation13 + $0x38] sm:$0xff] %v8825_v47 }
 0x7ab   :  { %9493 = shalt.err (!%p9490_p6)
}
 0x7ac   :  { %7823 = dma.vmem_to_hbm [thread:$0]  %s7818_s5, 1024, %s9902_s6, [#allocation4], %s9513_s24, %s9513_s24, %s9514_s25  }
 0x7ad   :  { %9510 = dma.done.wait [#allocation4], 1024  }
 0x7ae   :  { %9511 = vsyncadd [#allocation4], 4294966272 }
 0x7af   :  { %7827 = vsyncpa [#allocation3], 1 }
 0x7b0   :  { %7828 = vsyncpa [#allocation6], 1 }
 0x7b1   :  { %7829 = vsyncpa [#allocation9], 1 }
 0x7b2   :  { %7830 = vsyncpa [#allocation12], 1 }
 0x7b3   :  { %7831 = vsyncpa [#allocation4], 1 }

</bundles_post_ra>
